<compile_context>
chip_gen: v5e
topology: v5e:2x2
jax: 0.10.0
libtpu: 0.0.40
codegen_flags: <defaults>
</compile_context>

<pallas_src>
import functools

import jax
import jax.numpy as jnp
from jax.experimental import pallas as pl
from jax.experimental.pallas import tpu as pltpu


# ---------------------------------------------------------------------------
# In-kernel helpers
# ---------------------------------------------------------------------------
def _write_padded(p_ref, o, Wd, Hd):
    """Write o (Wd, Hd, C) into p_ref (Wd+2, Hd+2, C) with a zero halo.

    Only three lane-dense stores: two width-halo planes + one interior slab
    (the height halo columns are folded into the interior store via a concat).
    """
    C = o.shape[-1]
    zrow = jnp.zeros((1, Hd + 2, C), jnp.float32)
    zcol = jnp.zeros((Wd, 1, C), jnp.float32)
    p_ref[0:1] = zrow
    p_ref[Wd + 1:Wd + 2] = zrow
    p_ref[1:Wd + 1] = jnp.concatenate([zcol, o, zcol], axis=1)


def _conv3x3_relu(xpad_ref, Wd, Hd, Cin, w_ref, b_ref):
    """3x3 'same' conv + bias + ReLU as 9 shift-and-accumulate matmuls.

    xpad_ref : (Wd+2, Hd+2, Cin) zero-padded input, (width, height, chan) order.
    w_ref    : (9*Cin, Cout) weights, rows ordered (kh, kw, cin), j = 3*kh + kw.
    b_ref    : (1, Cout) bias.
    Returns  : (Wd*Hd, Cout) value, rows ordered (w, h) w-major.
    """
    f32 = jnp.float32
    Cout = w_ref.shape[-1]
    acc = jnp.zeros((Wd * Hd, Cout), f32)
    for kh in range(3):
        for kw in range(3):
            j = 3 * kh + kw
            tap = xpad_ref[kw:kw + Wd, kh:kh + Hd, :].reshape(Wd * Hd, Cin)
            acc = acc + jnp.dot(tap, w_ref[j * Cin:(j + 1) * Cin, :],
                                preferred_element_type=f32)
    return jnp.maximum(acc + b_ref[...], 0.0)


def _rev_rows(v):
    """Reverse a small value along axis 0 (time reversal, T is tiny/static)."""
    T = v.shape[0]
    return jnp.concatenate([v[T - 1 - t:T - t] for t in range(T)], axis=0)


def _bigru_layer(x_seq, wih_ref, bih_ref, whh_ref, bhh_ref, Hh=16):
    """One bidirectional GRU layer (PyTorch gate order [r, z, n]).

    x_seq   : (T, Din) value.
    wih_ref : (Din, 6*Hh)  W_ih^T, columns [r_f | r_b | z_f | z_b | n_f | n_b].
    bih_ref : (1, 6*Hh)    b_ih, same column order.
    whh_ref : (2*Hh, 6*Hh) W_hh^T packed block-sparse: rows [h_f | h_b],
              columns [r_f | r_b | z_f | z_b | n_f | n_b]; cross-direction
              blocks are zero.
    bhh_ref : (1, 6*Hh)    b_hh, same column order.
    Returns : (T, 2*Hh) = concat([fwd states, bwd states], axis=-1) in time order.
    """
    T = x_seq.shape[0]
    f32 = jnp.float32
    H2, H4, H6 = 2 * Hh, 4 * Hh, 6 * Hh

    # Hoisted input projection: both directions + all gates in ONE matmul.
    gi = jnp.dot(x_seq, wih_ref[...], preferred_element_type=f32) + bih_ref[...]
    gi_r = _rev_rows(gi)
    # Align the backward-direction columns to loop step s (actual time T-1-s).
    gi_a = jnp.concatenate(
        [gi[:, 0:Hh],            gi_r[:, Hh:H2],
         gi[:, H2:H2 + Hh],      gi_r[:, H2 + Hh:H4],
         gi[:, H4:H4 + Hh],      gi_r[:, H4 + Hh:H6]], axis=-1)   # (T, 6*Hh)

    whh = whh_ref[...]
    bhh = bhh_ref[...]

    h = jnp.zeros((1, H2), f32)          # [h_fwd | h_bwd], lives in vregs
    hs = []
    for s in range(T):
        # ONE fused hidden-state matmul per step (both dirs, all gates).
        gh = jnp.dot(h, whh, preferred_element_type=f32) + bhh      # (1, 6*Hh)
        gx = gi_a[s:s + 1]                                          # (1, 6*Hh)
        r = jax.nn.sigmoid(gx[:, 0:H2] + gh[:, 0:H2])               # (1, 2*Hh)
        z = jax.nn.sigmoid(gx[:, H2:H4] + gh[:, H2:H4])
        n = jnp.tanh(gx[:, H4:H6] + r * gh[:, H4:H6])
        h = (1.0 - z) * n + z * h
        hs.append(h)

    hcat = jnp.concatenate(hs, axis=0)                              # (T, 2*Hh)
    # fwd states are already in time order; bwd states were computed in reverse.
    return jnp.concatenate([hcat[:, 0:Hh], _rev_rows(hcat[:, Hh:H2])], axis=-1)


# ---------------------------------------------------------------------------
# Fused CRNN kernel (one grid step = one batch element)
# ---------------------------------------------------------------------------
def _crnn_kernel(x_ref, w1_ref, b1_ref, w2_ref, b2_ref, w3_ref, b3_ref,
                 wih0_ref, bih0_ref, whh0_ref, bhh0_ref,
                 wih1_ref, bih1_ref, whh1_ref, bhh1_ref,
                 wd_ref, bd_ref,
                 out_ref,
                 p2_ref, p3_ref,
                 *, H, W):
    W1, W2 = W // 5, W // 10
    f32 = jnp.float32

    # ---- conv1 (Cin=1): pre-im2col'd (W*H, 9) @ (9, 128) + bias + ReLU ----
    y1 = jnp.dot(x_ref[0], w1_ref[...], preferred_element_type=f32) + b1_ref[...]
    y1 = jnp.maximum(y1, 0.0)
    o1 = jnp.max(y1.reshape(W1, 5, H, 128), axis=1)          # MaxPool(1,5) -> (W1,H,128)

    # ---- conv2: shift-and-accumulate + ReLU + MaxPool(1,2) ----
    _write_padded(p2_ref, o1, W1, H)
    y2 = _conv3x3_relu(p2_ref, W1, H, 128, w2_ref, b2_ref)   # (W1*H, 128)
    o2 = jnp.max(y2.reshape(W2, 2, H, 128), axis=1)          # (W2, H, 128)

    # ---- conv3: shift-and-accumulate + ReLU + MaxPool(1,2) ----
    _write_padded(p3_ref, o2, W2, H)
    y3 = _conv3x3_relu(p3_ref, W2, H, 128, w3_ref, b3_ref)   # (W2*H, 128)
    # Pooled width slots 0 and 1 (the PyTorch module only uses these two).
    slot0 = jnp.maximum(y3[0:H], y3[H:2 * H])
    slot1 = jnp.maximum(y3[2 * H:3 * H], y3[3 * H:4 * H])
    feat = jnp.concatenate([slot0, slot1], axis=-1)          # (H, 256)

    # ---- 2-layer bidirectional GRU over the frequency axis (seq len = H) ----
    x1 = _bigru_layer(feat, wih0_ref, bih0_ref, whh0_ref, bhh0_ref)   # (H, 32)
    rec = _bigru_layer(x1, wih1_ref, bih1_ref, whh1_ref, bhh1_ref)    # (H, 32)

    # TODO(synk): nn.Dropout(0.5) implemented as eval-mode identity (no RNG mask).
    # ---- Dense(32 -> 3) + Sigmoid, fused epilogue ----
    logits = jnp.dot(rec, wd_ref[...],
                     preferred_element_type=f32) + bd_ref[...]
    out_ref[0] = jax.nn.sigmoid(logits)


# ---------------------------------------------------------------------------
# Wrapper
# ---------------------------------------------------------------------------
def crnn_forward(x, params):
    """x: (B, T, F) float32 -> (B, F, 3), matching PyTorch CRNN.forward."""
    B, T, F = x.shape
    assert T % 20 == 0 and T >= 40, "time dim must be a multiple of 20 and >= 40"
    W, H = T, F                          # conv image: width = time, height = freq
    W1, W2 = W // 5, W // 10
    g0, g1 = params["gru"]

    # conv1 input as a lane-dense im2col slab built once in the wrapper
    # (layout plumbing, ~9x the raw 2.5 KiB/batch image): rows (w,h) w-major,
    # columns j = 3*kh + kw.
    xp = jnp.pad(x, ((0, 0), (1, 1), (1, 1)))                        # (B, W+2, H+2)
    taps = [xp[:, kw:kw + W, kh:kh + H] for kh in range(3) for kw in range(3)]
    x_cols = jnp.stack(taps, axis=-1).reshape(B, W * H, 9)

    kernel = functools.partial(_crnn_kernel, H=H, W=W)
    w2d = lambda i: (0, 0)

    return pl.pallas_call(
        kernel,
        out_shape=jax.ShapeDtypeStruct((B, H, 3), jnp.float32),
        grid=(B,),
        in_specs=[
            pl.BlockSpec((1, W * H, 9), lambda i: (i, 0, 0)),     # conv1 im2col input
            pl.BlockSpec((9, 128), w2d),                          # conv1 w
            pl.BlockSpec((1, 128), w2d),                          # conv1 b
            pl.BlockSpec((9 * 128, 128), w2d),                    # conv2 w
            pl.BlockSpec((1, 128), w2d),                          # conv2 b
            pl.BlockSpec((9 * 128, 128), w2d),                    # conv3 w
            pl.BlockSpec((1, 128), w2d),                          # conv3 b
            pl.BlockSpec((256, 96), w2d),                         # gru0 W_ih
            pl.BlockSpec((1, 96), w2d),                           # gru0 b_ih
            pl.BlockSpec((32, 96), w2d),                          # gru0 W_hh (packed)
            pl.BlockSpec((1, 96), w2d),                           # gru0 b_hh
            pl.BlockSpec((32, 96), w2d),                          # gru1 W_ih
            pl.BlockSpec((1, 96), w2d),                           # gru1 b_ih
            pl.BlockSpec((32, 96), w2d),                          # gru1 W_hh (packed)
            pl.BlockSpec((1, 96), w2d),                           # gru1 b_hh
            pl.BlockSpec((32, 3), w2d),                           # dense w
            pl.BlockSpec((1, 3), w2d),                            # dense b
        ],
        out_specs=pl.BlockSpec((1, H, 3), lambda i: (i, 0, 0)),
        scratch_shapes=[
            pltpu.VMEM((W1 + 2, H + 2, 128), jnp.float32),        # padded conv2 input
            pltpu.VMEM((W2 + 2, H + 2, 128), jnp.float32),        # padded conv3 input
        ],
        compiler_params=pltpu.CompilerParams(
            dimension_semantics=("parallel",),   # batch axis -> both TCs on v7x
            vmem_limit_bytes=32 * 1024 * 1024,
        ),
    )(x_cols,
      params["conv1_w"], params["conv1_b"],
      params["conv2_w"], params["conv2_b"],
      params["conv3_w"], params["conv3_b"],
      g0["wih"], g0["bih"], g0["whh"], g0["bhh"],
      g1["wih"], g1["bih"], g1["whh"], g1["bhh"],
      params["dense_w"], params["dense_b"])


# ---------------------------------------------------------------------------
# Deterministic parameter init (packed layouts the fused kernel expects)
# ---------------------------------------------------------------------------
def init_params(key):
    """Shape correspondence with the PyTorch module (gate order [r, z, n]):
      convN_w : Conv2d(Cin,128,3) weight (Cout,Cin,3,3) -> (9*Cin, Cout),
                row index = (3*kh + kw)*Cin + cin.
      gru[l]["wih"]/["bih"] : W_ih^T / b_ih, columns [r_f|r_b|z_f|z_b|n_f|n_b].
      gru[l]["whh"]/["bhh"] : W_hh^T packed block-sparse (2*Hh, 6*Hh):
                rows [h_fwd | h_bwd], same column order, zero cross-direction
                blocks; b_hh (1, 6*Hh).
      dense_w / dense_b     : Linear(32,3).weight^T / bias.
    Importing real PyTorch weights must respect exactly this packing.
    """
    keys = iter(jax.random.split(key, 40))

    def rn(shape, scale=0.05):
        return scale * jax.random.normal(next(keys), shape, dtype=jnp.float32)

    Hh = 16
    params = {
        "conv1_w": rn((9, 128)),        "conv1_b": rn((1, 128)),
        "conv2_w": rn((9 * 128, 128)),  "conv2_b": rn((1, 128)),
        "conv3_w": rn((9 * 128, 128)),  "conv3_b": rn((1, 128)),
        "dense_w": rn((2 * Hh, 3)),     "dense_b": rn((1, 3)),
    }
    gru = []
    for din in (256, 2 * Hh):            # layer-0 / layer-1 input widths
        wih = rn((din, 6 * Hh))
        bih = rn((1, 6 * Hh))
        whh = jnp.zeros((2 * Hh, 6 * Hh), jnp.float32)
        for g in range(3):               # gate g in (r, z, n)
            whh = whh.at[0:Hh, (2 * g) * Hh:(2 * g + 1) * Hh].set(rn((Hh, Hh)))
            whh = whh.at[Hh:2 * Hh, (2 * g + 1) * Hh:(2 * g + 2) * Hh].set(rn((Hh, Hh)))
        bhh = rn((1, 6 * Hh))
        gru.append({"wih": wih, "bih": bih, "whh": whh, "bhh": bhh})
    params["gru"] = gru
    return params


if __name__ == "__main__":
    key = jax.random.PRNGKey(0)
    kx, kp = jax.random.split(key)
    params = init_params(kp)

    # B=2, T=40 time frames (CNN pools width by 5*2*2=20 -> 2 slots), F=8 bins
    x = jax.random.normal(kx, (2, 40, 8), dtype=jnp.float32)

    out = jax.jit(crnn_forward)(x, params)
    out = jax.block_until_ready(out)

    assert out.shape == (2, 8, 3), out.shape
    assert bool(jnp.all(jnp.isfinite(out)))
    assert bool(jnp.all((out >= 0.0) & (out <= 1.0)))   # sigmoid range
    print("KERNEL_OK")
</pallas_src>

<mosaic_0001>
module attributes {stable_mosaic.version = 11 : i64} {
  func.func @_crnn_kernel(%arg0: i32, %arg1: memref<1x320x9xf32, #tpu.memory_space<vmem>>, %arg2: memref<9x128xf32, #tpu.memory_space<vmem>>, %arg3: memref<1x128xf32, #tpu.memory_space<vmem>>, %arg4: memref<1152x128xf32, #tpu.memory_space<vmem>>, %arg5: memref<1x128xf32, #tpu.memory_space<vmem>>, %arg6: memref<1152x128xf32, #tpu.memory_space<vmem>>, %arg7: memref<1x128xf32, #tpu.memory_space<vmem>>, %arg8: memref<256x96xf32, #tpu.memory_space<vmem>>, %arg9: memref<1x96xf32, #tpu.memory_space<vmem>>, %arg10: memref<32x96xf32, #tpu.memory_space<vmem>>, %arg11: memref<1x96xf32, #tpu.memory_space<vmem>>, %arg12: memref<32x96xf32, #tpu.memory_space<vmem>>, %arg13: memref<1x96xf32, #tpu.memory_space<vmem>>, %arg14: memref<32x96xf32, #tpu.memory_space<vmem>>, %arg15: memref<1x96xf32, #tpu.memory_space<vmem>>, %arg16: memref<32x3xf32, #tpu.memory_space<vmem>>, %arg17: memref<1x3xf32, #tpu.memory_space<vmem>>, %arg18: memref<1x8x3xf32, #tpu.memory_space<vmem>>, %arg19: memref<10x10x128xf32, #tpu.memory_space<vmem>>, %arg20: memref<6x10x128xf32, #tpu.memory_space<vmem>>) attributes {dimension_semantics = [#tpu.dimension_semantics<parallel>], iteration_bounds = array<i64: 2>, scalar_prefetch = 0 : i64, scratch_operands = 2 : i64, tpu.core_type = #tpu.core_type<tc>, window_params = [{transform_indices = @transform_0, window_bounds = array<i64: 1, 320, 9>}, {pipeline_mode = #tpu.pipeline_mode<synchronous>, transform_indices = @transform_1, window_bounds = array<i64: 9, 128>}, {pipeline_mode = #tpu.pipeline_mode<synchronous>, transform_indices = @transform_2, window_bounds = array<i64: 1, 128>}, {pipeline_mode = #tpu.pipeline_mode<synchronous>, transform_indices = @transform_3, window_bounds = array<i64: 1152, 128>}, {pipeline_mode = #tpu.pipeline_mode<synchronous>, transform_indices = @transform_4, window_bounds = array<i64: 1, 128>}, {pipeline_mode = #tpu.pipeline_mode<synchronous>, transform_indices = @transform_5, window_bounds = array<i64: 1152, 128>}, {pipeline_mode = #tpu.pipeline_mode<synchronous>, transform_indices = @transform_6, window_bounds = array<i64: 1, 128>}, {pipeline_mode = #tpu.pipeline_mode<synchronous>, transform_indices = @transform_7, window_bounds = array<i64: 256, 96>}, {pipeline_mode = #tpu.pipeline_mode<synchronous>, transform_indices = @transform_8, window_bounds = array<i64: 1, 96>}, {pipeline_mode = #tpu.pipeline_mode<synchronous>, transform_indices = @transform_9, window_bounds = array<i64: 32, 96>}, {pipeline_mode = #tpu.pipeline_mode<synchronous>, transform_indices = @transform_10, window_bounds = array<i64: 1, 96>}, {pipeline_mode = #tpu.pipeline_mode<synchronous>, transform_indices = @transform_11, window_bounds = array<i64: 32, 96>}, {pipeline_mode = #tpu.pipeline_mode<synchronous>, transform_indices = @transform_12, window_bounds = array<i64: 1, 96>}, {pipeline_mode = #tpu.pipeline_mode<synchronous>, transform_indices = @transform_13, window_bounds = array<i64: 32, 96>}, {pipeline_mode = #tpu.pipeline_mode<synchronous>, transform_indices = @transform_14, window_bounds = array<i64: 1, 96>}, {pipeline_mode = #tpu.pipeline_mode<synchronous>, transform_indices = @transform_15, window_bounds = array<i64: 32, 3>}, {pipeline_mode = #tpu.pipeline_mode<synchronous>, transform_indices = @transform_16, window_bounds = array<i64: 1, 3>}, {transform_indices = @transform_17, window_bounds = array<i64: 1, 8, 3>}]} {
    %c0 = arith.constant 0 : index
    %c0_0 = arith.constant 0 : index
    %c0_1 = arith.constant 0 : index
    %0 = vector.load %arg1[%c0, %c0_0, %c0_1] : memref<1x320x9xf32, #tpu.memory_space<vmem>>, vector<1x320x9xf32>
    %1 = vector.shape_cast %0 : vector<1x320x9xf32> to vector<320x9xf32>
    %c0_2 = arith.constant 0 : index
    %c0_3 = arith.constant 0 : index
    %2 = vector.load %arg2[%c0_2, %c0_3] : memref<9x128xf32, #tpu.memory_space<vmem>>, vector<9x128xf32>
    %cst = arith.constant dense<0.000000e+00> : vector<320x128xf32>
    %3 = tpu.matmul %1, %2, %cst {dimension_numbers = #tpu.dot_dimension_numbers<[1], [0], [0], [1], [0, 0, 1, 1], [], []>} : vector<320x9xf32>, vector<9x128xf32>, vector<320x128xf32> -> vector<320x128xf32>
    %c0_4 = arith.constant 0 : index
    %c0_5 = arith.constant 0 : index
    %4 = vector.load %arg3[%c0_4, %c0_5] : memref<1x128xf32, #tpu.memory_space<vmem>>, vector<1x128xf32>
    %5 = vector.broadcast %4 : vector<1x128xf32> to vector<320x128xf32>
    %6 = arith.addf %3, %5 : vector<320x128xf32>
    %cst_6 = arith.constant 0.000000e+00 : f32
    %7 = vector.broadcast %cst_6 : f32 to vector<320x128xf32>
    %8 = arith.maximumf %6, %7 : vector<320x128xf32>
    %9 = vector.shape_cast %8 : vector<320x128xf32> to vector<8x5x8x128xf32>
    %cst_7 = arith.constant dense<0xFF800000> : vector<8x8x128xf32>
    %10 = vector.multi_reduction <maximumf>, %9, %cst_7 [1] : vector<8x5x8x128xf32> to vector<8x8x128xf32>
    %cst_8 = arith.constant 0.000000e+00 : f32
    %11 = vector.broadcast %cst_8 : f32 to vector<1x10x128xf32>
    %cst_9 = arith.constant 0.000000e+00 : f32
    %12 = vector.broadcast %cst_9 : f32 to vector<8x1x128xf32>
    %c0_10 = arith.constant 0 : index
    %c0_11 = arith.constant 0 : index
    %c0_12 = arith.constant 0 : index
    %13 = vector.load %arg19[%c0_10, %c0_11, %c0_12] : memref<10x10x128xf32, #tpu.memory_space<vmem>>, vector<1x10x128xf32>
    tpu.vector_store %arg19[%c0_10, %c0_11, %c0_12], %11 {strides = array<i32>} : memref<10x10x128xf32, #tpu.memory_space<vmem>>, vector<1x10x128xf32>,
    %c9 = arith.constant 9 : index
    %c0_13 = arith.constant 0 : index
    %c0_14 = arith.constant 0 : index
    %14 = vector.load %arg19[%c9, %c0_13, %c0_14] : memref<10x10x128xf32, #tpu.memory_space<vmem>>, vector<1x10x128xf32>
    tpu.vector_store %arg19[%c9, %c0_13, %c0_14], %11 {strides = array<i32>} : memref<10x10x128xf32, #tpu.memory_space<vmem>>, vector<1x10x128xf32>,
    %15 = tpu.concatenate %12, %10, %12 in 1 : vector<8x1x128xf32>, vector<8x8x128xf32>, vector<8x1x128xf32> -> vector<8x10x128xf32>
    %c1 = arith.constant 1 : index
    %c0_15 = arith.constant 0 : index
    %c0_16 = arith.constant 0 : index
    %16 = vector.load %arg19[%c1, %c0_15, %c0_16] : memref<10x10x128xf32, #tpu.memory_space<vmem>>, vector<8x10x128xf32>
    tpu.vector_store %arg19[%c1, %c0_15, %c0_16], %15 {strides = array<i32>} : memref<10x10x128xf32, #tpu.memory_space<vmem>>, vector<8x10x128xf32>,
    %cst_17 = arith.constant 0.000000e+00 : f32
    %17 = vector.broadcast %cst_17 : f32 to vector<64x128xf32>
    %c0_18 = arith.constant 0 : index
    %c0_19 = arith.constant 0 : index
    %c0_20 = arith.constant 0 : index
    %18 = vector.load %arg19[%c0_18, %c0_19, %c0_20] : memref<10x10x128xf32, #tpu.memory_space<vmem>>, vector<8x8x128xf32>
    %19 = vector.shape_cast %18 : vector<8x8x128xf32> to vector<64x128xf32>
    %c0_21 = arith.constant 0 : index
    %c0_22 = arith.constant 0 : index
    %20 = vector.load %arg4[%c0_21, %c0_22] : memref<1152x128xf32, #tpu.memory_space<vmem>>, vector<128x128xf32>
    %cst_23 = arith.constant dense<0.000000e+00> : vector<64x128xf32>
    %21 = tpu.matmul %19, %20, %cst_23 {dimension_numbers = #tpu.dot_dimension_numbers<[1], [0], [0], [1], [0, 0, 1, 1], [], []>} : vector<64x128xf32>, vector<128x128xf32>, vector<64x128xf32> -> vector<64x128xf32>
    %22 = arith.addf %17, %21 : vector<64x128xf32>
    %c1_24 = arith.constant 1 : index
    %c0_25 = arith.constant 0 : index
    %c0_26 = arith.constant 0 : index
    %23 = vector.load %arg19[%c1_24, %c0_25, %c0_26] : memref<10x10x128xf32, #tpu.memory_space<vmem>>, vector<8x8x128xf32>
    %24 = vector.shape_cast %23 : vector<8x8x128xf32> to vector<64x128xf32>
    %c128 = arith.constant 128 : index
    %c0_27 = arith.constant 0 : index
    %25 = vector.load %arg4[%c128, %c0_27] : memref<1152x128xf32, #tpu.memory_space<vmem>>, vector<128x128xf32>
    %cst_28 = arith.constant dense<0.000000e+00> : vector<64x128xf32>
    %26 = tpu.matmul %24, %25, %cst_28 {dimension_numbers = #tpu.dot_dimension_numbers<[1], [0], [0], [1], [0, 0, 1, 1], [], []>} : vector<64x128xf32>, vector<128x128xf32>, vector<64x128xf32> -> vector<64x128xf32>
    %27 = arith.addf %22, %26 : vector<64x128xf32>
    %c2 = arith.constant 2 : index
    %c0_29 = arith.constant 0 : index
    %c0_30 = arith.constant 0 : index
    %28 = vector.load %arg19[%c2, %c0_29, %c0_30] : memref<10x10x128xf32, #tpu.memory_space<vmem>>, vector<8x8x128xf32>
    %29 = vector.shape_cast %28 : vector<8x8x128xf32> to vector<64x128xf32>
    %c256 = arith.constant 256 : index
    %c0_31 = arith.constant 0 : index
    %30 = vector.load %arg4[%c256, %c0_31] : memref<1152x128xf32, #tpu.memory_space<vmem>>, vector<128x128xf32>
    %cst_32 = arith.constant dense<0.000000e+00> : vector<64x128xf32>
    %31 = tpu.matmul %29, %30, %cst_32 {dimension_numbers = #tpu.dot_dimension_numbers<[1], [0], [0], [1], [0, 0, 1, 1], [], []>} : vector<64x128xf32>, vector<128x128xf32>, vector<64x128xf32> -> vector<64x128xf32>
    %32 = arith.addf %27, %31 : vector<64x128xf32>
    %c0_33 = arith.constant 0 : index
    %c1_34 = arith.constant 1 : index
    %c0_35 = arith.constant 0 : index
    %33 = vector.load %arg19[%c0_33, %c1_34, %c0_35] : memref<10x10x128xf32, #tpu.memory_space<vmem>>, vector<8x8x128xf32>
    %34 = vector.shape_cast %33 : vector<8x8x128xf32> to vector<64x128xf32>
    %c384 = arith.constant 384 : index
    %c0_36 = arith.constant 0 : index
    %35 = vector.load %arg4[%c384, %c0_36] : memref<1152x128xf32, #tpu.memory_space<vmem>>, vector<128x128xf32>
    %cst_37 = arith.constant dense<0.000000e+00> : vector<64x128xf32>
    %36 = tpu.matmul %34, %35, %cst_37 {dimension_numbers = #tpu.dot_dimension_numbers<[1], [0], [0], [1], [0, 0, 1, 1], [], []>} : vector<64x128xf32>, vector<128x128xf32>, vector<64x128xf32> -> vector<64x128xf32>
    %37 = arith.addf %32, %36 : vector<64x128xf32>
    %c1_38 = arith.constant 1 : index
    %c1_39 = arith.constant 1 : index
    %c0_40 = arith.constant 0 : index
    %38 = vector.load %arg19[%c1_38, %c1_39, %c0_40] : memref<10x10x128xf32, #tpu.memory_space<vmem>>, vector<8x8x128xf32>
    %39 = vector.shape_cast %38 : vector<8x8x128xf32> to vector<64x128xf32>
    %c512 = arith.constant 512 : index
    %c0_41 = arith.constant 0 : index
    %40 = vector.load %arg4[%c512, %c0_41] : memref<1152x128xf32, #tpu.memory_space<vmem>>, vector<128x128xf32>
    %cst_42 = arith.constant dense<0.000000e+00> : vector<64x128xf32>
    %41 = tpu.matmul %39, %40, %cst_42 {dimension_numbers = #tpu.dot_dimension_numbers<[1], [0], [0], [1], [0, 0, 1, 1], [], []>} : vector<64x128xf32>, vector<128x128xf32>, vector<64x128xf32> -> vector<64x128xf32>
    %42 = arith.addf %37, %41 : vector<64x128xf32>
    %c2_43 = arith.constant 2 : index
    %c1_44 = arith.constant 1 : index
    %c0_45 = arith.constant 0 : index
    %43 = vector.load %arg19[%c2_43, %c1_44, %c0_45] : memref<10x10x128xf32, #tpu.memory_space<vmem>>, vector<8x8x128xf32>
    %44 = vector.shape_cast %43 : vector<8x8x128xf32> to vector<64x128xf32>
    %c640 = arith.constant 640 : index
    %c0_46 = arith.constant 0 : index
    %45 = vector.load %arg4[%c640, %c0_46] : memref<1152x128xf32, #tpu.memory_space<vmem>>, vector<128x128xf32>
    %cst_47 = arith.constant dense<0.000000e+00> : vector<64x128xf32>
    %46 = tpu.matmul %44, %45, %cst_47 {dimension_numbers = #tpu.dot_dimension_numbers<[1], [0], [0], [1], [0, 0, 1, 1], [], []>} : vector<64x128xf32>, vector<128x128xf32>, vector<64x128xf32> -> vector<64x128xf32>
    %47 = arith.addf %42, %46 : vector<64x128xf32>
    %c0_48 = arith.constant 0 : index
    %c2_49 = arith.constant 2 : index
    %c0_50 = arith.constant 0 : index
    %48 = vector.load %arg19[%c0_48, %c2_49, %c0_50] : memref<10x10x128xf32, #tpu.memory_space<vmem>>, vector<8x8x128xf32>
    %49 = vector.shape_cast %48 : vector<8x8x128xf32> to vector<64x128xf32>
    %c768 = arith.constant 768 : index
    %c0_51 = arith.constant 0 : index
    %50 = vector.load %arg4[%c768, %c0_51] : memref<1152x128xf32, #tpu.memory_space<vmem>>, vector<128x128xf32>
    %cst_52 = arith.constant dense<0.000000e+00> : vector<64x128xf32>
    %51 = tpu.matmul %49, %50, %cst_52 {dimension_numbers = #tpu.dot_dimension_numbers<[1], [0], [0], [1], [0, 0, 1, 1], [], []>} : vector<64x128xf32>, vector<128x128xf32>, vector<64x128xf32> -> vector<64x128xf32>
    %52 = arith.addf %47, %51 : vector<64x128xf32>
    %c1_53 = arith.constant 1 : index
    %c2_54 = arith.constant 2 : index
    %c0_55 = arith.constant 0 : index
    %53 = vector.load %arg19[%c1_53, %c2_54, %c0_55] : memref<10x10x128xf32, #tpu.memory_space<vmem>>, vector<8x8x128xf32>
    %54 = vector.shape_cast %53 : vector<8x8x128xf32> to vector<64x128xf32>
    %c896 = arith.constant 896 : index
    %c0_56 = arith.constant 0 : index
    %55 = vector.load %arg4[%c896, %c0_56] : memref<1152x128xf32, #tpu.memory_space<vmem>>, vector<128x128xf32>
    %cst_57 = arith.constant dense<0.000000e+00> : vector<64x128xf32>
    %56 = tpu.matmul %54, %55, %cst_57 {dimension_numbers = #tpu.dot_dimension_numbers<[1], [0], [0], [1], [0, 0, 1, 1], [], []>} : vector<64x128xf32>, vector<128x128xf32>, vector<64x128xf32> -> vector<64x128xf32>
    %57 = arith.addf %52, %56 : vector<64x128xf32>
    %c2_58 = arith.constant 2 : index
    %c2_59 = arith.constant 2 : index
    %c0_60 = arith.constant 0 : index
    %58 = vector.load %arg19[%c2_58, %c2_59, %c0_60] : memref<10x10x128xf32, #tpu.memory_space<vmem>>, vector<8x8x128xf32>
    %59 = vector.shape_cast %58 : vector<8x8x128xf32> to vector<64x128xf32>
    %c1024 = arith.constant 1024 : index
    %c0_61 = arith.constant 0 : index
    %60 = vector.load %arg4[%c1024, %c0_61] : memref<1152x128xf32, #tpu.memory_space<vmem>>, vector<128x128xf32>
    %cst_62 = arith.constant dense<0.000000e+00> : vector<64x128xf32>
    %61 = tpu.matmul %59, %60, %cst_62 {dimension_numbers = #tpu.dot_dimension_numbers<[1], [0], [0], [1], [0, 0, 1, 1], [], []>} : vector<64x128xf32>, vector<128x128xf32>, vector<64x128xf32> -> vector<64x128xf32>
    %62 = arith.addf %57, %61 : vector<64x128xf32>
    %c0_63 = arith.constant 0 : index
    %c0_64 = arith.constant 0 : index
    %63 = vector.load %arg5[%c0_63, %c0_64] : memref<1x128xf32, #tpu.memory_space<vmem>>, vector<1x128xf32>
    %64 = vector.broadcast %63 : vector<1x128xf32> to vector<64x128xf32>
    %65 = arith.addf %62, %64 : vector<64x128xf32>
    %cst_65 = arith.constant 0.000000e+00 : f32
    %66 = vector.broadcast %cst_65 : f32 to vector<64x128xf32>
    %67 = arith.maximumf %65, %66 : vector<64x128xf32>
    %68 = vector.shape_cast %67 : vector<64x128xf32> to vector<4x2x8x128xf32>
    %cst_66 = arith.constant dense<0xFF800000> : vector<4x8x128xf32>
    %69 = vector.multi_reduction <maximumf>, %68, %cst_66 [1] : vector<4x2x8x128xf32> to vector<4x8x128xf32>
    %cst_67 = arith.constant 0.000000e+00 : f32
    %70 = vector.broadcast %cst_67 : f32 to vector<1x10x128xf32>
    %cst_68 = arith.constant 0.000000e+00 : f32
    %71 = vector.broadcast %cst_68 : f32 to vector<4x1x128xf32>
    %c0_69 = arith.constant 0 : index
    %c0_70 = arith.constant 0 : index
    %c0_71 = arith.constant 0 : index
    %72 = vector.load %arg20[%c0_69, %c0_70, %c0_71] : memref<6x10x128xf32, #tpu.memory_space<vmem>>, vector<1x10x128xf32>
    tpu.vector_store %arg20[%c0_69, %c0_70, %c0_71], %70 {strides = array<i32>} : memref<6x10x128xf32, #tpu.memory_space<vmem>>, vector<1x10x128xf32>,
    %c5 = arith.constant 5 : index
    %c0_72 = arith.constant 0 : index
    %c0_73 = arith.constant 0 : index
    %73 = vector.load %arg20[%c5, %c0_72, %c0_73] : memref<6x10x128xf32, #tpu.memory_space<vmem>>, vector<1x10x128xf32>
    tpu.vector_store %arg20[%c5, %c0_72, %c0_73], %70 {strides = array<i32>} : memref<6x10x128xf32, #tpu.memory_space<vmem>>, vector<1x10x128xf32>,
    %74 = tpu.concatenate %71, %69, %71 in 1 : vector<4x1x128xf32>, vector<4x8x128xf32>, vector<4x1x128xf32> -> vector<4x10x128xf32>
    %c1_74 = arith.constant 1 : index
    %c0_75 = arith.constant 0 : index
    %c0_76 = arith.constant 0 : index
    %75 = vector.load %arg20[%c1_74, %c0_75, %c0_76] : memref<6x10x128xf32, #tpu.memory_space<vmem>>, vector<4x10x128xf32>
    tpu.vector_store %arg20[%c1_74, %c0_75, %c0_76], %74 {strides = array<i32>} : memref<6x10x128xf32, #tpu.memory_space<vmem>>, vector<4x10x128xf32>,
    %cst_77 = arith.constant 0.000000e+00 : f32
    %76 = vector.broadcast %cst_77 : f32 to vector<32x128xf32>
    %c0_78 = arith.constant 0 : index
    %c0_79 = arith.constant 0 : index
    %c0_80 = arith.constant 0 : index
    %77 = vector.load %arg20[%c0_78, %c0_79, %c0_80] : memref<6x10x128xf32, #tpu.memory_space<vmem>>, vector<4x8x128xf32>
    %78 = vector.shape_cast %77 : vector<4x8x128xf32> to vector<32x128xf32>
    %c0_81 = arith.constant 0 : index
    %c0_82 = arith.constant 0 : index
    %79 = vector.load %arg6[%c0_81, %c0_82] : memref<1152x128xf32, #tpu.memory_space<vmem>>, vector<128x128xf32>
    %cst_83 = arith.constant dense<0.000000e+00> : vector<32x128xf32>
    %80 = tpu.matmul %78, %79, %cst_83 {dimension_numbers = #tpu.dot_dimension_numbers<[1], [0], [0], [1], [0, 0, 1, 1], [], []>} : vector<32x128xf32>, vector<128x128xf32>, vector<32x128xf32> -> vector<32x128xf32>
    %81 = arith.addf %76, %80 : vector<32x128xf32>
    %c1_84 = arith.constant 1 : index
    %c0_85 = arith.constant 0 : index
    %c0_86 = arith.constant 0 : index
    %82 = vector.load %arg20[%c1_84, %c0_85, %c0_86] : memref<6x10x128xf32, #tpu.memory_space<vmem>>, vector<4x8x128xf32>
    %83 = vector.shape_cast %82 : vector<4x8x128xf32> to vector<32x128xf32>
    %c128_87 = arith.constant 128 : index
    %c0_88 = arith.constant 0 : index
    %84 = vector.load %arg6[%c128_87, %c0_88] : memref<1152x128xf32, #tpu.memory_space<vmem>>, vector<128x128xf32>
    %cst_89 = arith.constant dense<0.000000e+00> : vector<32x128xf32>
    %85 = tpu.matmul %83, %84, %cst_89 {dimension_numbers = #tpu.dot_dimension_numbers<[1], [0], [0], [1], [0, 0, 1, 1], [], []>} : vector<32x128xf32>, vector<128x128xf32>, vector<32x128xf32> -> vector<32x128xf32>
    %86 = arith.addf %81, %85 : vector<32x128xf32>
    %c2_90 = arith.constant 2 : index
    %c0_91 = arith.constant 0 : index
    %c0_92 = arith.constant 0 : index
    %87 = vector.load %arg20[%c2_90, %c0_91, %c0_92] : memref<6x10x128xf32, #tpu.memory_space<vmem>>, vector<4x8x128xf32>
    %88 = vector.shape_cast %87 : vector<4x8x128xf32> to vector<32x128xf32>
    %c256_93 = arith.constant 256 : index
    %c0_94 = arith.constant 0 : index
    %89 = vector.load %arg6[%c256_93, %c0_94] : memref<1152x128xf32, #tpu.memory_space<vmem>>, vector<128x128xf32>
    %cst_95 = arith.constant dense<0.000000e+00> : vector<32x128xf32>
    %90 = tpu.matmul %88, %89, %cst_95 {dimension_numbers = #tpu.dot_dimension_numbers<[1], [0], [0], [1], [0, 0, 1, 1], [], []>} : vector<32x128xf32>, vector<128x128xf32>, vector<32x128xf32> -> vector<32x128xf32>
    %91 = arith.addf %86, %90 : vector<32x128xf32>
    %c0_96 = arith.constant 0 : index
    %c1_97 = arith.constant 1 : index
    %c0_98 = arith.constant 0 : index
    %92 = vector.load %arg20[%c0_96, %c1_97, %c0_98] : memref<6x10x128xf32, #tpu.memory_space<vmem>>, vector<4x8x128xf32>
    %93 = vector.shape_cast %92 : vector<4x8x128xf32> to vector<32x128xf32>
    %c384_99 = arith.constant 384 : index
    %c0_100 = arith.constant 0 : index
    %94 = vector.load %arg6[%c384_99, %c0_100] : memref<1152x128xf32, #tpu.memory_space<vmem>>, vector<128x128xf32>
    %cst_101 = arith.constant dense<0.000000e+00> : vector<32x128xf32>
    %95 = tpu.matmul %93, %94, %cst_101 {dimension_numbers = #tpu.dot_dimension_numbers<[1], [0], [0], [1], [0, 0, 1, 1], [], []>} : vector<32x128xf32>, vector<128x128xf32>, vector<32x128xf32> -> vector<32x128xf32>
    %96 = arith.addf %91, %95 : vector<32x128xf32>
    %c1_102 = arith.constant 1 : index
    %c1_103 = arith.constant 1 : index
    %c0_104 = arith.constant 0 : index
    %97 = vector.load %arg20[%c1_102, %c1_103, %c0_104] : memref<6x10x128xf32, #tpu.memory_space<vmem>>, vector<4x8x128xf32>
    %98 = vector.shape_cast %97 : vector<4x8x128xf32> to vector<32x128xf32>
    %c512_105 = arith.constant 512 : index
    %c0_106 = arith.constant 0 : index
    %99 = vector.load %arg6[%c512_105, %c0_106] : memref<1152x128xf32, #tpu.memory_space<vmem>>, vector<128x128xf32>
    %cst_107 = arith.constant dense<0.000000e+00> : vector<32x128xf32>
    %100 = tpu.matmul %98, %99, %cst_107 {dimension_numbers = #tpu.dot_dimension_numbers<[1], [0], [0], [1], [0, 0, 1, 1], [], []>} : vector<32x128xf32>, vector<128x128xf32>, vector<32x128xf32> -> vector<32x128xf32>
    %101 = arith.addf %96, %100 : vector<32x128xf32>
    %c2_108 = arith.constant 2 : index
    %c1_109 = arith.constant 1 : index
    %c0_110 = arith.constant 0 : index
    %102 = vector.load %arg20[%c2_108, %c1_109, %c0_110] : memref<6x10x128xf32, #tpu.memory_space<vmem>>, vector<4x8x128xf32>
    %103 = vector.shape_cast %102 : vector<4x8x128xf32> to vector<32x128xf32>
    %c640_111 = arith.constant 640 : index
    %c0_112 = arith.constant 0 : index
    %104 = vector.load %arg6[%c640_111, %c0_112] : memref<1152x128xf32, #tpu.memory_space<vmem>>, vector<128x128xf32>
    %cst_113 = arith.constant dense<0.000000e+00> : vector<32x128xf32>
    %105 = tpu.matmul %103, %104, %cst_113 {dimension_numbers = #tpu.dot_dimension_numbers<[1], [0], [0], [1], [0, 0, 1, 1], [], []>} : vector<32x128xf32>, vector<128x128xf32>, vector<32x128xf32> -> vector<32x128xf32>
    %106 = arith.addf %101, %105 : vector<32x128xf32>
    %c0_114 = arith.constant 0 : index
    %c2_115 = arith.constant 2 : index
    %c0_116 = arith.constant 0 : index
    %107 = vector.load %arg20[%c0_114, %c2_115, %c0_116] : memref<6x10x128xf32, #tpu.memory_space<vmem>>, vector<4x8x128xf32>
    %108 = vector.shape_cast %107 : vector<4x8x128xf32> to vector<32x128xf32>
    %c768_117 = arith.constant 768 : index
    %c0_118 = arith.constant 0 : index
    %109 = vector.load %arg6[%c768_117, %c0_118] : memref<1152x128xf32, #tpu.memory_space<vmem>>, vector<128x128xf32>
    %cst_119 = arith.constant dense<0.000000e+00> : vector<32x128xf32>
    %110 = tpu.matmul %108, %109, %cst_119 {dimension_numbers = #tpu.dot_dimension_numbers<[1], [0], [0], [1], [0, 0, 1, 1], [], []>} : vector<32x128xf32>, vector<128x128xf32>, vector<32x128xf32> -> vector<32x128xf32>
    %111 = arith.addf %106, %110 : vector<32x128xf32>
    %c1_120 = arith.constant 1 : index
    %c2_121 = arith.constant 2 : index
    %c0_122 = arith.constant 0 : index
    %112 = vector.load %arg20[%c1_120, %c2_121, %c0_122] : memref<6x10x128xf32, #tpu.memory_space<vmem>>, vector<4x8x128xf32>
    %113 = vector.shape_cast %112 : vector<4x8x128xf32> to vector<32x128xf32>
    %c896_123 = arith.constant 896 : index
    %c0_124 = arith.constant 0 : index
    %114 = vector.load %arg6[%c896_123, %c0_124] : memref<1152x128xf32, #tpu.memory_space<vmem>>, vector<128x128xf32>
    %cst_125 = arith.constant dense<0.000000e+00> : vector<32x128xf32>
    %115 = tpu.matmul %113, %114, %cst_125 {dimension_numbers = #tpu.dot_dimension_numbers<[1], [0], [0], [1], [0, 0, 1, 1], [], []>} : vector<32x128xf32>, vector<128x128xf32>, vector<32x128xf32> -> vector<32x128xf32>
    %116 = arith.addf %111, %115 : vector<32x128xf32>
    %c2_126 = arith.constant 2 : index
    %c2_127 = arith.constant 2 : index
    %c0_128 = arith.constant 0 : index
    %117 = vector.load %arg20[%c2_126, %c2_127, %c0_128] : memref<6x10x128xf32, #tpu.memory_space<vmem>>, vector<4x8x128xf32>
    %118 = vector.shape_cast %117 : vector<4x8x128xf32> to vector<32x128xf32>
    %c1024_129 = arith.constant 1024 : index
    %c0_130 = arith.constant 0 : index
    %119 = vector.load %arg6[%c1024_129, %c0_130] : memref<1152x128xf32, #tpu.memory_space<vmem>>, vector<128x128xf32>
    %cst_131 = arith.constant dense<0.000000e+00> : vector<32x128xf32>
    %120 = tpu.matmul %118, %119, %cst_131 {dimension_numbers = #tpu.dot_dimension_numbers<[1], [0], [0], [1], [0, 0, 1, 1], [], []>} : vector<32x128xf32>, vector<128x128xf32>, vector<32x128xf32> -> vector<32x128xf32>
    %121 = arith.addf %116, %120 : vector<32x128xf32>
    %c0_132 = arith.constant 0 : index
    %c0_133 = arith.constant 0 : index
    %122 = vector.load %arg7[%c0_132, %c0_133] : memref<1x128xf32, #tpu.memory_space<vmem>>, vector<1x128xf32>
    %123 = vector.broadcast %122 : vector<1x128xf32> to vector<32x128xf32>
    %124 = arith.addf %121, %123 : vector<32x128xf32>
    %cst_134 = arith.constant 0.000000e+00 : f32
    %125 = vector.broadcast %cst_134 : f32 to vector<32x128xf32>
    %126 = arith.maximumf %124, %125 : vector<32x128xf32>
    %127 = vector.extract_strided_slice %126 {offsets = [0, 0], sizes = [8, 128], strides = [1, 1]} : vector<32x128xf32> to vector<8x128xf32>
    %128 = vector.extract_strided_slice %126 {offsets = [8, 0], sizes = [8, 128], strides = [1, 1]} : vector<32x128xf32> to vector<8x128xf32>
    %129 = arith.maximumf %127, %128 : vector<8x128xf32>
    %130 = vector.extract_strided_slice %126 {offsets = [16, 0], sizes = [8, 128], strides = [1, 1]} : vector<32x128xf32> to vector<8x128xf32>
    %131 = vector.extract_strided_slice %126 {offsets = [24, 0], sizes = [8, 128], strides = [1, 1]} : vector<32x128xf32> to vector<8x128xf32>
    %132 = arith.maximumf %130, %131 : vector<8x128xf32>
    %133 = tpu.concatenate %129, %132 in 1 : vector<8x128xf32>, vector<8x128xf32> -> vector<8x256xf32>
    %c0_135 = arith.constant 0 : index
    %c0_136 = arith.constant 0 : index
    %134 = vector.load %arg8[%c0_135, %c0_136] : memref<256x96xf32, #tpu.memory_space<vmem>>, vector<256x96xf32>
    %cst_137 = arith.constant dense<0.000000e+00> : vector<8x96xf32>
    %135 = tpu.matmul %133, %134, %cst_137 {dimension_numbers = #tpu.dot_dimension_numbers<[1], [0], [0], [1], [0, 0, 1, 1], [], []>} : vector<8x256xf32>, vector<256x96xf32>, vector<8x96xf32> -> vector<8x96xf32>
    %c0_138 = arith.constant 0 : index
    %c0_139 = arith.constant 0 : index
    %136 = vector.load %arg9[%c0_138, %c0_139] : memref<1x96xf32, #tpu.memory_space<vmem>>, vector<1x96xf32>
    %137 = vector.broadcast %136 : vector<1x96xf32> to vector<8x96xf32>
    %138 = arith.addf %135, %137 : vector<8x96xf32>
    %139 = vector.extract_strided_slice %138 {offsets = [7, 0], sizes = [1, 96], strides = [1, 1]} : vector<8x96xf32> to vector<1x96xf32>
    %140 = vector.extract_strided_slice %138 {offsets = [6, 0], sizes = [1, 96], strides = [1, 1]} : vector<8x96xf32> to vector<1x96xf32>
    %141 = vector.extract_strided_slice %138 {offsets = [5, 0], sizes = [1, 96], strides = [1, 1]} : vector<8x96xf32> to vector<1x96xf32>
    %142 = vector.extract_strided_slice %138 {offsets = [4, 0], sizes = [1, 96], strides = [1, 1]} : vector<8x96xf32> to vector<1x96xf32>
    %143 = vector.extract_strided_slice %138 {offsets = [3, 0], sizes = [1, 96], strides = [1, 1]} : vector<8x96xf32> to vector<1x96xf32>
    %144 = vector.extract_strided_slice %138 {offsets = [2, 0], sizes = [1, 96], strides = [1, 1]} : vector<8x96xf32> to vector<1x96xf32>
    %145 = vector.extract_strided_slice %138 {offsets = [1, 0], sizes = [1, 96], strides = [1, 1]} : vector<8x96xf32> to vector<1x96xf32>
    %146 = vector.extract_strided_slice %138 {offsets = [0, 0], sizes = [1, 96], strides = [1, 1]} : vector<8x96xf32> to vector<1x96xf32>
    %147 = tpu.concatenate %139, %140, %141, %142, %143, %144, %145, %146 in 0 : vector<1x96xf32>, vector<1x96xf32>, vector<1x96xf32>, vector<1x96xf32>, vector<1x96xf32>, vector<1x96xf32>, vector<1x96xf32>, vector<1x96xf32> -> vector<8x96xf32>
    %148 = vector.extract_strided_slice %138 {offsets = [0, 0], sizes = [8, 16], strides = [1, 1]} : vector<8x96xf32> to vector<8x16xf32>
    %149 = vector.extract_strided_slice %147 {offsets = [0, 16], sizes = [8, 16], strides = [1, 1]} : vector<8x96xf32> to vector<8x16xf32>
    %150 = vector.extract_strided_slice %138 {offsets = [0, 32], sizes = [8, 16], strides = [1, 1]} : vector<8x96xf32> to vector<8x16xf32>
    %151 = vector.extract_strided_slice %147 {offsets = [0, 48], sizes = [8, 16], strides = [1, 1]} : vector<8x96xf32> to vector<8x16xf32>
    %152 = vector.extract_strided_slice %138 {offsets = [0, 64], sizes = [8, 16], strides = [1, 1]} : vector<8x96xf32> to vector<8x16xf32>
    %153 = vector.extract_strided_slice %147 {offsets = [0, 80], sizes = [8, 16], strides = [1, 1]} : vector<8x96xf32> to vector<8x16xf32>
    %154 = tpu.concatenate %148, %149, %150, %151, %152, %153 in 1 : vector<8x16xf32>, vector<8x16xf32>, vector<8x16xf32>, vector<8x16xf32>, vector<8x16xf32>, vector<8x16xf32> -> vector<8x96xf32>
    %c0_140 = arith.constant 0 : index
    %c0_141 = arith.constant 0 : index
    %155 = vector.load %arg10[%c0_140, %c0_141] : memref<32x96xf32, #tpu.memory_space<vmem>>, vector<32x96xf32>
    %c0_142 = arith.constant 0 : index
    %c0_143 = arith.constant 0 : index
    %156 = vector.load %arg11[%c0_142, %c0_143] : memref<1x96xf32, #tpu.memory_space<vmem>>, vector<1x96xf32>
    %cst_144 = arith.constant 0.000000e+00 : f32
    %157 = vector.broadcast %cst_144 : f32 to vector<1x32xf32>
    %cst_145 = arith.constant dense<0.000000e+00> : vector<1x96xf32>
    %158 = tpu.matmul %157, %155, %cst_145 {dimension_numbers = #tpu.dot_dimension_numbers<[1], [0], [0], [1], [0, 0, 1, 1], [], []>} : vector<1x32xf32>, vector<32x96xf32>, vector<1x96xf32> -> vector<1x96xf32>
    %159 = arith.addf %158, %156 : vector<1x96xf32>
    %160 = vector.extract_strided_slice %154 {offsets = [0, 0], sizes = [1, 96], strides = [1, 1]} : vector<8x96xf32> to vector<1x96xf32>
    %161 = vector.extract_strided_slice %160 {offsets = [0, 0], sizes = [1, 32], strides = [1, 1]} : vector<1x96xf32> to vector<1x32xf32>
    %162 = vector.extract_strided_slice %159 {offsets = [0, 0], sizes = [1, 32], strides = [1, 1]} : vector<1x96xf32> to vector<1x32xf32>
    %163 = arith.addf %161, %162 : vector<1x32xf32>
    %164 = arith.negf %163 : vector<1x32xf32>
    %165 = math.exp %164 : vector<1x32xf32>
    %cst_146 = arith.constant 1.000000e+00 : f32
    %166 = vector.broadcast %cst_146 : f32 to vector<1x32xf32>
    %167 = arith.addf %166, %165 : vector<1x32xf32>
    %168 = arith.divf %166, %167 : vector<1x32xf32>
    %169 = vector.extract_strided_slice %160 {offsets = [0, 32], sizes = [1, 32], strides = [1, 1]} : vector<1x96xf32> to vector<1x32xf32>
    %170 = vector.extract_strided_slice %159 {offsets = [0, 32], sizes = [1, 32], strides = [1, 1]} : vector<1x96xf32> to vector<1x32xf32>
    %171 = arith.addf %169, %170 : vector<1x32xf32>
    %172 = arith.negf %171 : vector<1x32xf32>
    %173 = math.exp %172 : vector<1x32xf32>
    %cst_147 = arith.constant 1.000000e+00 : f32
    %174 = vector.broadcast %cst_147 : f32 to vector<1x32xf32>
    %175 = arith.addf %174, %173 : vector<1x32xf32>
    %176 = arith.divf %174, %175 : vector<1x32xf32>
    %177 = vector.extract_strided_slice %160 {offsets = [0, 64], sizes = [1, 32], strides = [1, 1]} : vector<1x96xf32> to vector<1x32xf32>
    %178 = vector.extract_strided_slice %159 {offsets = [0, 64], sizes = [1, 32], strides = [1, 1]} : vector<1x96xf32> to vector<1x32xf32>
    %179 = arith.mulf %168, %178 : vector<1x32xf32>
    %180 = arith.addf %177, %179 : vector<1x32xf32>
    %181 = math.tanh %180 : vector<1x32xf32>
    %cst_148 = arith.constant 1.000000e+00 : f32
    %182 = vector.broadcast %cst_148 : f32 to vector<1x32xf32>
    %183 = arith.subf %182, %176 : vector<1x32xf32>
    %184 = arith.mulf %183, %181 : vector<1x32xf32>
    %185 = arith.mulf %176, %157 : vector<1x32xf32>
    %186 = arith.addf %184, %185 : vector<1x32xf32>
    %cst_149 = arith.constant dense<0.000000e+00> : vector<1x96xf32>
    %187 = tpu.matmul %186, %155, %cst_149 {dimension_numbers = #tpu.dot_dimension_numbers<[1], [0], [0], [1], [0, 0, 1, 1], [], []>} : vector<1x32xf32>, vector<32x96xf32>, vector<1x96xf32> -> vector<1x96xf32>
    %188 = arith.addf %187, %156 : vector<1x96xf32>
    %189 = vector.extract_strided_slice %154 {offsets = [1, 0], sizes = [1, 96], strides = [1, 1]} : vector<8x96xf32> to vector<1x96xf32>
    %190 = vector.extract_strided_slice %189 {offsets = [0, 0], sizes = [1, 32], strides = [1, 1]} : vector<1x96xf32> to vector<1x32xf32>
    %191 = vector.extract_strided_slice %188 {offsets = [0, 0], sizes = [1, 32], strides = [1, 1]} : vector<1x96xf32> to vector<1x32xf32>
    %192 = arith.addf %190, %191 : vector<1x32xf32>
    %193 = arith.negf %192 : vector<1x32xf32>
    %194 = math.exp %193 : vector<1x32xf32>
    %cst_150 = arith.constant 1.000000e+00 : f32
    %195 = vector.broadcast %cst_150 : f32 to vector<1x32xf32>
    %196 = arith.addf %195, %194 : vector<1x32xf32>
    %197 = arith.divf %195, %196 : vector<1x32xf32>
    %198 = vector.extract_strided_slice %189 {offsets = [0, 32], sizes = [1, 32], strides = [1, 1]} : vector<1x96xf32> to vector<1x32xf32>
    %199 = vector.extract_strided_slice %188 {offsets = [0, 32], sizes = [1, 32], strides = [1, 1]} : vector<1x96xf32> to vector<1x32xf32>
    %200 = arith.addf %198, %199 : vector<1x32xf32>
    %201 = arith.negf %200 : vector<1x32xf32>
    %202 = math.exp %201 : vector<1x32xf32>
    %cst_151 = arith.constant 1.000000e+00 : f32
    %203 = vector.broadcast %cst_151 : f32 to vector<1x32xf32>
    %204 = arith.addf %203, %202 : vector<1x32xf32>
    %205 = arith.divf %203, %204 : vector<1x32xf32>
    %206 = vector.extract_strided_slice %189 {offsets = [0, 64], sizes = [1, 32], strides = [1, 1]} : vector<1x96xf32> to vector<1x32xf32>
    %207 = vector.extract_strided_slice %188 {offsets = [0, 64], sizes = [1, 32], strides = [1, 1]} : vector<1x96xf32> to vector<1x32xf32>
    %208 = arith.mulf %197, %207 : vector<1x32xf32>
    %209 = arith.addf %206, %208 : vector<1x32xf32>
    %210 = math.tanh %209 : vector<1x32xf32>
    %cst_152 = arith.constant 1.000000e+00 : f32
    %211 = vector.broadcast %cst_152 : f32 to vector<1x32xf32>
    %212 = arith.subf %211, %205 : vector<1x32xf32>
    %213 = arith.mulf %212, %210 : vector<1x32xf32>
    %214 = arith.mulf %205, %186 : vector<1x32xf32>
    %215 = arith.addf %213, %214 : vector<1x32xf32>
    %cst_153 = arith.constant dense<0.000000e+00> : vector<1x96xf32>
    %216 = tpu.matmul %215, %155, %cst_153 {dimension_numbers = #tpu.dot_dimension_numbers<[1], [0], [0], [1], [0, 0, 1, 1], [], []>} : vector<1x32xf32>, vector<32x96xf32>, vector<1x96xf32> -> vector<1x96xf32>
    %217 = arith.addf %216, %156 : vector<1x96xf32>
    %218 = vector.extract_strided_slice %154 {offsets = [2, 0], sizes = [1, 96], strides = [1, 1]} : vector<8x96xf32> to vector<1x96xf32>
    %219 = vector.extract_strided_slice %218 {offsets = [0, 0], sizes = [1, 32], strides = [1, 1]} : vector<1x96xf32> to vector<1x32xf32>
    %220 = vector.extract_strided_slice %217 {offsets = [0, 0], sizes = [1, 32], strides = [1, 1]} : vector<1x96xf32> to vector<1x32xf32>
    %221 = arith.addf %219, %220 : vector<1x32xf32>
    %222 = arith.negf %221 : vector<1x32xf32>
    %223 = math.exp %222 : vector<1x32xf32>
    %cst_154 = arith.constant 1.000000e+00 : f32
    %224 = vector.broadcast %cst_154 : f32 to vector<1x32xf32>
    %225 = arith.addf %224, %223 : vector<1x32xf32>
    %226 = arith.divf %224, %225 : vector<1x32xf32>
    %227 = vector.extract_strided_slice %218 {offsets = [0, 32], sizes = [1, 32], strides = [1, 1]} : vector<1x96xf32> to vector<1x32xf32>
    %228 = vector.extract_strided_slice %217 {offsets = [0, 32], sizes = [1, 32], strides = [1, 1]} : vector<1x96xf32> to vector<1x32xf32>
    %229 = arith.addf %227, %228 : vector<1x32xf32>
    %230 = arith.negf %229 : vector<1x32xf32>
    %231 = math.exp %230 : vector<1x32xf32>
    %cst_155 = arith.constant 1.000000e+00 : f32
    %232 = vector.broadcast %cst_155 : f32 to vector<1x32xf32>
    %233 = arith.addf %232, %231 : vector<1x32xf32>
    %234 = arith.divf %232, %233 : vector<1x32xf32>
    %235 = vector.extract_strided_slice %218 {offsets = [0, 64], sizes = [1, 32], strides = [1, 1]} : vector<1x96xf32> to vector<1x32xf32>
    %236 = vector.extract_strided_slice %217 {offsets = [0, 64], sizes = [1, 32], strides = [1, 1]} : vector<1x96xf32> to vector<1x32xf32>
    %237 = arith.mulf %226, %236 : vector<1x32xf32>
    %238 = arith.addf %235, %237 : vector<1x32xf32>
    %239 = math.tanh %238 : vector<1x32xf32>
    %cst_156 = arith.constant 1.000000e+00 : f32
    %240 = vector.broadcast %cst_156 : f32 to vector<1x32xf32>
    %241 = arith.subf %240, %234 : vector<1x32xf32>
    %242 = arith.mulf %241, %239 : vector<1x32xf32>
    %243 = arith.mulf %234, %215 : vector<1x32xf32>
    %244 = arith.addf %242, %243 : vector<1x32xf32>
    %cst_157 = arith.constant dense<0.000000e+00> : vector<1x96xf32>
    %245 = tpu.matmul %244, %155, %cst_157 {dimension_numbers = #tpu.dot_dimension_numbers<[1], [0], [0], [1], [0, 0, 1, 1], [], []>} : vector<1x32xf32>, vector<32x96xf32>, vector<1x96xf32> -> vector<1x96xf32>
    %246 = arith.addf %245, %156 : vector<1x96xf32>
    %247 = vector.extract_strided_slice %154 {offsets = [3, 0], sizes = [1, 96], strides = [1, 1]} : vector<8x96xf32> to vector<1x96xf32>
    %248 = vector.extract_strided_slice %247 {offsets = [0, 0], sizes = [1, 32], strides = [1, 1]} : vector<1x96xf32> to vector<1x32xf32>
    %249 = vector.extract_strided_slice %246 {offsets = [0, 0], sizes = [1, 32], strides = [1, 1]} : vector<1x96xf32> to vector<1x32xf32>
    %250 = arith.addf %248, %249 : vector<1x32xf32>
    %251 = arith.negf %250 : vector<1x32xf32>
    %252 = math.exp %251 : vector<1x32xf32>
    %cst_158 = arith.constant 1.000000e+00 : f32
    %253 = vector.broadcast %cst_158 : f32 to vector<1x32xf32>
    %254 = arith.addf %253, %252 : vector<1x32xf32>
    %255 = arith.divf %253, %254 : vector<1x32xf32>
    %256 = vector.extract_strided_slice %247 {offsets = [0, 32], sizes = [1, 32], strides = [1, 1]} : vector<1x96xf32> to vector<1x32xf32>
    %257 = vector.extract_strided_slice %246 {offsets = [0, 32], sizes = [1, 32], strides = [1, 1]} : vector<1x96xf32> to vector<1x32xf32>
    %258 = arith.addf %256, %257 : vector<1x32xf32>
    %259 = arith.negf %258 : vector<1x32xf32>
    %260 = math.exp %259 : vector<1x32xf32>
    %cst_159 = arith.constant 1.000000e+00 : f32
    %261 = vector.broadcast %cst_159 : f32 to vector<1x32xf32>
    %262 = arith.addf %261, %260 : vector<1x32xf32>
    %263 = arith.divf %261, %262 : vector<1x32xf32>
    %264 = vector.extract_strided_slice %247 {offsets = [0, 64], sizes = [1, 32], strides = [1, 1]} : vector<1x96xf32> to vector<1x32xf32>
    %265 = vector.extract_strided_slice %246 {offsets = [0, 64], sizes = [1, 32], strides = [1, 1]} : vector<1x96xf32> to vector<1x32xf32>
    %266 = arith.mulf %255, %265 : vector<1x32xf32>
    %267 = arith.addf %264, %266 : vector<1x32xf32>
    %268 = math.tanh %267 : vector<1x32xf32>
    %cst_160 = arith.constant 1.000000e+00 : f32
    %269 = vector.broadcast %cst_160 : f32 to vector<1x32xf32>
    %270 = arith.subf %269, %263 : vector<1x32xf32>
    %271 = arith.mulf %270, %268 : vector<1x32xf32>
    %272 = arith.mulf %263, %244 : vector<1x32xf32>
    %273 = arith.addf %271, %272 : vector<1x32xf32>
    %cst_161 = arith.constant dense<0.000000e+00> : vector<1x96xf32>
    %274 = tpu.matmul %273, %155, %cst_161 {dimension_numbers = #tpu.dot_dimension_numbers<[1], [0], [0], [1], [0, 0, 1, 1], [], []>} : vector<1x32xf32>, vector<32x96xf32>, vector<1x96xf32> -> vector<1x96xf32>
    %275 = arith.addf %274, %156 : vector<1x96xf32>
    %276 = vector.extract_strided_slice %154 {offsets = [4, 0], sizes = [1, 96], strides = [1, 1]} : vector<8x96xf32> to vector<1x96xf32>
    %277 = vector.extract_strided_slice %276 {offsets = [0, 0], sizes = [1, 32], strides = [1, 1]} : vector<1x96xf32> to vector<1x32xf32>
    %278 = vector.extract_strided_slice %275 {offsets = [0, 0], sizes = [1, 32], strides = [1, 1]} : vector<1x96xf32> to vector<1x32xf32>
    %279 = arith.addf %277, %278 : vector<1x32xf32>
    %280 = arith.negf %279 : vector<1x32xf32>
    %281 = math.exp %280 : vector<1x32xf32>
    %cst_162 = arith.constant 1.000000e+00 : f32
    %282 = vector.broadcast %cst_162 : f32 to vector<1x32xf32>
    %283 = arith.addf %282, %281 : vector<1x32xf32>
    %284 = arith.divf %282, %283 : vector<1x32xf32>
    %285 = vector.extract_strided_slice %276 {offsets = [0, 32], sizes = [1, 32], strides = [1, 1]} : vector<1x96xf32> to vector<1x32xf32>
    %286 = vector.extract_strided_slice %275 {offsets = [0, 32], sizes = [1, 32], strides = [1, 1]} : vector<1x96xf32> to vector<1x32xf32>
    %287 = arith.addf %285, %286 : vector<1x32xf32>
    %288 = arith.negf %287 : vector<1x32xf32>
    %289 = math.exp %288 : vector<1x32xf32>
    %cst_163 = arith.constant 1.000000e+00 : f32
    %290 = vector.broadcast %cst_163 : f32 to vector<1x32xf32>
    %291 = arith.addf %290, %289 : vector<1x32xf32>
    %292 = arith.divf %290, %291 : vector<1x32xf32>
    %293 = vector.extract_strided_slice %276 {offsets = [0, 64], sizes = [1, 32], strides = [1, 1]} : vector<1x96xf32> to vector<1x32xf32>
    %294 = vector.extract_strided_slice %275 {offsets = [0, 64], sizes = [1, 32], strides = [1, 1]} : vector<1x96xf32> to vector<1x32xf32>
    %295 = arith.mulf %284, %294 : vector<1x32xf32>
    %296 = arith.addf %293, %295 : vector<1x32xf32>
    %297 = math.tanh %296 : vector<1x32xf32>
    %cst_164 = arith.constant 1.000000e+00 : f32
    %298 = vector.broadcast %cst_164 : f32 to vector<1x32xf32>
    %299 = arith.subf %298, %292 : vector<1x32xf32>
    %300 = arith.mulf %299, %297 : vector<1x32xf32>
    %301 = arith.mulf %292, %273 : vector<1x32xf32>
    %302 = arith.addf %300, %301 : vector<1x32xf32>
    %cst_165 = arith.constant dense<0.000000e+00> : vector<1x96xf32>
    %303 = tpu.matmul %302, %155, %cst_165 {dimension_numbers = #tpu.dot_dimension_numbers<[1], [0], [0], [1], [0, 0, 1, 1], [], []>} : vector<1x32xf32>, vector<32x96xf32>, vector<1x96xf32> -> vector<1x96xf32>
    %304 = arith.addf %303, %156 : vector<1x96xf32>
    %305 = vector.extract_strided_slice %154 {offsets = [5, 0], sizes = [1, 96], strides = [1, 1]} : vector<8x96xf32> to vector<1x96xf32>
    %306 = vector.extract_strided_slice %305 {offsets = [0, 0], sizes = [1, 32], strides = [1, 1]} : vector<1x96xf32> to vector<1x32xf32>
    %307 = vector.extract_strided_slice %304 {offsets = [0, 0], sizes = [1, 32], strides = [1, 1]} : vector<1x96xf32> to vector<1x32xf32>
    %308 = arith.addf %306, %307 : vector<1x32xf32>
    %309 = arith.negf %308 : vector<1x32xf32>
    %310 = math.exp %309 : vector<1x32xf32>
    %cst_166 = arith.constant 1.000000e+00 : f32
    %311 = vector.broadcast %cst_166 : f32 to vector<1x32xf32>
    %312 = arith.addf %311, %310 : vector<1x32xf32>
    %313 = arith.divf %311, %312 : vector<1x32xf32>
    %314 = vector.extract_strided_slice %305 {offsets = [0, 32], sizes = [1, 32], strides = [1, 1]} : vector<1x96xf32> to vector<1x32xf32>
    %315 = vector.extract_strided_slice %304 {offsets = [0, 32], sizes = [1, 32], strides = [1, 1]} : vector<1x96xf32> to vector<1x32xf32>
    %316 = arith.addf %314, %315 : vector<1x32xf32>
    %317 = arith.negf %316 : vector<1x32xf32>
    %318 = math.exp %317 : vector<1x32xf32>
    %cst_167 = arith.constant 1.000000e+00 : f32
    %319 = vector.broadcast %cst_167 : f32 to vector<1x32xf32>
    %320 = arith.addf %319, %318 : vector<1x32xf32>
    %321 = arith.divf %319, %320 : vector<1x32xf32>
    %322 = vector.extract_strided_slice %305 {offsets = [0, 64], sizes = [1, 32], strides = [1, 1]} : vector<1x96xf32> to vector<1x32xf32>
    %323 = vector.extract_strided_slice %304 {offsets = [0, 64], sizes = [1, 32], strides = [1, 1]} : vector<1x96xf32> to vector<1x32xf32>
    %324 = arith.mulf %313, %323 : vector<1x32xf32>
    %325 = arith.addf %322, %324 : vector<1x32xf32>
    %326 = math.tanh %325 : vector<1x32xf32>
    %cst_168 = arith.constant 1.000000e+00 : f32
    %327 = vector.broadcast %cst_168 : f32 to vector<1x32xf32>
    %328 = arith.subf %327, %321 : vector<1x32xf32>
    %329 = arith.mulf %328, %326 : vector<1x32xf32>
    %330 = arith.mulf %321, %302 : vector<1x32xf32>
    %331 = arith.addf %329, %330 : vector<1x32xf32>
    %cst_169 = arith.constant dense<0.000000e+00> : vector<1x96xf32>
    %332 = tpu.matmul %331, %155, %cst_169 {dimension_numbers = #tpu.dot_dimension_numbers<[1], [0], [0], [1], [0, 0, 1, 1], [], []>} : vector<1x32xf32>, vector<32x96xf32>, vector<1x96xf32> -> vector<1x96xf32>
    %333 = arith.addf %332, %156 : vector<1x96xf32>
    %334 = vector.extract_strided_slice %154 {offsets = [6, 0], sizes = [1, 96], strides = [1, 1]} : vector<8x96xf32> to vector<1x96xf32>
    %335 = vector.extract_strided_slice %334 {offsets = [0, 0], sizes = [1, 32], strides = [1, 1]} : vector<1x96xf32> to vector<1x32xf32>
    %336 = vector.extract_strided_slice %333 {offsets = [0, 0], sizes = [1, 32], strides = [1, 1]} : vector<1x96xf32> to vector<1x32xf32>
    %337 = arith.addf %335, %336 : vector<1x32xf32>
    %338 = arith.negf %337 : vector<1x32xf32>
    %339 = math.exp %338 : vector<1x32xf32>
    %cst_170 = arith.constant 1.000000e+00 : f32
    %340 = vector.broadcast %cst_170 : f32 to vector<1x32xf32>
    %341 = arith.addf %340, %339 : vector<1x32xf32>
    %342 = arith.divf %340, %341 : vector<1x32xf32>
    %343 = vector.extract_strided_slice %334 {offsets = [0, 32], sizes = [1, 32], strides = [1, 1]} : vector<1x96xf32> to vector<1x32xf32>
    %344 = vector.extract_strided_slice %333 {offsets = [0, 32], sizes = [1, 32], strides = [1, 1]} : vector<1x96xf32> to vector<1x32xf32>
    %345 = arith.addf %343, %344 : vector<1x32xf32>
    %346 = arith.negf %345 : vector<1x32xf32>
    %347 = math.exp %346 : vector<1x32xf32>
    %cst_171 = arith.constant 1.000000e+00 : f32
    %348 = vector.broadcast %cst_171 : f32 to vector<1x32xf32>
    %349 = arith.addf %348, %347 : vector<1x32xf32>
    %350 = arith.divf %348, %349 : vector<1x32xf32>
    %351 = vector.extract_strided_slice %334 {offsets = [0, 64], sizes = [1, 32], strides = [1, 1]} : vector<1x96xf32> to vector<1x32xf32>
    %352 = vector.extract_strided_slice %333 {offsets = [0, 64], sizes = [1, 32], strides = [1, 1]} : vector<1x96xf32> to vector<1x32xf32>
    %353 = arith.mulf %342, %352 : vector<1x32xf32>
    %354 = arith.addf %351, %353 : vector<1x32xf32>
    %355 = math.tanh %354 : vector<1x32xf32>
    %cst_172 = arith.constant 1.000000e+00 : f32
    %356 = vector.broadcast %cst_172 : f32 to vector<1x32xf32>
    %357 = arith.subf %356, %350 : vector<1x32xf32>
    %358 = arith.mulf %357, %355 : vector<1x32xf32>
    %359 = arith.mulf %350, %331 : vector<1x32xf32>
    %360 = arith.addf %358, %359 : vector<1x32xf32>
    %cst_173 = arith.constant dense<0.000000e+00> : vector<1x96xf32>
    %361 = tpu.matmul %360, %155, %cst_173 {dimension_numbers = #tpu.dot_dimension_numbers<[1], [0], [0], [1], [0, 0, 1, 1], [], []>} : vector<1x32xf32>, vector<32x96xf32>, vector<1x96xf32> -> vector<1x96xf32>
    %362 = arith.addf %361, %156 : vector<1x96xf32>
    %363 = vector.extract_strided_slice %154 {offsets = [7, 0], sizes = [1, 96], strides = [1, 1]} : vector<8x96xf32> to vector<1x96xf32>
    %364 = vector.extract_strided_slice %363 {offsets = [0, 0], sizes = [1, 32], strides = [1, 1]} : vector<1x96xf32> to vector<1x32xf32>
    %365 = vector.extract_strided_slice %362 {offsets = [0, 0], sizes = [1, 32], strides = [1, 1]} : vector<1x96xf32> to vector<1x32xf32>
    %366 = arith.addf %364, %365 : vector<1x32xf32>
    %367 = arith.negf %366 : vector<1x32xf32>
    %368 = math.exp %367 : vector<1x32xf32>
    %cst_174 = arith.constant 1.000000e+00 : f32
    %369 = vector.broadcast %cst_174 : f32 to vector<1x32xf32>
    %370 = arith.addf %369, %368 : vector<1x32xf32>
    %371 = arith.divf %369, %370 : vector<1x32xf32>
    %372 = vector.extract_strided_slice %363 {offsets = [0, 32], sizes = [1, 32], strides = [1, 1]} : vector<1x96xf32> to vector<1x32xf32>
    %373 = vector.extract_strided_slice %362 {offsets = [0, 32], sizes = [1, 32], strides = [1, 1]} : vector<1x96xf32> to vector<1x32xf32>
    %374 = arith.addf %372, %373 : vector<1x32xf32>
    %375 = arith.negf %374 : vector<1x32xf32>
    %376 = math.exp %375 : vector<1x32xf32>
    %cst_175 = arith.constant 1.000000e+00 : f32
    %377 = vector.broadcast %cst_175 : f32 to vector<1x32xf32>
    %378 = arith.addf %377, %376 : vector<1x32xf32>
    %379 = arith.divf %377, %378 : vector<1x32xf32>
    %380 = vector.extract_strided_slice %363 {offsets = [0, 64], sizes = [1, 32], strides = [1, 1]} : vector<1x96xf32> to vector<1x32xf32>
    %381 = vector.extract_strided_slice %362 {offsets = [0, 64], sizes = [1, 32], strides = [1, 1]} : vector<1x96xf32> to vector<1x32xf32>
    %382 = arith.mulf %371, %381 : vector<1x32xf32>
    %383 = arith.addf %380, %382 : vector<1x32xf32>
    %384 = math.tanh %383 : vector<1x32xf32>
    %cst_176 = arith.constant 1.000000e+00 : f32
    %385 = vector.broadcast %cst_176 : f32 to vector<1x32xf32>
    %386 = arith.subf %385, %379 : vector<1x32xf32>
    %387 = arith.mulf %386, %384 : vector<1x32xf32>
    %388 = arith.mulf %379, %360 : vector<1x32xf32>
    %389 = arith.addf %387, %388 : vector<1x32xf32>
    %390 = tpu.concatenate %186, %215, %244, %273, %302, %331, %360, %389 in 0 : vector<1x32xf32>, vector<1x32xf32>, vector<1x32xf32>, vector<1x32xf32>, vector<1x32xf32>, vector<1x32xf32>, vector<1x32xf32>, vector<1x32xf32> -> vector<8x32xf32>
    %391 = vector.extract_strided_slice %390 {offsets = [0, 0], sizes = [8, 16], strides = [1, 1]} : vector<8x32xf32> to vector<8x16xf32>
    %392 = vector.extract_strided_slice %390 {offsets = [0, 16], sizes = [8, 16], strides = [1, 1]} : vector<8x32xf32> to vector<8x16xf32>
    %393 = vector.extract_strided_slice %392 {offsets = [7, 0], sizes = [1, 16], strides = [1, 1]} : vector<8x16xf32> to vector<1x16xf32>
    %394 = vector.extract_strided_slice %392 {offsets = [6, 0], sizes = [1, 16], strides = [1, 1]} : vector<8x16xf32> to vector<1x16xf32>
    %395 = vector.extract_strided_slice %392 {offsets = [5, 0], sizes = [1, 16], strides = [1, 1]} : vector<8x16xf32> to vector<1x16xf32>
    %396 = vector.extract_strided_slice %392 {offsets = [4, 0], sizes = [1, 16], strides = [1, 1]} : vector<8x16xf32> to vector<1x16xf32>
    %397 = vector.extract_strided_slice %392 {offsets = [3, 0], sizes = [1, 16], strides = [1, 1]} : vector<8x16xf32> to vector<1x16xf32>
    %398 = vector.extract_strided_slice %392 {offsets = [2, 0], sizes = [1, 16], strides = [1, 1]} : vector<8x16xf32> to vector<1x16xf32>
    %399 = vector.extract_strided_slice %392 {offsets = [1, 0], sizes = [1, 16], strides = [1, 1]} : vector<8x16xf32> to vector<1x16xf32>
    %400 = vector.extract_strided_slice %392 {offsets = [0, 0], sizes = [1, 16], strides = [1, 1]} : vector<8x16xf32> to vector<1x16xf32>
    %401 = tpu.concatenate %393, %394, %395, %396, %397, %398, %399, %400 in 0 : vector<1x16xf32>, vector<1x16xf32>, vector<1x16xf32>, vector<1x16xf32>, vector<1x16xf32>, vector<1x16xf32>, vector<1x16xf32>, vector<1x16xf32> -> vector<8x16xf32>
    %402 = tpu.concatenate %391, %401 in 1 : vector<8x16xf32>, vector<8x16xf32> -> vector<8x32xf32>
    %c0_177 = arith.constant 0 : index
    %c0_178 = arith.constant 0 : index
    %403 = vector.load %arg12[%c0_177, %c0_178] : memref<32x96xf32, #tpu.memory_space<vmem>>, vector<32x96xf32>
    %cst_179 = arith.constant dense<0.000000e+00> : vector<8x96xf32>
    %404 = tpu.matmul %402, %403, %cst_179 {dimension_numbers = #tpu.dot_dimension_numbers<[1], [0], [0], [1], [0, 0, 1, 1], [], []>} : vector<8x32xf32>, vector<32x96xf32>, vector<8x96xf32> -> vector<8x96xf32>
    %c0_180 = arith.constant 0 : index
    %c0_181 = arith.constant 0 : index
    %405 = vector.load %arg13[%c0_180, %c0_181] : memref<1x96xf32, #tpu.memory_space<vmem>>, vector<1x96xf32>
    %406 = vector.broadcast %405 : vector<1x96xf32> to vector<8x96xf32>
    %407 = arith.addf %404, %406 : vector<8x96xf32>
    %408 = vector.extract_strided_slice %407 {offsets = [7, 0], sizes = [1, 96], strides = [1, 1]} : vector<8x96xf32> to vector<1x96xf32>
    %409 = vector.extract_strided_slice %407 {offsets = [6, 0], sizes = [1, 96], strides = [1, 1]} : vector<8x96xf32> to vector<1x96xf32>
    %410 = vector.extract_strided_slice %407 {offsets = [5, 0], sizes = [1, 96], strides = [1, 1]} : vector<8x96xf32> to vector<1x96xf32>
    %411 = vector.extract_strided_slice %407 {offsets = [4, 0], sizes = [1, 96], strides = [1, 1]} : vector<8x96xf32> to vector<1x96xf32>
    %412 = vector.extract_strided_slice %407 {offsets = [3, 0], sizes = [1, 96], strides = [1, 1]} : vector<8x96xf32> to vector<1x96xf32>
    %413 = vector.extract_strided_slice %407 {offsets = [2, 0], sizes = [1, 96], strides = [1, 1]} : vector<8x96xf32> to vector<1x96xf32>
    %414 = vector.extract_strided_slice %407 {offsets = [1, 0], sizes = [1, 96], strides = [1, 1]} : vector<8x96xf32> to vector<1x96xf32>
    %415 = vector.extract_strided_slice %407 {offsets = [0, 0], sizes = [1, 96], strides = [1, 1]} : vector<8x96xf32> to vector<1x96xf32>
    %416 = tpu.concatenate %408, %409, %410, %411, %412, %413, %414, %415 in 0 : vector<1x96xf32>, vector<1x96xf32>, vector<1x96xf32>, vector<1x96xf32>, vector<1x96xf32>, vector<1x96xf32>, vector<1x96xf32>, vector<1x96xf32> -> vector<8x96xf32>
    %417 = vector.extract_strided_slice %407 {offsets = [0, 0], sizes = [8, 16], strides = [1, 1]} : vector<8x96xf32> to vector<8x16xf32>
    %418 = vector.extract_strided_slice %416 {offsets = [0, 16], sizes = [8, 16], strides = [1, 1]} : vector<8x96xf32> to vector<8x16xf32>
    %419 = vector.extract_strided_slice %407 {offsets = [0, 32], sizes = [8, 16], strides = [1, 1]} : vector<8x96xf32> to vector<8x16xf32>
    %420 = vector.extract_strided_slice %416 {offsets = [0, 48], sizes = [8, 16], strides = [1, 1]} : vector<8x96xf32> to vector<8x16xf32>
    %421 = vector.extract_strided_slice %407 {offsets = [0, 64], sizes = [8, 16], strides = [1, 1]} : vector<8x96xf32> to vector<8x16xf32>
    %422 = vector.extract_strided_slice %416 {offsets = [0, 80], sizes = [8, 16], strides = [1, 1]} : vector<8x96xf32> to vector<8x16xf32>
    %423 = tpu.concatenate %417, %418, %419, %420, %421, %422 in 1 : vector<8x16xf32>, vector<8x16xf32>, vector<8x16xf32>, vector<8x16xf32>, vector<8x16xf32>, vector<8x16xf32> -> vector<8x96xf32>
    %c0_182 = arith.constant 0 : index
    %c0_183 = arith.constant 0 : index
    %424 = vector.load %arg14[%c0_182, %c0_183] : memref<32x96xf32, #tpu.memory_space<vmem>>, vector<32x96xf32>
    %c0_184 = arith.constant 0 : index
    %c0_185 = arith.constant 0 : index
    %425 = vector.load %arg15[%c0_184, %c0_185] : memref<1x96xf32, #tpu.memory_space<vmem>>, vector<1x96xf32>
    %cst_186 = arith.constant 0.000000e+00 : f32
    %426 = vector.broadcast %cst_186 : f32 to vector<1x32xf32>
    %cst_187 = arith.constant dense<0.000000e+00> : vector<1x96xf32>
    %427 = tpu.matmul %426, %424, %cst_187 {dimension_numbers = #tpu.dot_dimension_numbers<[1], [0], [0], [1], [0, 0, 1, 1], [], []>} : vector<1x32xf32>, vector<32x96xf32>, vector<1x96xf32> -> vector<1x96xf32>
    %428 = arith.addf %427, %425 : vector<1x96xf32>
    %429 = vector.extract_strided_slice %423 {offsets = [0, 0], sizes = [1, 96], strides = [1, 1]} : vector<8x96xf32> to vector<1x96xf32>
    %430 = vector.extract_strided_slice %429 {offsets = [0, 0], sizes = [1, 32], strides = [1, 1]} : vector<1x96xf32> to vector<1x32xf32>
    %431 = vector.extract_strided_slice %428 {offsets = [0, 0], sizes = [1, 32], strides = [1, 1]} : vector<1x96xf32> to vector<1x32xf32>
    %432 = arith.addf %430, %431 : vector<1x32xf32>
    %433 = arith.negf %432 : vector<1x32xf32>
    %434 = math.exp %433 : vector<1x32xf32>
    %cst_188 = arith.constant 1.000000e+00 : f32
    %435 = vector.broadcast %cst_188 : f32 to vector<1x32xf32>
    %436 = arith.addf %435, %434 : vector<1x32xf32>
    %437 = arith.divf %435, %436 : vector<1x32xf32>
    %438 = vector.extract_strided_slice %429 {offsets = [0, 32], sizes = [1, 32], strides = [1, 1]} : vector<1x96xf32> to vector<1x32xf32>
    %439 = vector.extract_strided_slice %428 {offsets = [0, 32], sizes = [1, 32], strides = [1, 1]} : vector<1x96xf32> to vector<1x32xf32>
    %440 = arith.addf %438, %439 : vector<1x32xf32>
    %441 = arith.negf %440 : vector<1x32xf32>
    %442 = math.exp %441 : vector<1x32xf32>
    %cst_189 = arith.constant 1.000000e+00 : f32
    %443 = vector.broadcast %cst_189 : f32 to vector<1x32xf32>
    %444 = arith.addf %443, %442 : vector<1x32xf32>
    %445 = arith.divf %443, %444 : vector<1x32xf32>
    %446 = vector.extract_strided_slice %429 {offsets = [0, 64], sizes = [1, 32], strides = [1, 1]} : vector<1x96xf32> to vector<1x32xf32>
    %447 = vector.extract_strided_slice %428 {offsets = [0, 64], sizes = [1, 32], strides = [1, 1]} : vector<1x96xf32> to vector<1x32xf32>
    %448 = arith.mulf %437, %447 : vector<1x32xf32>
    %449 = arith.addf %446, %448 : vector<1x32xf32>
    %450 = math.tanh %449 : vector<1x32xf32>
    %cst_190 = arith.constant 1.000000e+00 : f32
    %451 = vector.broadcast %cst_190 : f32 to vector<1x32xf32>
    %452 = arith.subf %451, %445 : vector<1x32xf32>
    %453 = arith.mulf %452, %450 : vector<1x32xf32>
    %454 = arith.mulf %445, %426 : vector<1x32xf32>
    %455 = arith.addf %453, %454 : vector<1x32xf32>
    %cst_191 = arith.constant dense<0.000000e+00> : vector<1x96xf32>
    %456 = tpu.matmul %455, %424, %cst_191 {dimension_numbers = #tpu.dot_dimension_numbers<[1], [0], [0], [1], [0, 0, 1, 1], [], []>} : vector<1x32xf32>, vector<32x96xf32>, vector<1x96xf32> -> vector<1x96xf32>
    %457 = arith.addf %456, %425 : vector<1x96xf32>
    %458 = vector.extract_strided_slice %423 {offsets = [1, 0], sizes = [1, 96], strides = [1, 1]} : vector<8x96xf32> to vector<1x96xf32>
    %459 = vector.extract_strided_slice %458 {offsets = [0, 0], sizes = [1, 32], strides = [1, 1]} : vector<1x96xf32> to vector<1x32xf32>
    %460 = vector.extract_strided_slice %457 {offsets = [0, 0], sizes = [1, 32], strides = [1, 1]} : vector<1x96xf32> to vector<1x32xf32>
    %461 = arith.addf %459, %460 : vector<1x32xf32>
    %462 = arith.negf %461 : vector<1x32xf32>
    %463 = math.exp %462 : vector<1x32xf32>
    %cst_192 = arith.constant 1.000000e+00 : f32
    %464 = vector.broadcast %cst_192 : f32 to vector<1x32xf32>
    %465 = arith.addf %464, %463 : vector<1x32xf32>
    %466 = arith.divf %464, %465 : vector<1x32xf32>
    %467 = vector.extract_strided_slice %458 {offsets = [0, 32], sizes = [1, 32], strides = [1, 1]} : vector<1x96xf32> to vector<1x32xf32>
    %468 = vector.extract_strided_slice %457 {offsets = [0, 32], sizes = [1, 32], strides = [1, 1]} : vector<1x96xf32> to vector<1x32xf32>
    %469 = arith.addf %467, %468 : vector<1x32xf32>
    %470 = arith.negf %469 : vector<1x32xf32>
    %471 = math.exp %470 : vector<1x32xf32>
    %cst_193 = arith.constant 1.000000e+00 : f32
    %472 = vector.broadcast %cst_193 : f32 to vector<1x32xf32>
    %473 = arith.addf %472, %471 : vector<1x32xf32>
    %474 = arith.divf %472, %473 : vector<1x32xf32>
    %475 = vector.extract_strided_slice %458 {offsets = [0, 64], sizes = [1, 32], strides = [1, 1]} : vector<1x96xf32> to vector<1x32xf32>
    %476 = vector.extract_strided_slice %457 {offsets = [0, 64], sizes = [1, 32], strides = [1, 1]} : vector<1x96xf32> to vector<1x32xf32>
    %477 = arith.mulf %466, %476 : vector<1x32xf32>
    %478 = arith.addf %475, %477 : vector<1x32xf32>
    %479 = math.tanh %478 : vector<1x32xf32>
    %cst_194 = arith.constant 1.000000e+00 : f32
    %480 = vector.broadcast %cst_194 : f32 to vector<1x32xf32>
    %481 = arith.subf %480, %474 : vector<1x32xf32>
    %482 = arith.mulf %481, %479 : vector<1x32xf32>
    %483 = arith.mulf %474, %455 : vector<1x32xf32>
    %484 = arith.addf %482, %483 : vector<1x32xf32>
    %cst_195 = arith.constant dense<0.000000e+00> : vector<1x96xf32>
    %485 = tpu.matmul %484, %424, %cst_195 {dimension_numbers = #tpu.dot_dimension_numbers<[1], [0], [0], [1], [0, 0, 1, 1], [], []>} : vector<1x32xf32>, vector<32x96xf32>, vector<1x96xf32> -> vector<1x96xf32>
    %486 = arith.addf %485, %425 : vector<1x96xf32>
    %487 = vector.extract_strided_slice %423 {offsets = [2, 0], sizes = [1, 96], strides = [1, 1]} : vector<8x96xf32> to vector<1x96xf32>
    %488 = vector.extract_strided_slice %487 {offsets = [0, 0], sizes = [1, 32], strides = [1, 1]} : vector<1x96xf32> to vector<1x32xf32>
    %489 = vector.extract_strided_slice %486 {offsets = [0, 0], sizes = [1, 32], strides = [1, 1]} : vector<1x96xf32> to vector<1x32xf32>
    %490 = arith.addf %488, %489 : vector<1x32xf32>
    %491 = arith.negf %490 : vector<1x32xf32>
    %492 = math.exp %491 : vector<1x32xf32>
    %cst_196 = arith.constant 1.000000e+00 : f32
    %493 = vector.broadcast %cst_196 : f32 to vector<1x32xf32>
    %494 = arith.addf %493, %492 : vector<1x32xf32>
    %495 = arith.divf %493, %494 : vector<1x32xf32>
    %496 = vector.extract_strided_slice %487 {offsets = [0, 32], sizes = [1, 32], strides = [1, 1]} : vector<1x96xf32> to vector<1x32xf32>
    %497 = vector.extract_strided_slice %486 {offsets = [0, 32], sizes = [1, 32], strides = [1, 1]} : vector<1x96xf32> to vector<1x32xf32>
    %498 = arith.addf %496, %497 : vector<1x32xf32>
    %499 = arith.negf %498 : vector<1x32xf32>
    %500 = math.exp %499 : vector<1x32xf32>
    %cst_197 = arith.constant 1.000000e+00 : f32
    %501 = vector.broadcast %cst_197 : f32 to vector<1x32xf32>
    %502 = arith.addf %501, %500 : vector<1x32xf32>
    %503 = arith.divf %501, %502 : vector<1x32xf32>
    %504 = vector.extract_strided_slice %487 {offsets = [0, 64], sizes = [1, 32], strides = [1, 1]} : vector<1x96xf32> to vector<1x32xf32>
    %505 = vector.extract_strided_slice %486 {offsets = [0, 64], sizes = [1, 32], strides = [1, 1]} : vector<1x96xf32> to vector<1x32xf32>
    %506 = arith.mulf %495, %505 : vector<1x32xf32>
    %507 = arith.addf %504, %506 : vector<1x32xf32>
    %508 = math.tanh %507 : vector<1x32xf32>
    %cst_198 = arith.constant 1.000000e+00 : f32
    %509 = vector.broadcast %cst_198 : f32 to vector<1x32xf32>
    %510 = arith.subf %509, %503 : vector<1x32xf32>
    %511 = arith.mulf %510, %508 : vector<1x32xf32>
    %512 = arith.mulf %503, %484 : vector<1x32xf32>
    %513 = arith.addf %511, %512 : vector<1x32xf32>
    %cst_199 = arith.constant dense<0.000000e+00> : vector<1x96xf32>
    %514 = tpu.matmul %513, %424, %cst_199 {dimension_numbers = #tpu.dot_dimension_numbers<[1], [0], [0], [1], [0, 0, 1, 1], [], []>} : vector<1x32xf32>, vector<32x96xf32>, vector<1x96xf32> -> vector<1x96xf32>
    %515 = arith.addf %514, %425 : vector<1x96xf32>
    %516 = vector.extract_strided_slice %423 {offsets = [3, 0], sizes = [1, 96], strides = [1, 1]} : vector<8x96xf32> to vector<1x96xf32>
    %517 = vector.extract_strided_slice %516 {offsets = [0, 0], sizes = [1, 32], strides = [1, 1]} : vector<1x96xf32> to vector<1x32xf32>
    %518 = vector.extract_strided_slice %515 {offsets = [0, 0], sizes = [1, 32], strides = [1, 1]} : vector<1x96xf32> to vector<1x32xf32>
    %519 = arith.addf %517, %518 : vector<1x32xf32>
    %520 = arith.negf %519 : vector<1x32xf32>
    %521 = math.exp %520 : vector<1x32xf32>
    %cst_200 = arith.constant 1.000000e+00 : f32
    %522 = vector.broadcast %cst_200 : f32 to vector<1x32xf32>
    %523 = arith.addf %522, %521 : vector<1x32xf32>
    %524 = arith.divf %522, %523 : vector<1x32xf32>
    %525 = vector.extract_strided_slice %516 {offsets = [0, 32], sizes = [1, 32], strides = [1, 1]} : vector<1x96xf32> to vector<1x32xf32>
    %526 = vector.extract_strided_slice %515 {offsets = [0, 32], sizes = [1, 32], strides = [1, 1]} : vector<1x96xf32> to vector<1x32xf32>
    %527 = arith.addf %525, %526 : vector<1x32xf32>
    %528 = arith.negf %527 : vector<1x32xf32>
    %529 = math.exp %528 : vector<1x32xf32>
    %cst_201 = arith.constant 1.000000e+00 : f32
    %530 = vector.broadcast %cst_201 : f32 to vector<1x32xf32>
    %531 = arith.addf %530, %529 : vector<1x32xf32>
    %532 = arith.divf %530, %531 : vector<1x32xf32>
    %533 = vector.extract_strided_slice %516 {offsets = [0, 64], sizes = [1, 32], strides = [1, 1]} : vector<1x96xf32> to vector<1x32xf32>
    %534 = vector.extract_strided_slice %515 {offsets = [0, 64], sizes = [1, 32], strides = [1, 1]} : vector<1x96xf32> to vector<1x32xf32>
    %535 = arith.mulf %524, %534 : vector<1x32xf32>
    %536 = arith.addf %533, %535 : vector<1x32xf32>
    %537 = math.tanh %536 : vector<1x32xf32>
    %cst_202 = arith.constant 1.000000e+00 : f32
    %538 = vector.broadcast %cst_202 : f32 to vector<1x32xf32>
    %539 = arith.subf %538, %532 : vector<1x32xf32>
    %540 = arith.mulf %539, %537 : vector<1x32xf32>
    %541 = arith.mulf %532, %513 : vector<1x32xf32>
    %542 = arith.addf %540, %541 : vector<1x32xf32>
    %cst_203 = arith.constant dense<0.000000e+00> : vector<1x96xf32>
    %543 = tpu.matmul %542, %424, %cst_203 {dimension_numbers = #tpu.dot_dimension_numbers<[1], [0], [0], [1], [0, 0, 1, 1], [], []>} : vector<1x32xf32>, vector<32x96xf32>, vector<1x96xf32> -> vector<1x96xf32>
    %544 = arith.addf %543, %425 : vector<1x96xf32>
    %545 = vector.extract_strided_slice %423 {offsets = [4, 0], sizes = [1, 96], strides = [1, 1]} : vector<8x96xf32> to vector<1x96xf32>
    %546 = vector.extract_strided_slice %545 {offsets = [0, 0], sizes = [1, 32], strides = [1, 1]} : vector<1x96xf32> to vector<1x32xf32>
    %547 = vector.extract_strided_slice %544 {offsets = [0, 0], sizes = [1, 32], strides = [1, 1]} : vector<1x96xf32> to vector<1x32xf32>
    %548 = arith.addf %546, %547 : vector<1x32xf32>
    %549 = arith.negf %548 : vector<1x32xf32>
    %550 = math.exp %549 : vector<1x32xf32>
    %cst_204 = arith.constant 1.000000e+00 : f32
    %551 = vector.broadcast %cst_204 : f32 to vector<1x32xf32>
    %552 = arith.addf %551, %550 : vector<1x32xf32>
    %553 = arith.divf %551, %552 : vector<1x32xf32>
    %554 = vector.extract_strided_slice %545 {offsets = [0, 32], sizes = [1, 32], strides = [1, 1]} : vector<1x96xf32> to vector<1x32xf32>
    %555 = vector.extract_strided_slice %544 {offsets = [0, 32], sizes = [1, 32], strides = [1, 1]} : vector<1x96xf32> to vector<1x32xf32>
    %556 = arith.addf %554, %555 : vector<1x32xf32>
    %557 = arith.negf %556 : vector<1x32xf32>
    %558 = math.exp %557 : vector<1x32xf32>
    %cst_205 = arith.constant 1.000000e+00 : f32
    %559 = vector.broadcast %cst_205 : f32 to vector<1x32xf32>
    %560 = arith.addf %559, %558 : vector<1x32xf32>
    %561 = arith.divf %559, %560 : vector<1x32xf32>
    %562 = vector.extract_strided_slice %545 {offsets = [0, 64], sizes = [1, 32], strides = [1, 1]} : vector<1x96xf32> to vector<1x32xf32>
    %563 = vector.extract_strided_slice %544 {offsets = [0, 64], sizes = [1, 32], strides = [1, 1]} : vector<1x96xf32> to vector<1x32xf32>
    %564 = arith.mulf %553, %563 : vector<1x32xf32>
    %565 = arith.addf %562, %564 : vector<1x32xf32>
    %566 = math.tanh %565 : vector<1x32xf32>
    %cst_206 = arith.constant 1.000000e+00 : f32
    %567 = vector.broadcast %cst_206 : f32 to vector<1x32xf32>
    %568 = arith.subf %567, %561 : vector<1x32xf32>
    %569 = arith.mulf %568, %566 : vector<1x32xf32>
    %570 = arith.mulf %561, %542 : vector<1x32xf32>
    %571 = arith.addf %569, %570 : vector<1x32xf32>
    %cst_207 = arith.constant dense<0.000000e+00> : vector<1x96xf32>
    %572 = tpu.matmul %571, %424, %cst_207 {dimension_numbers = #tpu.dot_dimension_numbers<[1], [0], [0], [1], [0, 0, 1, 1], [], []>} : vector<1x32xf32>, vector<32x96xf32>, vector<1x96xf32> -> vector<1x96xf32>
    %573 = arith.addf %572, %425 : vector<1x96xf32>
    %574 = vector.extract_strided_slice %423 {offsets = [5, 0], sizes = [1, 96], strides = [1, 1]} : vector<8x96xf32> to vector<1x96xf32>
    %575 = vector.extract_strided_slice %574 {offsets = [0, 0], sizes = [1, 32], strides = [1, 1]} : vector<1x96xf32> to vector<1x32xf32>
    %576 = vector.extract_strided_slice %573 {offsets = [0, 0], sizes = [1, 32], strides = [1, 1]} : vector<1x96xf32> to vector<1x32xf32>
    %577 = arith.addf %575, %576 : vector<1x32xf32>
    %578 = arith.negf %577 : vector<1x32xf32>
    %579 = math.exp %578 : vector<1x32xf32>
    %cst_208 = arith.constant 1.000000e+00 : f32
    %580 = vector.broadcast %cst_208 : f32 to vector<1x32xf32>
    %581 = arith.addf %580, %579 : vector<1x32xf32>
    %582 = arith.divf %580, %581 : vector<1x32xf32>
    %583 = vector.extract_strided_slice %574 {offsets = [0, 32], sizes = [1, 32], strides = [1, 1]} : vector<1x96xf32> to vector<1x32xf32>
    %584 = vector.extract_strided_slice %573 {offsets = [0, 32], sizes = [1, 32], strides = [1, 1]} : vector<1x96xf32> to vector<1x32xf32>
    %585 = arith.addf %583, %584 : vector<1x32xf32>
    %586 = arith.negf %585 : vector<1x32xf32>
    %587 = math.exp %586 : vector<1x32xf32>
    %cst_209 = arith.constant 1.000000e+00 : f32
    %588 = vector.broadcast %cst_209 : f32 to vector<1x32xf32>
    %589 = arith.addf %588, %587 : vector<1x32xf32>
    %590 = arith.divf %588, %589 : vector<1x32xf32>
    %591 = vector.extract_strided_slice %574 {offsets = [0, 64], sizes = [1, 32], strides = [1, 1]} : vector<1x96xf32> to vector<1x32xf32>
    %592 = vector.extract_strided_slice %573 {offsets = [0, 64], sizes = [1, 32], strides = [1, 1]} : vector<1x96xf32> to vector<1x32xf32>
    %593 = arith.mulf %582, %592 : vector<1x32xf32>
    %594 = arith.addf %591, %593 : vector<1x32xf32>
    %595 = math.tanh %594 : vector<1x32xf32>
    %cst_210 = arith.constant 1.000000e+00 : f32
    %596 = vector.broadcast %cst_210 : f32 to vector<1x32xf32>
    %597 = arith.subf %596, %590 : vector<1x32xf32>
    %598 = arith.mulf %597, %595 : vector<1x32xf32>
    %599 = arith.mulf %590, %571 : vector<1x32xf32>
    %600 = arith.addf %598, %599 : vector<1x32xf32>
    %cst_211 = arith.constant dense<0.000000e+00> : vector<1x96xf32>
    %601 = tpu.matmul %600, %424, %cst_211 {dimension_numbers = #tpu.dot_dimension_numbers<[1], [0], [0], [1], [0, 0, 1, 1], [], []>} : vector<1x32xf32>, vector<32x96xf32>, vector<1x96xf32> -> vector<1x96xf32>
    %602 = arith.addf %601, %425 : vector<1x96xf32>
    %603 = vector.extract_strided_slice %423 {offsets = [6, 0], sizes = [1, 96], strides = [1, 1]} : vector<8x96xf32> to vector<1x96xf32>
    %604 = vector.extract_strided_slice %603 {offsets = [0, 0], sizes = [1, 32], strides = [1, 1]} : vector<1x96xf32> to vector<1x32xf32>
    %605 = vector.extract_strided_slice %602 {offsets = [0, 0], sizes = [1, 32], strides = [1, 1]} : vector<1x96xf32> to vector<1x32xf32>
    %606 = arith.addf %604, %605 : vector<1x32xf32>
    %607 = arith.negf %606 : vector<1x32xf32>
    %608 = math.exp %607 : vector<1x32xf32>
    %cst_212 = arith.constant 1.000000e+00 : f32
    %609 = vector.broadcast %cst_212 : f32 to vector<1x32xf32>
    %610 = arith.addf %609, %608 : vector<1x32xf32>
    %611 = arith.divf %609, %610 : vector<1x32xf32>
    %612 = vector.extract_strided_slice %603 {offsets = [0, 32], sizes = [1, 32], strides = [1, 1]} : vector<1x96xf32> to vector<1x32xf32>
    %613 = vector.extract_strided_slice %602 {offsets = [0, 32], sizes = [1, 32], strides = [1, 1]} : vector<1x96xf32> to vector<1x32xf32>
    %614 = arith.addf %612, %613 : vector<1x32xf32>
    %615 = arith.negf %614 : vector<1x32xf32>
    %616 = math.exp %615 : vector<1x32xf32>
    %cst_213 = arith.constant 1.000000e+00 : f32
    %617 = vector.broadcast %cst_213 : f32 to vector<1x32xf32>
    %618 = arith.addf %617, %616 : vector<1x32xf32>
    %619 = arith.divf %617, %618 : vector<1x32xf32>
    %620 = vector.extract_strided_slice %603 {offsets = [0, 64], sizes = [1, 32], strides = [1, 1]} : vector<1x96xf32> to vector<1x32xf32>
    %621 = vector.extract_strided_slice %602 {offsets = [0, 64], sizes = [1, 32], strides = [1, 1]} : vector<1x96xf32> to vector<1x32xf32>
    %622 = arith.mulf %611, %621 : vector<1x32xf32>
    %623 = arith.addf %620, %622 : vector<1x32xf32>
    %624 = math.tanh %623 : vector<1x32xf32>
    %cst_214 = arith.constant 1.000000e+00 : f32
    %625 = vector.broadcast %cst_214 : f32 to vector<1x32xf32>
    %626 = arith.subf %625, %619 : vector<1x32xf32>
    %627 = arith.mulf %626, %624 : vector<1x32xf32>
    %628 = arith.mulf %619, %600 : vector<1x32xf32>
    %629 = arith.addf %627, %628 : vector<1x32xf32>
    %cst_215 = arith.constant dense<0.000000e+00> : vector<1x96xf32>
    %630 = tpu.matmul %629, %424, %cst_215 {dimension_numbers = #tpu.dot_dimension_numbers<[1], [0], [0], [1], [0, 0, 1, 1], [], []>} : vector<1x32xf32>, vector<32x96xf32>, vector<1x96xf32> -> vector<1x96xf32>
    %631 = arith.addf %630, %425 : vector<1x96xf32>
    %632 = vector.extract_strided_slice %423 {offsets = [7, 0], sizes = [1, 96], strides = [1, 1]} : vector<8x96xf32> to vector<1x96xf32>
    %633 = vector.extract_strided_slice %632 {offsets = [0, 0], sizes = [1, 32], strides = [1, 1]} : vector<1x96xf32> to vector<1x32xf32>
    %634 = vector.extract_strided_slice %631 {offsets = [0, 0], sizes = [1, 32], strides = [1, 1]} : vector<1x96xf32> to vector<1x32xf32>
    %635 = arith.addf %633, %634 : vector<1x32xf32>
    %636 = arith.negf %635 : vector<1x32xf32>
    %637 = math.exp %636 : vector<1x32xf32>
    %cst_216 = arith.constant 1.000000e+00 : f32
    %638 = vector.broadcast %cst_216 : f32 to vector<1x32xf32>
    %639 = arith.addf %638, %637 : vector<1x32xf32>
    %640 = arith.divf %638, %639 : vector<1x32xf32>
    %641 = vector.extract_strided_slice %632 {offsets = [0, 32], sizes = [1, 32], strides = [1, 1]} : vector<1x96xf32> to vector<1x32xf32>
    %642 = vector.extract_strided_slice %631 {offsets = [0, 32], sizes = [1, 32], strides = [1, 1]} : vector<1x96xf32> to vector<1x32xf32>
    %643 = arith.addf %641, %642 : vector<1x32xf32>
    %644 = arith.negf %643 : vector<1x32xf32>
    %645 = math.exp %644 : vector<1x32xf32>
    %cst_217 = arith.constant 1.000000e+00 : f32
    %646 = vector.broadcast %cst_217 : f32 to vector<1x32xf32>
    %647 = arith.addf %646, %645 : vector<1x32xf32>
    %648 = arith.divf %646, %647 : vector<1x32xf32>
    %649 = vector.extract_strided_slice %632 {offsets = [0, 64], sizes = [1, 32], strides = [1, 1]} : vector<1x96xf32> to vector<1x32xf32>
    %650 = vector.extract_strided_slice %631 {offsets = [0, 64], sizes = [1, 32], strides = [1, 1]} : vector<1x96xf32> to vector<1x32xf32>
    %651 = arith.mulf %640, %650 : vector<1x32xf32>
    %652 = arith.addf %649, %651 : vector<1x32xf32>
    %653 = math.tanh %652 : vector<1x32xf32>
    %cst_218 = arith.constant 1.000000e+00 : f32
    %654 = vector.broadcast %cst_218 : f32 to vector<1x32xf32>
    %655 = arith.subf %654, %648 : vector<1x32xf32>
    %656 = arith.mulf %655, %653 : vector<1x32xf32>
    %657 = arith.mulf %648, %629 : vector<1x32xf32>
    %658 = arith.addf %656, %657 : vector<1x32xf32>
    %659 = tpu.concatenate %455, %484, %513, %542, %571, %600, %629, %658 in 0 : vector<1x32xf32>, vector<1x32xf32>, vector<1x32xf32>, vector<1x32xf32>, vector<1x32xf32>, vector<1x32xf32>, vector<1x32xf32>, vector<1x32xf32> -> vector<8x32xf32>
    %660 = vector.extract_strided_slice %659 {offsets = [0, 0], sizes = [8, 16], strides = [1, 1]} : vector<8x32xf32> to vector<8x16xf32>
    %661 = vector.extract_strided_slice %659 {offsets = [0, 16], sizes = [8, 16], strides = [1, 1]} : vector<8x32xf32> to vector<8x16xf32>
    %662 = vector.extract_strided_slice %661 {offsets = [7, 0], sizes = [1, 16], strides = [1, 1]} : vector<8x16xf32> to vector<1x16xf32>
    %663 = vector.extract_strided_slice %661 {offsets = [6, 0], sizes = [1, 16], strides = [1, 1]} : vector<8x16xf32> to vector<1x16xf32>
    %664 = vector.extract_strided_slice %661 {offsets = [5, 0], sizes = [1, 16], strides = [1, 1]} : vector<8x16xf32> to vector<1x16xf32>
    %665 = vector.extract_strided_slice %661 {offsets = [4, 0], sizes = [1, 16], strides = [1, 1]} : vector<8x16xf32> to vector<1x16xf32>
    %666 = vector.extract_strided_slice %661 {offsets = [3, 0], sizes = [1, 16], strides = [1, 1]} : vector<8x16xf32> to vector<1x16xf32>
    %667 = vector.extract_strided_slice %661 {offsets = [2, 0], sizes = [1, 16], strides = [1, 1]} : vector<8x16xf32> to vector<1x16xf32>
    %668 = vector.extract_strided_slice %661 {offsets = [1, 0], sizes = [1, 16], strides = [1, 1]} : vector<8x16xf32> to vector<1x16xf32>
    %669 = vector.extract_strided_slice %661 {offsets = [0, 0], sizes = [1, 16], strides = [1, 1]} : vector<8x16xf32> to vector<1x16xf32>
    %670 = tpu.concatenate %662, %663, %664, %665, %666, %667, %668, %669 in 0 : vector<1x16xf32>, vector<1x16xf32>, vector<1x16xf32>, vector<1x16xf32>, vector<1x16xf32>, vector<1x16xf32>, vector<1x16xf32>, vector<1x16xf32> -> vector<8x16xf32>
    %671 = tpu.concatenate %660, %670 in 1 : vector<8x16xf32>, vector<8x16xf32> -> vector<8x32xf32>
    %c0_219 = arith.constant 0 : index
    %c0_220 = arith.constant 0 : index
    %672 = vector.load %arg16[%c0_219, %c0_220] : memref<32x3xf32, #tpu.memory_space<vmem>>, vector<32x3xf32>
    %cst_221 = arith.constant dense<0.000000e+00> : vector<8x3xf32>
    %673 = tpu.matmul %671, %672, %cst_221 {dimension_numbers = #tpu.dot_dimension_numbers<[1], [0], [0], [1], [0, 0, 1, 1], [], []>} : vector<8x32xf32>, vector<32x3xf32>, vector<8x3xf32> -> vector<8x3xf32>
    %c0_222 = arith.constant 0 : index
    %c0_223 = arith.constant 0 : index
    %674 = vector.load %arg17[%c0_222, %c0_223] : memref<1x3xf32, #tpu.memory_space<vmem>>, vector<1x3xf32>
    %675 = vector.broadcast %674 : vector<1x3xf32> to vector<8x3xf32>
    %676 = arith.addf %673, %675 : vector<8x3xf32>
    %677 = arith.negf %676 : vector<8x3xf32>
    %678 = math.exp %677 : vector<8x3xf32>
    %cst_224 = arith.constant 1.000000e+00 : f32
    %679 = vector.broadcast %cst_224 : f32 to vector<8x3xf32>
    %680 = arith.addf %679, %678 : vector<8x3xf32>
    %681 = arith.divf %679, %680 : vector<8x3xf32>
    %c0_225 = arith.constant 0 : index
    %c0_226 = arith.constant 0 : index
    %c0_227 = arith.constant 0 : index
    %682 = vector.load %arg18[%c0_225, %c0_226, %c0_227] : memref<1x8x3xf32, #tpu.memory_space<vmem>>, vector<1x8x3xf32>
    %683 = vector.shape_cast %682 : vector<1x8x3xf32> to vector<8x3xf32>
    %684 = vector.shape_cast %681 : vector<8x3xf32> to vector<1x8x3xf32>
    tpu.vector_store %arg18[%c0_225, %c0_226, %c0_227], %684 {strides = array<i32>} : memref<1x8x3xf32, #tpu.memory_space<vmem>>, vector<1x8x3xf32>,
    return
  }
  func.func @transform_0(%arg0: i32) -> (i32, i32, i32) {
    %c0_i32 = arith.constant 0 : i32
    %c0_i32_0 = arith.constant 0 : i32
    %c0_i32_1 = arith.constant 0 : i32
    return %arg0, %c0_i32, %c0_i32_0 : i32, i32, i32
  }
  func.func @transform_1(%arg0: i32) -> (i32, i32) {
    %c0_i32 = arith.constant 0 : i32
    %c0_i32_0 = arith.constant 0 : i32
    %c0_i32_1 = arith.constant 0 : i32
    return %c0_i32, %c0_i32_0 : i32, i32
  }
  func.func @transform_2(%arg0: i32) -> (i32, i32) {
    %c0_i32 = arith.constant 0 : i32
    %c0_i32_0 = arith.constant 0 : i32
    %c0_i32_1 = arith.constant 0 : i32
    return %c0_i32, %c0_i32_0 : i32, i32
  }
  func.func @transform_3(%arg0: i32) -> (i32, i32) {
    %c0_i32 = arith.constant 0 : i32
    %c0_i32_0 = arith.constant 0 : i32
    %c0_i32_1 = arith.constant 0 : i32
    return %c0_i32, %c0_i32_0 : i32, i32
  }
  func.func @transform_4(%arg0: i32) -> (i32, i32) {
    %c0_i32 = arith.constant 0 : i32
    %c0_i32_0 = arith.constant 0 : i32
    %c0_i32_1 = arith.constant 0 : i32
    return %c0_i32, %c0_i32_0 : i32, i32
  }
  func.func @transform_5(%arg0: i32) -> (i32, i32) {
    %c0_i32 = arith.constant 0 : i32
    %c0_i32_0 = arith.constant 0 : i32
    %c0_i32_1 = arith.constant 0 : i32
    return %c0_i32, %c0_i32_0 : i32, i32
  }
  func.func @transform_6(%arg0: i32) -> (i32, i32) {
    %c0_i32 = arith.constant 0 : i32
    %c0_i32_0 = arith.constant 0 : i32
    %c0_i32_1 = arith.constant 0 : i32
    return %c0_i32, %c0_i32_0 : i32, i32
  }
  func.func @transform_7(%arg0: i32) -> (i32, i32) {
    %c0_i32 = arith.constant 0 : i32
    %c0_i32_0 = arith.constant 0 : i32
    %c0_i32_1 = arith.constant 0 : i32
    return %c0_i32, %c0_i32_0 : i32, i32
  }
  func.func @transform_8(%arg0: i32) -> (i32, i32) {
    %c0_i32 = arith.constant 0 : i32
    %c0_i32_0 = arith.constant 0 : i32
    %c0_i32_1 = arith.constant 0 : i32
    return %c0_i32, %c0_i32_0 : i32, i32
  }
  func.func @transform_9(%arg0: i32) -> (i32, i32) {
    %c0_i32 = arith.constant 0 : i32
    %c0_i32_0 = arith.constant 0 : i32
    %c0_i32_1 = arith.constant 0 : i32
    return %c0_i32, %c0_i32_0 : i32, i32
  }
  func.func @transform_10(%arg0: i32) -> (i32, i32) {
    %c0_i32 = arith.constant 0 : i32
    %c0_i32_0 = arith.constant 0 : i32
    %c0_i32_1 = arith.constant 0 : i32
    return %c0_i32, %c0_i32_0 : i32, i32
  }
  func.func @transform_11(%arg0: i32) -> (i32, i32) {
    %c0_i32 = arith.constant 0 : i32
    %c0_i32_0 = arith.constant 0 : i32
    %c0_i32_1 = arith.constant 0 : i32
    return %c0_i32, %c0_i32_0 : i32, i32
  }
  func.func @transform_12(%arg0: i32) -> (i32, i32) {
    %c0_i32 = arith.constant 0 : i32
    %c0_i32_0 = arith.constant 0 : i32
    %c0_i32_1 = arith.constant 0 : i32
    return %c0_i32, %c0_i32_0 : i32, i32
  }
  func.func @transform_13(%arg0: i32) -> (i32, i32) {
    %c0_i32 = arith.constant 0 : i32
    %c0_i32_0 = arith.constant 0 : i32
    %c0_i32_1 = arith.constant 0 : i32
    return %c0_i32, %c0_i32_0 : i32, i32
  }
  func.func @transform_14(%arg0: i32) -> (i32, i32) {
    %c0_i32 = arith.constant 0 : i32
    %c0_i32_0 = arith.constant 0 : i32
    %c0_i32_1 = arith.constant 0 : i32
    return %c0_i32, %c0_i32_0 : i32, i32
  }
  func.func @transform_15(%arg0: i32) -> (i32, i32) {
    %c0_i32 = arith.constant 0 : i32
    %c0_i32_0 = arith.constant 0 : i32
    %c0_i32_1 = arith.constant 0 : i32
    return %c0_i32, %c0_i32_0 : i32, i32
  }
  func.func @transform_16(%arg0: i32) -> (i32, i32) {
    %c0_i32 = arith.constant 0 : i32
    %c0_i32_0 = arith.constant 0 : i32
    %c0_i32_1 = arith.constant 0 : i32
    return %c0_i32, %c0_i32_0 : i32, i32
  }
  func.func @transform_17(%arg0: i32) -> (i32, i32, i32) {
    %c0_i32 = arith.constant 0 : i32
    %c0_i32_0 = arith.constant 0 : i32
    %c0_i32_1 = arith.constant 0 : i32
    return %arg0, %c0_i32, %c0_i32_0 : i32, i32, i32
  }
}

</mosaic_0001>

<bundles_post_ra>
// kernel: crnn_forward.1
= control target key start
LH: loop header
LB: loop body
LE: loop exit
PB: predicated region body
PF: predicated region fallthrough
CT: control target
= control target key end

     0   :  { %s5448_s0 = inlined_call_operand.vmem [shape: f32[2,320,9], index: 0, kind: input, shape index: {}]   ;;  %s5449_s1 = inlined_call_operand.vmem [shape: f32[9,128], index: 1, kind: input, shape index: {}]   ;;  %s5450_s2 = inlined_call_operand.vmem [shape: f32[1,128], index: 2, kind: input, shape index: {}]   ;;  %s5451_s3 = inlined_call_operand.vmem [shape: f32[1152,128], index: 3, kind: input, shape index: {}]   ;;  %s5452_s4 = inlined_call_operand.vmem [shape: f32[1,128], index: 4, kind: input, shape index: {}]   ;;  %s5453_s5 = inlined_call_operand.hbm [shape: f32[1152,128], index: 5, kind: input, shape index: {}]   ;;  %s5454_s6 = inlined_call_operand.vmem [shape: f32[1,128], index: 6, kind: input, shape index: {}]   ;;  %s5455_s7 = inlined_call_operand.vmem [shape: f32[256,96], index: 7, kind: input, shape index: {}]   ;;  %s5456_s8 = inlined_call_operand.vmem [shape: f32[1,96], index: 8, kind: input, shape index: {}]   ;;  %s5457_s9 = inlined_call_operand.vmem [shape: f32[32,96], index: 9, kind: input, shape index: {}]   ;;  %s5458_s10 = inlined_call_operand.vmem [shape: f32[1,96], index: 10, kind: input, shape index: {}]   ;;  %s5459_s11 = inlined_call_operand.vmem [shape: f32[32,96], index: 11, kind: input, shape index: {}]   ;;  %s5460_s12 = inlined_call_operand.vmem [shape: f32[1,96], index: 12, kind: input, shape index: {}]   ;;  %s5461_s13 = inlined_call_operand.vmem [shape: f32[32,96], index: 13, kind: input, shape index: {}]   ;;  %s5462_s14 = inlined_call_operand.vmem [shape: f32[1,96], index: 14, kind: input, shape index: {}]   ;;  %s5463_s15 = inlined_call_operand.vmem [shape: f32[32,3], index: 15, kind: input, shape index: {}]   ;;  %s5464_s16 = inlined_call_operand.vmem [shape: f32[1,3], index: 16, kind: input, shape index: {}]   ;;  %s5465_s17 = inlined_call_operand.vmem [shape: f32[2,8,3], index: 17, kind: output, shape index: {}]  }
   0x1   :  { %5467 = sst [smem:[#allocation7_spill]] %s5448_s0 }
   0x2   :  { %5468 = sst [smem:[#allocation8_spill]] %s5449_s1 }
   0x3   :  { %22 = vsyncpa [#allocation5], 0  ;;  %s4044_s24 = smov 0  }
   0x4 LB: > { %s444_s27 = sshll.u32 %s5453_s5, 4  ;;  %s3624_s28 = sadd.s32 4294967295, %s3946_s24   ;;  %s3946_s24 = sphi %s4044_s24, %s28_s24   ;;  %s445_s27 = int_to_ptr.hbm [resolvable:$true] %s444_s27 }
   0x5   : > { %p3626_p0 = scmp.ge.s32.totalorder %s3946_s24, 1  ;;  %p421_p1 = scmp.lt.s32.totalorder %s3946_s24, 3 }
   0x6   : > { %p3718_p2 = scmp.eq.s32.totalorder %s3624_s28, 0  ;;  %s3948_s29 = smov [#allocation4]  }
   0x7   : > { %p422_p3 = pnand %p3626_p0, %p421_p1  ;;  %s446_s0 = sshll.u32 %s3948_s29, 4  ;;  %s447_s0 = int_to_ptr.vmem [resolvable:$true] %s446_s0 }
   0x8   : > { %s3949_s30 = smov 128   ;;  %s3950_s18 = smov 8  }
   0x9   : > { %p3714_p4 = pneg %p422_p3  ;;  %503 = sbr.rel (%p422_p3) target bundleno = 10255 (0x280f), region = 88 }
   0xb   : > { %p3715_p5 = pnand %p3718_p2, %p3714_p4 }
   0xd   : > { %3717 = dma.hbm_to_vmem [thread:$0]  (!%p3715_p5), %s445_s27, 18432, %s447_s0, [#allocation5], %s3949_s30, %s3949_s30, %s3950_s18  }
   0xe   : > { %3941 = dma.done.wait (%p3718_p2), [#allocation5], 18432  }
   0xf   : > { %3943 = vsyncadd (%p3718_p2), [#allocation5], 4294948864  ;;  %p555_p6 = scmp.lt.s32.totalorder %s3624_s28, 1  ;;  %vm731_vm0 = vcmask 1040384   ;;  %s5469_s21 = sld [smem:[#allocation7_spill]]  ;;  %vm610_vm1 = vcmask 72704  }
  0x10   : > { %s5470_s26 = sld [smem:[#allocation8_spill]]  ;;  %v1029_v15 = vld [vmem:[%s5451_s3 + $0x78] sm:$0xff]  ;;  %v1028_v16 = vld [vmem:[%s5451_s3 + $0x70] sm:$0xff]  ;;  %v1027_v17 = vld [vmem:[%s5451_s3 + $0x68] sm:$0xff]  ;;  %v3951_v48 = vmov 0.0   ;;  %s3952_s1 = smov 64  }
  0x11   : > { %s5474_s28 = smov (!%p555_p6, %s3624_s28), 1  ;;  %1095 = vmatpush.msra.mxu2 %v1029_v15  ;;  %v1026_v19 = vld [vmem:[%s5451_s3 + $0x60] sm:$0xff]  ;;  %v1053_v20 = vld [vmem:[%s5451_s3 + $0xf8] sm:$0xff]  ;;  %v1052_v22 = vld [vmem:[%s5451_s3 + $0xf0] sm:$0xff]  ;;  %944 = vst [vmem:[#allocation2] sm:$0xff] %v3951_v48  ;;  %vm2276_vm3 = vcmask 1041408  }
  0x12   : > { %s3709_s19 = smul.u32 320, %s5474_s28  ;;  %v1025_v21 = vld [vmem:[%s5451_s3 + $0x58] sm:$0xff]  ;;  %1054 = vmatpush.msra.mxu1 %v1053_v20  ;;  %v1024_v23 = vld [vmem:[%s5451_s3 + $0x50] sm:$0xff]  ;;  %v1051_v24 = vld [vmem:[%s5451_s3 + $0xe8] sm:$0xff]  ;;  %945 = vst [vmem:[#allocation2 + $0x8] sm:$0x3] %v3951_v48 }
  0x13   : > { %1096 = vmatpush.msra.mxu2 %v1028_v16  ;;  %v1023_v25 = vld [vmem:[%s5451_s3 + $0x48] sm:$0xff]  ;;  %v1050_v27 = vld [vmem:[%s5451_s3 + $0xe0] sm:$0xff]  ;;  %v1049_v29 = vld [vmem:[%s5451_s3 + $0xd8] sm:$0xff]  ;;  %947 = vst [vmem:[#allocation2 + $0x90] sm:$0xff] %v3951_v48  ;;  %vm2278_vm4 = vcmask 1042432   ;;  %vm2280_vm5 = vcmask 1043456  }
  0x14   : > { %1055 = vmatpush.msra.mxu1 %v1052_v22  ;;  %v1022_v28 = vld [vmem:[%s5451_s3 + $0x40] sm:$0xff]  ;;  %v1021_v30 = vld [vmem:[%s5451_s3 + $0x38] sm:$0xff]  ;;  %v1048_v31 = vld [vmem:[%s5451_s3 + $0xd0] sm:$0xff]  ;;  %948 = vst [vmem:[#allocation2 + $0x98] sm:$0x3] %v3951_v48  ;;  %vm2282_vm6 = vcmask 1044480  }
  0x15   : > { %s4061_s22 = scalar_lea.vmem %s5469_s21, %s3709_s19  ;;  %1097 = vmatpush.msra.mxu2 %v1027_v17  ;;  %v1020_v32 = vld [vmem:[%s5451_s3 + $0x30] sm:$0xff]  ;;  %v1047_v33 = vld [vmem:[%s5451_s3 + $0xc8] sm:$0xff]  ;;  %v1046_v36 = vld [vmem:[%s5451_s3 + $0xc0] sm:$0xff]  ;;  %1672 = vst [vmem:[#allocation3] sm:$0xff] %v3951_v48  ;;  %vm2284_vm7 = vcmask 1045504   ;;  %vm2286_vm8 = vcmask 1046528  }
  0x16   : > { %v605_v0 = vld [vmem:[%s5470_s26 + $0x8] sm:$0x1]  ;;  %v604_v1 = vld [vmem:[%s5470_s26] sm:$0xff]  ;;  %v566_v4 = vld [vmem:[%s4061_s22 + $0x10] sm:$0xff]  ;;  %1056 = vmatpush.msra.mxu1 %v1051_v24  ;;  %1673 = vst [vmem:[#allocation3 + $0x8] sm:$0x3] %v3951_v48 }
  0x17   : > { %3633 = vmatpush.msk.msra.mxu0 %vm731_vm0, %v605_v0  ;;  %v564_v2 = vld [vmem:[%s4061_s22] sm:$0xff]  ;;  %v565_v3 = vld [vmem:[%s4061_s22 + $0x8] sm:$0xff]  ;;  %v567_v5 = vld [vmem:[%s4061_s22 + $0x18] sm:$0xff]  ;;  %1098 = vmatpush.msra.mxu2 %v1026_v19  ;;  %1675 = vst [vmem:[#allocation3 + $0x50] sm:$0xff] %v3951_v48  ;;  %vm2288_vm9 = vcmask 130048   ;;  %vm2290_vm10 = vcmask 261120  }
  0x18   : > { %v568_v6 = vld [vmem:[%s4061_s22 + $0x20] sm:$0xff]  ;;  %v569_v7 = vld [vmem:[%s4061_s22 + $0x28] sm:$0xff]  ;;  %v570_v8 = vld [vmem:[%s4061_s22 + $0x30] sm:$0xff]  ;;  %1057 = vmatpush.msra.mxu1 %v1050_v27  ;;  %1676 = vst [vmem:[#allocation3 + $0x58] sm:$0x3] %v3951_v48  ;;  %vm2292_vm11 = vcmask 392192  }
  0x19   : > { %750 = vmatpush.msra.mxu0 %v604_v1  ;;  %v571_v9 = vld [vmem:[%s4061_s22 + $0x38] sm:$0xff]  ;;  %v572_v10 = vld [vmem:[%s4061_s22 + $0x40] sm:$0xff]  ;;  %v573_v11 = vld [vmem:[%s4061_s22 + $0x48] sm:$0xff]  ;;  %1099 = vmatpush.msra.mxu2 %v1025_v21  ;;  %vm2294_vm12 = vcmask 523264   ;;  %vm2296_vm13 = vcmask 654336   ;;  %s3953_s23 = smov 96  }
  0x1a   : > { %3634 = vmatmul.msk.f32.vlgmr.msra.gmra.mxu0 %vm610_vm1, %v564_v2  ;;  %v574_v12 = vld [vmem:[%s4061_s22 + $0x50] sm:$0xff]  ;;  %v575_v13 = vld [vmem:[%s4061_s22 + $0x58] sm:$0xff]  ;;  %v576_v14 = vld [vmem:[%s4061_s22 + $0x60] sm:$0xff]  ;;  %1058 = vmatpush.msra.mxu1 %v1049_v29  ;;  %s3632_s20 = sshll.u32 %s5474_s28, 3 }
  0x1b   : > { %v577_v18 = vld [vmem:[%s4061_s22 + $0x68] sm:$0xff]  ;;  %1100 = vmatpush.msra.mxu2 %v1024_v23  ;;  %v578_v26 = vld [vmem:[%s4061_s22 + $0x70] sm:$0xff]  ;;  %v579_v35 = vld [vmem:[%s4061_s22 + $0x78] sm:$0xff]  ;;  %s563_s25 = scalar_lea.vmem %s5465_s17, %s3632_s20 }
  0x1c   : > { %1059 = vmatpush.msra.mxu1 %v1048_v31  ;;  %v1019_v34 = vld [vmem:[%s5451_s3 + $0x28] sm:$0xff]  ;;  %v1018_v37 = vld [vmem:[%s5451_s3 + $0x20] sm:$0xff]  ;;  %v1045_v38 = vld [vmem:[%s5451_s3 + $0xb8] sm:$0xff] }
  0x1d   : > { %1101 = vmatpush.msra.mxu2 %v1023_v25  ;;  %v1017_v39 = vld [vmem:[%s5451_s3 + $0x18] sm:$0xff]  ;;  %v1044_v40 = vld [vmem:[%s5451_s3 + $0xb0] sm:$0xff]  ;;  %v1043_v42 = vld [vmem:[%s5451_s3 + $0xa8] sm:$0xff] }
  0x1e   : > { %1060 = vmatpush.msra.mxu1 %v1047_v33  ;;  %v1016_v41 = vld [vmem:[%s5451_s3 + $0x10] sm:$0xff]  ;;  %v1015_v43 = vld [vmem:[%s5451_s3 + $0x8] sm:$0xff]  ;;  %v580_v45 = vld [vmem:[%s4061_s22 + $0x80] sm:$0xff] }
  0x1f   : > { %1102 = vmatpush.msra.mxu2 %v1022_v28  ;;  %v1042_v46 = vld [vmem:[%s5451_s3 + $0xa0] sm:$0xff]  ;;  %v1041_v49 = vld [vmem:[%s5451_s3 + $0x98] sm:$0xff]  ;;  %v1040_v50 = vld [vmem:[%s5451_s3 + $0x90] sm:$0xff] }
  0x20   : > { %1061 = vmatpush.msra.mxu1 %v1046_v36  ;;  %v1014_v47 = vld [vmem:[%s5451_s3] sm:$0xff]  ;;  %v1039_v51 = vld [vmem:[%s5451_s3 + $0x88] sm:$0xff]  ;;  %v582_v56 = vld [vmem:[%s4061_s22 + $0x90] sm:$0xff] }
  0x21   : > { %1103 = vmatpush.msra.mxu2 %v1021_v30  ;;  %v581_v53 = vld [vmem:[%s4061_s22 + $0x88] sm:$0xff]  ;;  %v1038_v54 = vld [vmem:[%s5451_s3 + $0x80] sm:$0xff]  ;;  %v1160_v57 = vld [vmem:[%s5451_s3 + $0x178] sm:$0xff] }
  0x22   : > { %3635 = vmatmul.msk.f32.gmra.mxu0 %vm610_vm1, %v565_v3  ;;  %1062 = vmatpush.msra.mxu1 %v1045_v38  ;;  %v4219_v58 = vld [vmem:[%s5450_s2] ss:$0 sm:$0xff]  ;;  %v1159_v59 = vld [vmem:[%s5451_s3 + $0x170] sm:$0xff]  ;;  %v1158_v61 = vld [vmem:[%s5451_s3 + $0x168] sm:$0xff] }
  0x23   : > { %1104 = vmatpush.msra.mxu2 %v1020_v32  ;;  %1161 = vmatpush.msra.mxu3 %v1160_v57  ;;  %v583_v63 = vld [vmem:[%s4061_s22 + $0x98] sm:$0xff]  ;;  %v1157_v2 = vld [vmem:[%s5451_s3 + $0x160] sm:$0xff]  ;;  %v1151_v21 = vld [vmem:[%s5451_s3 + $0x130] sm:$0xff] }
  0x24   : > { %1063 = vmatpush.msra.mxu1 %v1044_v40  ;;  %v1153_v16 = vld [vmem:[%s5451_s3 + $0x140] sm:$0xff]  ;;  %v1152_v19 = vld [vmem:[%s5451_s3 + $0x138] sm:$0xff]  ;;  %v1150_v23 = vld [vmem:[%s5451_s3 + $0x128] sm:$0xff] }
  0x25   : > { %1105 = vmatpush.msra.mxu2 %v1019_v34  ;;  %1162 = vmatpush.msra.mxu3 %v1159_v59  ;;  %v585_v25 = vld [vmem:[%s4061_s22 + $0xa8] sm:$0xff]  ;;  %v1149_v28 = vld [vmem:[%s5451_s3 + $0x120] sm:$0xff]  ;;  %vm4267_vm2 = vmneg %vm731_vm0 }
  0x26   : > { %1064 = vmatpush.msra.mxu1 %v1043_v42  ;;  %v1148_v30 = vld [vmem:[%s5451_s3 + $0x118] sm:$0xff]  ;;  %v1147_v31 = vld [vmem:[%s5451_s3 + $0x110] sm:$0xff]  ;;  %v1146_v32 = vld [vmem:[%s5451_s3 + $0x108] sm:$0xff] }
  0x27   : > { %1106 = vmatpush.msra.mxu2 %v1018_v37  ;;  %1163 = vmatpush.msra.mxu3 %v1158_v61  ;;  %v586_v34 = vld [vmem:[%s4061_s22 + $0xb0] sm:$0xff]  ;;  %v587_v37 = vld [vmem:[%s4061_s22 + $0xb8] sm:$0xff]  ;;  %v588_v40 = vld [vmem:[%s4061_s22 + $0xc0] sm:$0xff] }
  0x28   : > { %1065 = vmatpush.msra.mxu1 %v1042_v46 }
  0x29   : > { %1107 = vmatpush.msra.mxu2 %v1017_v39  ;;  %1164 = vmatpush.msra.mxu3 %v1157_v2  ;;  %v592_v2 = vld [vmem:[%s4061_s22 + $0xe0] sm:$0xff] }
  0x2a   : > { %3636 = vmatmul.msk.f32.gmra.mxu0 %vm610_vm1, %v566_v4  ;;  %1066 = vmatpush.msra.mxu1 %v1041_v49 }
  0x2b   : > { %1108 = vmatpush.msra.mxu2 %v1016_v41 }
  0x2c   : > { %1067 = vmatpush.msra.mxu1 %v1040_v50 }
  0x2d   : > { %1109 = vmatpush.msra.mxu2 %v1015_v43 }
  0x2e   : > { %1068 = vmatpush.msra.mxu1 %v1039_v51  ;;  %v589_v51 = vld [vmem:[%s4061_s22 + $0xc8] sm:$0xff] }
  0x2f   : > { %1110 = vmatpush.msra.mxu2 %v1014_v47 }
  0x30   : > { %1111 = vmatmul.f32.vlgmr.msra.gmra.mxu2 %v3951_v48  ;;  %1069 = vmatpush.msra.mxu1 %v1038_v54 }
  0x32   : > { %3637 = vmatmul.msk.f32.gmra.mxu0 %vm610_vm1, %v567_v5  ;;  %v1156_v5 = vld [vmem:[%s5451_s3 + $0x158] sm:$0xff] }
  0x33   : > { %1165 = vmatpush.msra.mxu3 %v1156_v5  ;;  %v593_v5 = vld [vmem:[%s4061_s22 + $0xe8] sm:$0xff] }
  0x3a   : > { %3638 = vmatmul.msk.f32.gmra.mxu0 %vm610_vm1, %v568_v6 }
  0x42   : > { %3639 = vmatmul.msk.f32.gmra.mxu0 %vm610_vm1, %v569_v7 }
  0x4a   : > { %3640 = vmatmul.msk.f32.gmra.mxu0 %vm610_vm1, %v570_v8  ;;  %v1155_v8 = vld [vmem:[%s5451_s3 + $0x150] sm:$0xff] }
  0x4b   : > { %1166 = vmatpush.msra.mxu3 %v1155_v8 }
  0x52   : > { %3641 = vmatmul.msk.f32.gmra.mxu0 %vm610_vm1, %v571_v9 }
  0x5a   : > { %3642 = vmatmul.msk.f32.gmra.mxu0 %vm610_vm1, %v572_v10 }
  0x62   : > { %3643 = vmatmul.msk.f32.gmra.mxu0 %vm610_vm1, %v573_v11  ;;  %v1154_v11 = vld [vmem:[%s5451_s3 + $0x148] sm:$0xff] }
  0x63   : > { %1167 = vmatpush.msra.mxu3 %v1154_v11 }
  0x65   : > { %1168 = vmatpush.msra.mxu3 %v1153_v16 }
  0x67   : > { %1169 = vmatpush.msra.mxu3 %v1152_v19 }
  0x69   : > { %1170 = vmatpush.msra.mxu3 %v1151_v21 }
  0x6a   : > { %3644 = vmatmul.msk.f32.gmra.mxu0 %vm610_vm1, %v574_v12 }
  0x6b   : > { %1171 = vmatpush.msra.mxu3 %v1150_v23  ;;  %v595_v23 = vld [vmem:[%s4061_s22 + $0xf8] sm:$0xff] }
  0x6d   : > { %1172 = vmatpush.msra.mxu3 %v1149_v28 }
  0x6f   : > { %1173 = vmatpush.msra.mxu3 %v1148_v30  ;;  %v597_v30 = vld [vmem:[%s4061_s22 + $0x108] sm:$0xff] }
  0x71   : > { %1174 = vmatpush.msra.mxu3 %v1147_v31 }
  0x72   : > { %3645 = vmatmul.msk.f32.gmra.mxu0 %vm610_vm1, %v575_v13  ;;  %v584_v13 = vld [vmem:[%s4061_s22 + $0xa0] sm:$0xff] }
  0x73   : > { %1175 = vmatpush.msra.mxu3 %v1146_v32 }
  0x7a   : > { %3646 = vmatmul.msk.f32.gmra.mxu0 %vm610_vm1, %v576_v14 }
  0x82   : > { %3647 = vmatmul.msk.f32.gmra.mxu0 %vm610_vm1, %v577_v18 }
  0x8a   : > { %3648 = vmatmul.msk.f32.gmra.mxu0 %vm610_vm1, %v578_v26 }
  0x92   : > { %3649 = vmatmul.msk.f32.gmra.mxu0 %vm610_vm1, %v579_v35  ;;  %v1145_v35 = vld [vmem:[%s5451_s3 + $0x100] sm:$0xff] }
  0x93   : > { %1176 = vmatpush.msra.mxu3 %v1145_v35 }
  0x97   : > { %v752_v44 = vpop.f32.mrf.mxu0 }
  0x98   : > { %v753_v0 = vadd.f32 %v4219_v58, %v752_v44 }
  0x9a   : > { %3650 = vmatmul.msk.f32.gmra.mxu0 %vm610_vm1, %v580_v45  ;;  %v872_v6 = vmax.f32 %v753_v0, 0.0  ;;  %v591_v0 = vld [vmem:[%s4061_s22 + $0xd8] sm:$0xff] }
  0x9f   : > { %v755_v52 = vpop.f32.mrf.mxu0 }
  0xa0   : > { %v756_v60 = vadd.f32 %v4219_v58, %v755_v52 }
  0xa2   : > { %3651 = vmatmul.msk.f32.gmra.mxu0 %vm610_vm1, %v581_v53  ;;  %v873_v3 = vmax.f32 %v756_v60, 0.0  ;;  %v590_v60 = vld [vmem:[%s4061_s22 + $0xd0] sm:$0xff] }
  0xa4   : > { %v912_v9 = vmax.f32 %v872_v6, %v873_v3 }
  0xa7   : > { %v758_v55 = vpop.f32.mrf.mxu0 }
  0xa8   : > { %v759_v1 = vadd.f32 %v4219_v58, %v758_v55 }
  0xaa   : > { %3652 = vmatmul.msk.f32.gmra.mxu0 %vm610_vm1, %v582_v56  ;;  %v874_v7 = vmax.f32 %v759_v1, 0.0 }
  0xac   : > { %v913_v14 = vmax.f32 %v912_v9, %v874_v7 }
  0xaf   : > { %v761_v62 = vpop.f32.mrf.mxu0 }
  0xb0   : > { %v762_v4 = vadd.f32 %v4219_v58, %v761_v62 }
  0xb2   : > { %3653 = vmatmul.msk.f32.gmra.mxu0 %vm610_vm1, %v583_v63  ;;  %v875_v10 = vmax.f32 %v762_v4, 0.0 }
  0xb4   : > { %v914_v17 = vmax.f32 %v913_v14, %v875_v10 }
  0xb7   : > { %v764_v12 = vpop.f32.mrf.mxu0 }
  0xb8   : > { %v765_v15 = vadd.f32 %v4219_v58, %v764_v12 }
  0xba   : > { %v876_v18 = vmax.f32 %v765_v15, 0.0  ;;  %3654 = vmatmul.msk.f32.gmra.mxu0 %vm610_vm1, %v584_v13  ;;  %v594_v15 = vld [vmem:[%s4061_s22 + $0xf0] sm:$0xff] }
  0xbc   : > { %v915_v20 = vmax.f32 %v914_v17, %v876_v18 }
  0xbe   : > { %v957_v22 = vrot.slane %v915_v20, 7 }
  0xbf   : > { %v767_v24 = vpop.f32.mrf.mxu0 }
  0xc0   : > { %v973_v26 = vsel %vm731_vm0, 0.0, %v957_v22  ;;  %v981_v27 = vsel %vm731_vm0, %v957_v22, 0.0  ;;  %3843 = vmatmul.msk.f32.vlgmr.msra.gmra.mxu1 %vm4267_vm2, %v957_v22  ;;  %3845 = vmatmul.msk.f32.gmra.mxu2 %vm4267_vm2, %v957_v22  ;;  %v768_v41 = vadd.f32 %v4219_v58, %v767_v24 }
  0xc1   : > { %990 = vst [vmem:[#allocation2 + $0x10] sm:$0xff] %v973_v26 }
  0xc2   : > { %991 = vst [vmem:[#allocation2 + $0x18] sm:$0x3] %v981_v27  ;;  %3655 = vmatmul.msk.f32.gmra.mxu0 %vm610_vm1, %v585_v25  ;;  %v877_v45 = vmax.f32 %v768_v41, 0.0  ;;  %v596_v27 = vld [vmem:[%s4061_s22 + $0x100] sm:$0xff] }
  0xc7   : > { %v770_v33 = vpop.f32.mrf.mxu0 }
  0xc8   : > { %v771_v38 = vadd.f32 %v4219_v58, %v770_v33  ;;  %v598_v33 = vld [vmem:[%s4061_s22 + $0x110] sm:$0xff] }
  0xca   : > { %3656 = vmatmul.msk.f32.gmra.mxu0 %vm610_vm1, %v586_v34  ;;  %v878_v43 = vmax.f32 %v771_v38, 0.0 }
  0xcc   : > { %v916_v47 = vmax.f32 %v877_v45, %v878_v43  ;;  %v599_v43 = vld [vmem:[%s4061_s22 + $0x118] sm:$0xff] }
  0xcf   : > { %v773_v36 = vpop.f32.mrf.mxu0 }
  0xd0   : > { %v774_v42 = vadd.f32 %v4219_v58, %v773_v36 }
  0xd2   : > { %3657 = vmatmul.msk.f32.gmra.mxu0 %vm610_vm1, %v587_v37  ;;  %v879_v46 = vmax.f32 %v774_v42, 0.0 }
  0xd4   : > { %v917_v52 = vmax.f32 %v916_v47, %v879_v46 }
  0xd7   : > { %v776_v39 = vpop.f32.mrf.mxu0 }
  0xd8   : > { %v777_v44 = vadd.f32 %v4219_v58, %v776_v39 }
  0xda   : > { %3658 = vmatmul.msk.f32.gmra.mxu0 %vm610_vm1, %v588_v40  ;;  %v880_v49 = vmax.f32 %v777_v44, 0.0 }
  0xdc   : > { %v918_v54 = vmax.f32 %v917_v52, %v880_v49  ;;  %v600_v52 = vld [vmem:[%s4061_s22 + $0x120] sm:$0xff] }
  0xdf   : > { %v779_v50 = vpop.f32.mrf.mxu0 }
  0xe0   : > { %v780_v53 = vadd.f32 %v4219_v58, %v779_v50 }
  0xe2   : > { %v881_v55 = vmax.f32 %v780_v53, 0.0  ;;  %3659 = vmatmul.msk.f32.gmra.mxu0 %vm610_vm1, %v589_v51 }
  0xe4   : > { %v919_v56 = vmax.f32 %v918_v54, %v881_v55 }
  0xe6   : > { %v958_v57 = vrot.slane %v919_v56, 7  ;;  %v601_v56 = vld [vmem:[%s4061_s22 + $0x128] sm:$0xff] }
  0xe7   : > { %v782_v59 = vpop.f32.mrf.mxu0 }
  0xe8   : > { %v974_v61 = vsel %vm731_vm0, 0.0, %v958_v57  ;;  %v982_v62 = vsel %vm731_vm0, %v958_v57, 0.0  ;;  %3847 = vmatmul.msk.f32.gmra.mxu1 %vm4267_vm2, %v958_v57  ;;  %3849 = vmatmul.msk.f32.gmra.mxu2 %vm4267_vm2, %v958_v57  ;;  %v783_v6 = vadd.f32 %v4219_v58, %v782_v59  ;;  %v602_v59 = vld [vmem:[%s4061_s22 + $0x130] sm:$0xff] }
  0xe9   : > { %992 = vst [vmem:[#allocation2 + $0x20] sm:$0xff] %v974_v61  ;;  %3851 = vmatmul.msk.f32.vlgmr.msra.gmra.mxu3 %vm4267_vm2, %v958_v57 }
  0xea   : > { %993 = vst [vmem:[#allocation2 + $0x28] sm:$0x3] %v982_v62  ;;  %3660 = vmatmul.msk.f32.gmra.mxu0 %vm610_vm1, %v590_v60  ;;  %v882_v10 = vmax.f32 %v783_v6, 0.0  ;;  %v603_v62 = vld [vmem:[%s4061_s22 + $0x138] sm:$0xff] }
  0xef   : > { %v785_v63 = vpop.f32.mrf.mxu0 }
  0xf0   : > { %v786_v3 = vadd.f32 %v4219_v58, %v785_v63 }
  0xf2   : > { %3661 = vmatmul.msk.f32.gmra.mxu0 %vm610_vm1, %v591_v0  ;;  %v883_v8 = vmax.f32 %v786_v3, 0.0 }
  0xf4   : > { %v920_v12 = vmax.f32 %v882_v10, %v883_v8 }
  0xf7   : > { %v788_v1 = vpop.f32.mrf.mxu0 }
  0xf8   : > { %v789_v7 = vadd.f32 %v4219_v58, %v788_v1 }
  0xfa   : > { %3662 = vmatmul.msk.f32.gmra.mxu0 %vm610_vm1, %v592_v2  ;;  %v884_v11 = vmax.f32 %v789_v7, 0.0 }
  0xfc   : > { %v921_v16 = vmax.f32 %v920_v12, %v884_v11 }
  0xff   : > { %v791_v4 = vpop.f32.mrf.mxu0 }
 0x100   : > { %v792_v9 = vadd.f32 %v4219_v58, %v791_v4 }
 0x102   : > { %3663 = vmatmul.msk.f32.gmra.mxu0 %vm610_vm1, %v593_v5  ;;  %v885_v13 = vmax.f32 %v792_v9, 0.0 }
 0x104   : > { %v922_v18 = vmax.f32 %v921_v16, %v885_v13 }
 0x107   : > { %v794_v14 = vpop.f32.mrf.mxu0 }
 0x108   : > { %v795_v17 = vadd.f32 %v4219_v58, %v794_v14 }
 0x10a   : > { %v886_v19 = vmax.f32 %v795_v17, 0.0  ;;  %3664 = vmatmul.msk.f32.gmra.mxu0 %vm610_vm1, %v594_v15 }
 0x10c   : > { %v923_v20 = vmax.f32 %v922_v18, %v886_v19 }
 0x10e   : > { %v959_v21 = vrot.slane %v923_v20, 7 }
 0x10f   : > { %v797_v22 = vpop.f32.mrf.mxu0 }
 0x110   : > { %v975_v24 = vsel %vm731_vm0, 0.0, %v959_v21  ;;  %v983_v25 = vsel %vm731_vm0, %v959_v21, 0.0  ;;  %3853 = vmatmul.msk.f32.gmra.mxu1 %vm4267_vm2, %v959_v21  ;;  %3855 = vmatmul.msk.f32.gmra.mxu2 %vm4267_vm2, %v959_v21  ;;  %v798_v34 = vadd.f32 %v4219_v58, %v797_v22 }
 0x111   : > { %994 = vst [vmem:[#allocation2 + $0x30] sm:$0xff] %v975_v24  ;;  %3857 = vmatmul.msk.f32.gmra.mxu3 %vm4267_vm2, %v959_v21 }
 0x112   : > { %995 = vst [vmem:[#allocation2 + $0x38] sm:$0x3] %v983_v25  ;;  %3665 = vmatmul.msk.f32.gmra.mxu0 %vm610_vm1, %v595_v23  ;;  %v887_v38 = vmax.f32 %v798_v34, 0.0  ;;  %v1306_v25 = vld [vmem:[%s5451_s3 + $0x278] sm:$0xff] }
 0x113   : > { %1307 = vmatpush.msrb.mxu2 %v1306_v25  ;;  %v1227_v25 = vld [vmem:[%s5451_s3 + $0x1c8] sm:$0xff] }
 0x117   : > { %v800_v26 = vpop.f32.mrf.mxu0 }
 0x118   : > { %v801_v31 = vadd.f32 %v4219_v58, %v800_v26 }
 0x11a   : > { %3666 = vmatmul.msk.f32.gmra.mxu0 %vm610_vm1, %v596_v27  ;;  %v888_v36 = vmax.f32 %v801_v31, 0.0 }
 0x11c   : > { %v924_v40 = vmax.f32 %v887_v38, %v888_v36  ;;  %v1303_v36 = vld [vmem:[%s5451_s3 + $0x260] sm:$0xff] }
 0x11f   : > { %v803_v28 = vpop.f32.mrf.mxu0 }
 0x120   : > { %v804_v35 = vadd.f32 %v4219_v58, %v803_v28  ;;  %v1305_v28 = vld [vmem:[%s5451_s3 + $0x270] sm:$0xff] }
 0x121   : > { %1308 = vmatpush.msrb.mxu2 %v1305_v28 }
 0x122   : > { %3667 = vmatmul.msk.f32.gmra.mxu0 %vm610_vm1, %v597_v30  ;;  %v889_v39 = vmax.f32 %v804_v35, 0.0 }
 0x124   : > { %v925_v44 = vmax.f32 %v924_v40, %v889_v39  ;;  %v1302_v39 = vld [vmem:[%s5451_s3 + $0x258] sm:$0xff] }
 0x127   : > { %v806_v32 = vpop.f32.mrf.mxu0 }
 0x128   : > { %v807_v37 = vadd.f32 %v4219_v58, %v806_v32  ;;  %v1304_v32 = vld [vmem:[%s5451_s3 + $0x268] sm:$0xff] }
 0x129   : > { %1309 = vmatpush.msrb.mxu2 %v1304_v32  ;;  %v1226_v32 = vld [vmem:[%s5451_s3 + $0x1c0] sm:$0xff] }
 0x12a   : > { %3668 = vmatmul.msk.f32.gmra.mxu0 %vm610_vm1, %v598_v33  ;;  %v890_v41 = vmax.f32 %v807_v37, 0.0 }
 0x12b   : > { %1310 = vmatpush.msrb.mxu2 %v1303_v36 }
 0x12c   : > { %v926_v46 = vmax.f32 %v925_v44, %v890_v41  ;;  %v1301_v41 = vld [vmem:[%s5451_s3 + $0x250] sm:$0xff] }
 0x12d   : > { %1311 = vmatpush.msrb.mxu2 %v1302_v39  ;;  %v1371_v39 = vld [vmem:[%s5451_s3 + $0x2b8] sm:$0xff] }
 0x12f   : > { %v809_v42 = vpop.f32.mrf.mxu0  ;;  %1312 = vmatpush.msrb.mxu2 %v1301_v41  ;;  %v1369_v41 = vld [vmem:[%s5451_s3 + $0x2a8] sm:$0xff] }
 0x130   : > { %v810_v45 = vadd.f32 %v4219_v58, %v809_v42 }
 0x132   : > { %v891_v47 = vmax.f32 %v810_v45, 0.0  ;;  %3669 = vmatmul.msk.f32.gmra.mxu0 %vm610_vm1, %v599_v43  ;;  %v1300_v43 = vld [vmem:[%s5451_s3 + $0x248] sm:$0xff] }
 0x133   : > { %1313 = vmatpush.msrb.mxu2 %v1300_v43  ;;  %v1525_v43 = vld [vmem:[%s5451_s3 + $0x3f8] sm:$0xff] }
 0x134   : > { %v927_v49 = vmax.f32 %v926_v46, %v891_v47  ;;  %v1299_v47 = vld [vmem:[%s5451_s3 + $0x240] sm:$0xff] }
 0x135   : > { %1314 = vmatpush.msrb.mxu2 %v1299_v47  ;;  %v1219_v47 = vld [vmem:[%s5451_s3 + $0x188] sm:$0xff] }
 0x136   : > { %v960_v50 = vrot.slane %v927_v49, 7  ;;  %v1298_v49 = vld [vmem:[%s5451_s3 + $0x238] sm:$0xff] }
 0x137   : > { %v812_v51 = vpop.f32.mrf.mxu0  ;;  %1315 = vmatpush.msrb.mxu2 %v1298_v49 }
 0x138   : > { %v976_v53 = vsel %vm731_vm0, 0.0, %v960_v50  ;;  %v984_v54 = vsel %vm731_vm0, %v960_v50, 0.0  ;;  %3859 = vmatmul.msk.f32.gmra.mxu1 %vm4267_vm2, %v960_v50  ;;  %3861 = vmatmul.msk.f32.gmra.mxu2 %vm4267_vm2, %v960_v50  ;;  %v813_v63 = vadd.f32 %v4219_v58, %v812_v51  ;;  %v1296_v51 = vld [vmem:[%s5451_s3 + $0x228] sm:$0xff] }
 0x139   : > { %996 = vst [vmem:[#allocation2 + $0x40] sm:$0xff] %v976_v53  ;;  %3863 = vmatmul.msk.f32.gmra.mxu3 %vm4267_vm2, %v960_v50  ;;  %v1297_v50 = vld [vmem:[%s5451_s3 + $0x230] sm:$0xff]  ;;  %v1295_v53 = vld [vmem:[%s5451_s3 + $0x220] sm:$0xff] }
 0x13a   : > { %997 = vst [vmem:[#allocation2 + $0x48] sm:$0x3] %v984_v54  ;;  %3670 = vmatmul.msk.f32.gmra.mxu0 %vm610_vm1, %v600_v52  ;;  %v892_v3 = vmax.f32 %v813_v63, 0.0  ;;  %1316 = vmatpush.msrb.mxu2 %v1297_v50  ;;  %v1379_v54 = vld [vmem:[%s5451_s3 + $0x2f8] sm:$0xff]  ;;  %v1232_v63 = vld [vmem:[%s5451_s3 + $0x1f0] sm:$0xff]  ;;  %v1523_v50 = vld [vmem:[%s5451_s3 + $0x3e8] sm:$0xff] }
 0x13b   : > { %1380 = vmatpush.msrb.mxu3 %v1379_v54  ;;  %v1522_v54 = vld [vmem:[%s5451_s3 + $0x3e0] sm:$0xff] }
 0x13c   : > { %1317 = vmatpush.msrb.mxu2 %v1296_v51  ;;  %v1218_v51 = vld [vmem:[%s5451_s3 + $0x180] sm:$0xff] }
 0x13e   : > { %1318 = vmatpush.msrb.mxu2 %v1295_v53  ;;  %v1367_v53 = vld [vmem:[%s5451_s3 + $0x298] sm:$0xff] }
 0x13f   : > { %v815_v55 = vpop.f32.mrf.mxu0 }
 0x140   : > { %v816_v60 = vadd.f32 %v4219_v58, %v815_v55  ;;  %v1233_v55 = vld [vmem:[%s5451_s3 + $0x1f8] sm:$0xff] }
 0x141   : > { %1234 = vmatpush.msrb.mxu1 %v1233_v55  ;;  %v1366_v55 = vld [vmem:[%s5451_s3 + $0x290] sm:$0xff] }
 0x142   : > { %3671 = vmatmul.msk.f32.gmra.mxu0 %vm610_vm1, %v601_v56  ;;  %v893_v1 = vmax.f32 %v816_v60, 0.0  ;;  %v1378_v56 = vld [vmem:[%s5451_s3 + $0x2f0] sm:$0xff]  ;;  %v1292_v60 = vld [vmem:[%s5451_s3 + $0x208] sm:$0xff] }
 0x143   : > { %1381 = vmatpush.msrb.mxu3 %v1378_v56  ;;  %1235 = vmatpush.msrb.mxu1 %v1232_v63  ;;  %v1521_v56 = vld [vmem:[%s5451_s3 + $0x3d8] sm:$0xff]  ;;  %v1519_v63 = vld [vmem:[%s5451_s3 + $0x3c8] sm:$0xff] }
 0x144   : > { %v928_v5 = vmax.f32 %v892_v3, %v893_v1  ;;  %v1231_v1 = vld [vmem:[%s5451_s3 + $0x1e8] sm:$0xff] }
 0x145   : > { %1236 = vmatpush.msrb.mxu1 %v1231_v1 }
 0x147   : > { %v818_v57 = vpop.f32.mrf.mxu0 }
 0x148   : > { %v819_v0 = vadd.f32 %v4219_v58, %v818_v57  ;;  %v1294_v57 = vld [vmem:[%s5451_s3 + $0x218] sm:$0xff] }
 0x149   : > { %1319 = vmatpush.msrb.mxu2 %v1294_v57  ;;  %v1365_v57 = vld [vmem:[%s5451_s3 + $0x288] sm:$0xff] }
 0x14a   : > { %3672 = vmatmul.msk.f32.gmra.mxu0 %vm610_vm1, %v602_v59  ;;  %v894_v4 = vmax.f32 %v819_v0, 0.0  ;;  %v1293_v59 = vld [vmem:[%s5451_s3 + $0x210] sm:$0xff]  ;;  %v1377_v0 = vld [vmem:[%s5451_s3 + $0x2e8] sm:$0xff] }
 0x14b   : > { %1320 = vmatpush.msrb.mxu2 %v1293_v59  ;;  %1382 = vmatpush.msrb.mxu3 %v1377_v0  ;;  %v1520_v59 = vld [vmem:[%s5451_s3 + $0x3d0] sm:$0xff] }
 0x14c   : > { %v929_v8 = vmax.f32 %v928_v5, %v894_v4 }
 0x14d   : > { %1321 = vmatpush.msrb.mxu2 %v1292_v60 }
 0x14f   : > { %v821_v61 = vpop.f32.mrf.mxu0 }
 0x150   : > { %v822_v2 = vadd.f32 %v4219_v58, %v821_v61 }
 0x152   : > { %3673 = vmatmul.msk.f32.gmra.mxu0 %vm610_vm1, %v603_v62  ;;  %v895_v6 = vmax.f32 %v822_v2, 0.0  ;;  %v1291_v62 = vld [vmem:[%s5451_s3 + $0x200] sm:$0xff] }
 0x153   : > { %1322 = vmatpush.msrb.mxu2 %v1291_v62  ;;  %v1376_v2 = vld [vmem:[%s5451_s3 + $0x2e0] sm:$0xff] }
 0x154   : > { %v930_v10 = vmax.f32 %v929_v8, %v895_v6  ;;  %1383 = vmatpush.msrb.mxu3 %v1376_v2  ;;  %v4579_v2 = vld [vmem:[#allocation2 + $0x31] sm:$0xff] }
 0x155   : > { %1526 = vmatpush.msra.mxu2 %v1525_v43 }
 0x157   : > { %v824_v7 = vpop.f32.mrf.mxu0 }
 0x158   : > { %v825_v9 = vadd.f32 %v4219_v58, %v824_v7 }
 0x15a   : > { %v896_v11 = vmax.f32 %v825_v9, 0.0 }
 0x15c   : > { %v931_v12 = vmax.f32 %v930_v10, %v896_v11  ;;  %v1230_v11 = vld [vmem:[%s5451_s3 + $0x1e0] sm:$0xff] }
 0x15d   : > { %1237 = vmatpush.msrb.mxu1 %v1230_v11 }
 0x15e   : > { %v961_v13 = vrot.slane %v931_v12, 7  ;;  %v1375_v12 = vld [vmem:[%s5451_s3 + $0x2d8] sm:$0xff] }
 0x15f   : > { %v827_v14 = vpop.f32.mrf.mxu0  ;;  %1384 = vmatpush.msrb.mxu3 %v1375_v12  ;;  %v1451_v12 = vld [vmem:[%s5451_s3 + $0x370] sm:$0xff] }
 0x160   : > { %v977_v15 = vsel %vm731_vm0, 0.0, %v961_v13  ;;  %v985_v16 = vsel %vm731_vm0, %v961_v13, 0.0  ;;  %3865 = vmatmul.msk.f32.gmra.mxu1 %vm4267_vm2, %v961_v13  ;;  %3867 = vmatmul.msk.f32.gmra.mxu2 %vm4267_vm2, %v961_v13  ;;  %v828_v21 = vadd.f32 %v4219_v58, %v827_v14  ;;  %v1374_v14 = vld [vmem:[%s5451_s3 + $0x2d0] sm:$0xff] }
 0x161   : > { %998 = vst [vmem:[#allocation2 + $0x50] sm:$0xff] %v977_v15  ;;  %3869 = vmatmul.msk.f32.gmra.mxu3 %vm4267_vm2, %v961_v13  ;;  %v1229_v13 = vld [vmem:[%s5451_s3 + $0x1d8] sm:$0xff] }
 0x162   : > { %999 = vst [vmem:[#allocation2 + $0x58] sm:$0x3] %v985_v16  ;;  %v897_v26 = vmax.f32 %v828_v21, 0.0  ;;  %1238 = vmatpush.msrb.mxu1 %v1229_v13  ;;  %1385 = vmatpush.msrb.mxu3 %v1374_v14  ;;  %v1516_v13 = vld [vmem:[%s5451_s3 + $0x3b0] sm:$0xff] }
 0x167   : > { %v830_v17 = vpop.f32.mrf.mxu0 }
 0x168   : > { %v831_v19 = vadd.f32 %v4219_v58, %v830_v17 }
 0x16a   : > { %v898_v23 = vmax.f32 %v831_v19, 0.0 }
 0x16c   : > { %v932_v30 = vmax.f32 %v897_v26, %v898_v23  ;;  %v1228_v23 = vld [vmem:[%s5451_s3 + $0x1d0] sm:$0xff]  ;;  %v1372_v26 = vld [vmem:[%s5451_s3 + $0x2c0] sm:$0xff] }
 0x16d   : > { %1239 = vmatpush.msrb.mxu1 %v1228_v23 }
 0x16f   : > { %v833_v18 = vpop.f32.mrf.mxu0  ;;  %1240 = vmatpush.msrb.mxu1 %v1227_v25  ;;  %v1513_v25 = vld [vmem:[%s5451_s3 + $0x398] sm:$0xff] }
 0x170   : > { %v834_v22 = vadd.f32 %v4219_v58, %v833_v18 }
 0x171   : > { %1241 = vmatpush.msrb.mxu1 %v1226_v32 }
 0x172   : > { %v899_v27 = vmax.f32 %v834_v22, 0.0 }
 0x174   : > { %v933_v34 = vmax.f32 %v932_v30, %v899_v27 }
 0x177   : > { %v836_v20 = vpop.f32.mrf.mxu0 }
 0x178   : > { %v837_v24 = vadd.f32 %v4219_v58, %v836_v20 }
 0x17a   : > { %v900_v31 = vmax.f32 %v837_v24, 0.0  ;;  %v1373_v24 = vld [vmem:[%s5451_s3 + $0x2c8] sm:$0xff] }
 0x17b   : > { %1386 = vmatpush.msrb.mxu3 %v1373_v24  ;;  %v1596_v24 = vld [vmem:[%s5451_s3 + $0x468] sm:$0xff] }
 0x17c   : > { %v934_v37 = vmax.f32 %v933_v34, %v900_v31  ;;  %v1224_v34 = vld [vmem:[%s5451_s3 + $0x1b0] sm:$0xff] }
 0x17d   : > { %1387 = vmatpush.msrb.mxu3 %v1372_v26  ;;  %v1595_v26 = vld [vmem:[%s5451_s3 + $0x460] sm:$0xff] }
 0x17f   : > { %v839_v33 = vpop.f32.mrf.mxu0  ;;  %1388 = vmatpush.msrb.mxu3 %v1371_v39  ;;  %v1448_v39 = vld [vmem:[%s5451_s3 + $0x358] sm:$0xff] }
 0x180   : > { %v840_v35 = vadd.f32 %v4219_v58, %v839_v33  ;;  %v1225_v33 = vld [vmem:[%s5451_s3 + $0x1b8] sm:$0xff] }
 0x181   : > { %1242 = vmatpush.msrb.mxu1 %v1225_v33 }
 0x182   : > { %v901_v38 = vmax.f32 %v840_v35, 0.0  ;;  %v1223_v35 = vld [vmem:[%s5451_s3 + $0x1a8] sm:$0xff] }
 0x183   : > { %1243 = vmatpush.msrb.mxu1 %v1224_v34  ;;  %v1511_v34 = vld [vmem:[%s5451_s3 + $0x388] sm:$0xff] }
 0x184   : > { %v935_v40 = vmax.f32 %v934_v37, %v901_v38  ;;  %v4509_v37 = vld [vmem:[#allocation2 + $0x11] sm:$0xff]  ;;  %v1222_v38 = vld [vmem:[%s5451_s3 + $0x1a0] sm:$0xff] }
 0x185   : > { %1244 = vmatpush.msrb.mxu1 %v1223_v35  ;;  %v4641_v35 = vld [vmem:[#allocation2 + $0x51] sm:$0xff] }
 0x186   : > { %v962_v42 = vrot.slane %v935_v40, 7  ;;  %v1370_v40 = vld [vmem:[%s5451_s3 + $0x2b0] sm:$0xff] }
 0x187   : > { %v842_v44 = vpop.f32.mrf.mxu0  ;;  %1245 = vmatpush.msrb.mxu1 %v1222_v38  ;;  %1389 = vmatpush.msrb.mxu3 %v1370_v40  ;;  %v1594_v38 = vld [vmem:[%s5451_s3 + $0x458] sm:$0xff]  ;;  %v1593_v40 = vld [vmem:[%s5451_s3 + $0x450] sm:$0xff] }
 0x188   : > { %v978_v45 = vsel %vm731_vm0, 0.0, %v962_v42  ;;  %v986_v46 = vsel %vm731_vm0, %v962_v42, 0.0  ;;  %3871 = vmatmul.msk.f32.gmra.mxu1 %vm4267_vm2, %v962_v42  ;;  %3873 = vmatmul.msk.f32.gmra.mxu2 %vm4267_vm2, %v962_v42  ;;  %v843_v5 = vadd.f32 %v4219_v58, %v842_v44  ;;  %v1220_v44 = vld [vmem:[%s5451_s3 + $0x190] sm:$0xff] }
 0x189   : > { %1000 = vst [vmem:[#allocation2 + $0x60] sm:$0xff] %v978_v45  ;;  %3875 = vmatmul.msk.f32.gmra.mxu3 %vm4267_vm2, %v962_v42  ;;  %v1221_v42 = vld [vmem:[%s5451_s3 + $0x198] sm:$0xff]  ;;  %v1524_v45 = vld [vmem:[%s5451_s3 + $0x3f0] sm:$0xff] }
 0x18a   : > { %1001 = vst [vmem:[#allocation2 + $0x68] sm:$0x3] %v986_v46  ;;  %v902_v9 = vmax.f32 %v843_v5, 0.0  ;;  %1246 = vmatpush.msrb.mxu1 %v1221_v42  ;;  %v1368_v46 = vld [vmem:[%s5451_s3 + $0x2a0] sm:$0xff]  ;;  %1390 = vmatpush.msrb.mxu3 %v1369_v41  ;;  %v1447_v41 = vld [vmem:[%s5451_s3 + $0x350] sm:$0xff] }
 0x18b   : > { %1527 = vmatpush.msra.mxu2 %v1524_v45  ;;  %v1210_v42 = vld [vmem:[#allocation2 + $0x1] sm:$0xff] }
 0x18c   : > { %1247 = vmatpush.msrb.mxu1 %v1220_v44  ;;  %1391 = vmatpush.msrb.mxu3 %v1368_v46  ;;  %v1592_v44 = vld [vmem:[%s5451_s3 + $0x448] sm:$0xff]  ;;  %v1591_v46 = vld [vmem:[%s5451_s3 + $0x440] sm:$0xff] }
 0x18d   : > { %1528 = vmatpush.msra.mxu2 %v1523_v50  ;;  %v1446_v45 = vld [vmem:[%s5451_s3 + $0x348] sm:$0xff]  ;;  %v1444_v50 = vld [vmem:[%s5451_s3 + $0x338] sm:$0xff] }
 0x18e   : > { %1248 = vmatpush.msrb.mxu1 %v1219_v47  ;;  %1392 = vmatpush.msrb.mxu3 %v1367_v53 }
 0x18f   : > { %v845_v52 = vpop.f32.mrf.mxu0  ;;  %1529 = vmatpush.msra.mxu2 %v1522_v54  ;;  %v1588_v54 = vld [vmem:[%s5451_s3 + $0x428] sm:$0xff] }
 0x190   : > { %v846_v3 = vadd.f32 %v4219_v58, %v845_v52  ;;  %v4548_v52 = vld [vmem:[#allocation2 + $0x21] sm:$0xff]  ;;  %1249 = vmatpush.msrb.mxu1 %v1218_v51  ;;  %1393 = vmatpush.msrb.mxu3 %v1366_v55  ;;  %v1589_v51 = vld [vmem:[%s5451_s3 + $0x430] sm:$0xff] }
 0x191   : > { %1530 = vmatpush.msra.mxu2 %v1521_v56  ;;  %v1288_v43 = vld [vmem:[#allocation2 + $0x61] sm:$0xff] }
 0x192   : > { %v903_v7 = vmax.f32 %v846_v3, 0.0  ;;  %1394 = vmatpush.msrb.mxu3 %v1365_v57  ;;  %v1518_v3 = vld [vmem:[%s5451_s3 + $0x3c0] sm:$0xff]  ;;  %v1442_v55 = vld [vmem:[%s5451_s3 + $0x328] sm:$0xff]  ;;  %v1502_v57 = vld [vmem:[#allocation2 + $0x12] sm:$0xff] }
 0x193   : > { %1531 = vmatpush.msra.mxu2 %v1520_v59  ;;  %v1587_v56 = vld [vmem:[%s5451_s3 + $0x420] sm:$0xff]  ;;  %v1586_v59 = vld [vmem:[%s5451_s3 + $0x418] sm:$0xff] }
 0x194   : > { %v936_v15 = vmax.f32 %v902_v9, %v903_v7  ;;  %v1452_v7 = vld [vmem:[%s5451_s3 + $0x378] sm:$0xff]  ;;  %v1597_v9 = vld [vmem:[%s5451_s3 + $0x470] sm:$0xff] }
 0x195   : > { %1532 = vmatpush.msra.mxu2 %v1519_v63  ;;  %1453 = vmatpush.msra.mxu1 %v1452_v7  ;;  %v1438_v63 = vld [vmem:[%s5451_s3 + $0x308] sm:$0xff] }
 0x197   : > { %v848_v61 = vpop.f32.mrf.mxu0  ;;  %1533 = vmatpush.msra.mxu2 %v1518_v3  ;;  %1454 = vmatpush.msra.mxu1 %v1451_v12  ;;  %v1583_v3 = vld [vmem:[%s5451_s3 + $0x400] sm:$0xff] }
 0x198   : > { %v849_v6 = vadd.f32 %v4219_v58, %v848_v61  ;;  %v1364_v61 = vld [vmem:[%s5451_s3 + $0x280] sm:$0xff] }
 0x199   : > { %1395 = vmatpush.msrb.mxu3 %v1364_v61  ;;  %v1439_v61 = vld [vmem:[%s5451_s3 + $0x310] sm:$0xff]  ;;  %v1429_v12 = vld [vmem:[#allocation2 + $0x2] sm:$0xff] }
 0x19a   : > { %v904_v10 = vmax.f32 %v849_v6, 0.0  ;;  %v1598_v6 = vld [vmem:[%s5451_s3 + $0x478] sm:$0xff] }
 0x19b   : > { %1599 = vmatpush.msra.mxu3 %v1598_v6  ;;  %v1505_v6 = vld [vmem:[#allocation2 + $0x42] sm:$0xff] }
 0x19c   : > { %v937_v18 = vmax.f32 %v936_v15, %v904_v10 }
 0x19d   : > { %1600 = vmatpush.msra.mxu3 %v1597_v9 }
 0x19f   : > { %v851_v4 = vpop.f32.mrf.mxu0  ;;  %1601 = vmatpush.msra.mxu3 %v1596_v24 }
 0x1a0   : > { %v852_v8 = vadd.f32 %v4219_v58, %v851_v4 }
 0x1a1   : > { %1602 = vmatpush.msra.mxu3 %v1595_v26 }
 0x1a2   : > { %v905_v16 = vmax.f32 %v852_v8, 0.0  ;;  %v1517_v8 = vld [vmem:[%s5451_s3 + $0x3b8] sm:$0xff] }
 0x1a3   : > { %1534 = vmatpush.msra.mxu2 %v1517_v8  ;;  %1603 = vmatpush.msra.mxu3 %v1594_v38  ;;  %v1506_v8 = vld [vmem:[#allocation2 + $0x52] sm:$0xff] }
 0x1a4   : > { %v938_v20 = vmax.f32 %v937_v18, %v905_v16 }
 0x1a5   : > { %1535 = vmatpush.msra.mxu2 %v1516_v13  ;;  %1604 = vmatpush.msra.mxu3 %v1593_v40  ;;  %v1507_v13 = vld [vmem:[#allocation2 + $0x62] sm:$0xff] }
 0x1a7   : > { %v854_v17 = vpop.f32.mrf.mxu0  ;;  %1605 = vmatpush.msra.mxu3 %v1592_v44 }
 0x1a8   : > { %v855_v19 = vadd.f32 %v4219_v58, %v854_v17  ;;  %v1515_v17 = vld [vmem:[%s5451_s3 + $0x3a8] sm:$0xff] }
 0x1a9   : > { %1536 = vmatpush.msra.mxu2 %v1515_v17  ;;  %1606 = vmatpush.msra.mxu3 %v1591_v46 }
 0x1aa   : > { %v906_v21 = vmax.f32 %v855_v19, 0.0 }
 0x1ac   : > { %v939_v22 = vmax.f32 %v938_v20, %v906_v21  ;;  %v4608_v20 = vld [vmem:[#allocation2 + $0x41] sm:$0xff] }
 0x1ad   : > { %v1514_v21 = vld [vmem:[%s5451_s3 + $0x3a0] sm:$0xff] }
 0x1ae   : > { %v963_v27 = vrot.slane %v939_v22, 7  ;;  %1537 = vmatpush.msra.mxu2 %v1514_v21 }
 0x1af   : > { %v4487_v28 = vpop.f32.mrf.mxu0 }
 0x1b0   : > { %v979_v30 = vsel %vm731_vm0, 0.0, %v963_v27  ;;  %v987_v31 = vsel %vm731_vm0, %v963_v27, 0.0  ;;  %3877 = vmatmul.msk.f32.gmra.mxu1 %vm4267_vm2, %v963_v27  ;;  %3879 = vmatmul.msk.f32.gmra.mxu2 %vm4267_vm2, %v963_v27  ;;  %v858_v0 = vadd.f32 %v4219_v58, %v4487_v28  ;;  %v1449_v28 = vld [vmem:[%s5451_s3 + $0x360] sm:$0xff] }
 0x1b1   : > { %1002 = vst [vmem:[#allocation2 + $0x70] sm:$0xff] %v979_v30  ;;  %3881 = vmatmul.msk.f32.gmra.mxu3 %vm4267_vm2, %v963_v27  ;;  %v1512_v30 = vld [vmem:[%s5451_s3 + $0x390] sm:$0xff]  ;;  %1538 = vmatpush.msra.mxu2 %v1513_v25 }
 0x1b2   : > { %1003 = vst [vmem:[#allocation2 + $0x78] sm:$0x3] %v987_v31  ;;  %v907_v10 = vmax.f32 %v858_v0, 0.0  ;;  %v1437_v0 = vld [vmem:[%s5451_s3 + $0x300] sm:$0xff] }
 0x1b3   : > { %1539 = vmatpush.msra.mxu2 %v1512_v30 }
 0x1b5   : > { %1540 = vmatpush.msra.mxu2 %v1511_v34 }
 0x1b7   : > { %v860_v36 = vpop.f32.mrf.mxu0 }
 0x1b8   : > { %1323 = vmatmul.f32.vlgmr.msrb.gmra.mxu2 %v4509_v37  ;;  %v861_v60 = vadd.f32 %v4219_v58, %v860_v36  ;;  %v1510_v36 = vld [vmem:[%s5451_s3 + $0x380] sm:$0xff] }
 0x1b9   : > { %1541 = vmatpush.msra.mxu2 %v1510_v36  ;;  %v1289_v47 = vld [vmem:[#allocation2 + $0x71] sm:$0xff] }
 0x1ba   : > { %v908_v4 = vmax.f32 %v861_v60, 0.0  ;;  %v1440_v60 = vld [vmem:[%s5451_s3 + $0x318] sm:$0xff] }
 0x1bc   : > { %v940_v14 = vmax.f32 %v907_v10, %v908_v4  ;;  %v4728_v4 = vpop.f32.mrf.mxu2  ;;  %v4735_v10 = vpop.f32.mrf.mxu1 }
 0x1bf   : > { %v863_v49 = vpop.f32.mrf.mxu0 }
 0x1c0   : > { %1326 = vmatmul.f32.gmra.mxu2 %v4548_v52  ;;  %v864_v1 = vadd.f32 %v4219_v58, %v863_v49  ;;  %v1590_v49 = vld [vmem:[%s5451_s3 + $0x438] sm:$0xff] }
 0x1c1   : > { %1607 = vmatpush.msra.mxu3 %v1590_v49  ;;  %v1725_v49 = vld [vmem:[#allocation4 + $0x78] sm:$0xff] }
 0x1c2   : > { %v909_v11 = vmax.f32 %v864_v1, 0.0  ;;  %v1503_v1 = vld [vmem:[#allocation2 + $0x22] sm:$0xff]  ;;  %1775 = vmatpush.msrb.mxu2 %v1725_v49 }
 0x1c3   : > { %1608 = vmatpush.msra.mxu3 %v1589_v51  ;;  %v1714_v49 = vld [vmem:[#allocation4 + $0x20] sm:$0xff] }
 0x1c4   : > { %v941_v18 = vmax.f32 %v940_v14, %v909_v11  ;;  %v4731_v7 = vpop.f32.mrf.mxu2  ;;  %v1363_v11 = vld [vmem:[#allocation2 + $0x91] sm:$0xff] }
 0x1c5   : > { %1609 = vmatpush.msra.mxu3 %v1588_v54 }
 0x1c7   : > { %v866_v62 = vpop.f32.mrf.mxu0  ;;  %1610 = vmatpush.msra.mxu3 %v1587_v56  ;;  %v1745_v56 = vld [vmem:[#allocation4 + $0xf8] sm:$0xff] }
 0x1c8   : > { %1329 = vmatmul.f32.gmra.mxu2 %v4579_v2  ;;  %v867_v5 = vadd.f32 %v4219_v58, %v866_v62  ;;  %v1585_v62 = vld [vmem:[%s5451_s3 + $0x410] sm:$0xff] }
 0x1c9   : > { %1611 = vmatpush.msra.mxu3 %v1586_v59  ;;  %v1720_v59 = vld [vmem:[#allocation4 + $0x50] sm:$0xff] }
 0x1ca   : > { %v910_v15 = vmax.f32 %v867_v5, 0.0  ;;  %v1504_v5 = vld [vmem:[#allocation2 + $0x32] sm:$0xff] }
 0x1cb   : > { %1612 = vmatpush.msra.mxu3 %v1585_v62  ;;  %v1719_v62 = vld [vmem:[#allocation4 + $0x48] sm:$0xff] }
 0x1cc   : > { %v942_v22 = vmax.f32 %v941_v18, %v910_v15  ;;  %v4733_v9 = vpop.f32.mrf.mxu2  ;;  %v4739_v15 = vpop.f32.mrf.mxu1 }
 0x1cd   : > { %v4743_v18 = vpop.f32.mrf.mxu3 }
 0x1cf   : > { %v869_v16 = vpop.f32.mrf.mxu0 }
 0x1d0   : > { %v870_v19 = vadd.f32 %v4219_v58, %v869_v16  ;;  %1332 = vmatmul.f32.gmra.mxu2 %v4608_v20  ;;  %v1450_v58 = vld [vmem:[%s5451_s3 + $0x368] sm:$0xff]  ;;  %v1508_v16 = vld [vmem:[#allocation2 + $0x72] sm:$0xff] }
 0x1d1   : > { %1455 = vmatpush.msra.mxu1 %v1450_v58 }
 0x1d2   : > { %v911_v23 = vmax.f32 %v870_v19, 0.0 }
 0x1d3   : > { %1456 = vmatpush.msra.mxu1 %v1449_v28 }
 0x1d4   : > { %v943_v27 = vmax.f32 %v942_v22, %v911_v23  ;;  %v4737_v14 = vpop.f32.mrf.mxu2  ;;  %v4745_v19 = vpop.f32.mrf.mxu1 }
 0x1d5   : > { %1457 = vmatpush.msra.mxu1 %v1448_v39  ;;  %v4749_v22 = vpop.f32.mrf.mxu3  ;;  %v1582_v39 = vld [vmem:[#allocation2 + $0x92] sm:$0xff] }
 0x1d6   : > { %v964_v31 = vrot.slane %v943_v27, 7 }
 0x1d7   : > { %1458 = vmatpush.msra.mxu1 %v1447_v41 }
 0x1d8   : > { %v980_v32 = vsel %vm731_vm0, 0.0, %v964_v31  ;;  %v988_v33 = vsel %vm731_vm0, %v964_v31, 0.0  ;;  %3883 = vmatmul.msk.f32.gmra.mxu1 %vm4267_vm2, %v964_v31  ;;  %3885 = vmatmul.msk.f32.gmra.mxu3 %vm4267_vm2, %v964_v31 }
 0x1d9   : > { %1004 = vst [vmem:[#allocation2 + $0x80] sm:$0xff] %v980_v32  ;;  %1335 = vmatmul.f32.gmra.mxu2 %v4641_v35  ;;  %1459 = vmatpush.msra.mxu1 %v1446_v45 }
 0x1da   : > { %1005 = vst [vmem:[#allocation2 + $0x88] sm:$0x3] %v988_v33 }
 0x1dc   : > { %v4741_v17 = vpop.f32.mrf.mxu2  ;;  %v4751_v23 = vpop.f32.mrf.mxu1 }
 0x1dd   : > { %v4755_v58 = vpop.f32.mrf.mxu3 }
 0x1e0   : > { %1198 = vmatmul.f32.gmra.mxu3 %v3951_v48  ;;  %1250 = vmatmul.f32.vlgmr.msrb.gmra.mxu1 %v1210_v42  ;;  %v1445_v48 = vld [vmem:[%s5451_s3 + $0x340] sm:$0xff] }
 0x1e1   : > { %1338 = vmatmul.f32.gmra.mxu2 %v1288_v43  ;;  %1460 = vmatpush.msra.mxu1 %v1445_v48  ;;  %v1290_v53 = vld [vmem:[#allocation2 + $0x81] sm:$0xff] }
 0x1e3   : > { %1461 = vmatpush.msra.mxu1 %v1444_v50  ;;  %v1724_v50 = vld [vmem:[#allocation4 + $0x70] sm:$0xff] }
 0x1e4   : > { %v4747_v21 = vpop.f32.mrf.mxu2  ;;  %v4757_v25 = vpop.f32.mrf.mxu1  ;;  %1776 = vmatpush.msrb.mxu2 %v1724_v50  ;;  %v1823_v50 = vld [vmem:[#allocation4 + $0x170] sm:$0xff] }
 0x1e5   : > { %v4761_v27 = vpop.f32.mrf.mxu3 }
 0x1e8   : > { %1253 = vmatmul.f32.gmra.mxu1 %v4509_v37  ;;  %1396 = vmatmul.f32.vlgmr.msrb.gmra.mxu3 %v4548_v52  ;;  %v1443_v37 = vld [vmem:[%s5451_s3 + $0x330] sm:$0xff] }
 0x1e9   : > { %1341 = vmatmul.f32.gmra.mxu2 %v1289_v47  ;;  %1462 = vmatpush.msra.mxu1 %v1443_v37  ;;  %v1723_v37 = vld [vmem:[#allocation4 + $0x68] sm:$0xff] }
 0x1ea   : > { %1777 = vmatpush.msrb.mxu2 %v1723_v37  ;;  %v1822_v37 = vld [vmem:[#allocation4 + $0x168] sm:$0xff] }
 0x1eb   : > { %1463 = vmatpush.msra.mxu1 %v1442_v55  ;;  %v1722_v55 = vld [vmem:[#allocation4 + $0x60] sm:$0xff] }
 0x1ec   : > { %1778 = vmatpush.msrb.mxu2 %v1722_v55  ;;  %v1737_v55 = vld [vmem:[#allocation4 + $0xb8] sm:$0xff] }
 0x1f0   : > { %1256 = vmatmul.f32.gmra.mxu1 %v4548_v52  ;;  %1399 = vmatmul.f32.gmra.mxu3 %v4579_v2  ;;  %v1441_v52 = vld [vmem:[%s5451_s3 + $0x320] sm:$0xff] }
 0x1f1   : > { %1344 = vmatmul.f32.gmra.mxu2 %v1290_v53  ;;  %1464 = vmatpush.msra.mxu1 %v1441_v52  ;;  %v1721_v52 = vld [vmem:[#allocation4 + $0x58] sm:$0xff] }
 0x1f2   : > { %1779 = vmatpush.msrb.mxu2 %v1721_v52  ;;  %v1713_v52 = vld [vmem:[#allocation4 + $0x18] sm:$0xff] }
 0x1f3   : > { %1465 = vmatpush.msra.mxu1 %v1440_v60 }
 0x1f4   : > { %1780 = vmatpush.msrb.mxu2 %v1720_v59  ;;  %v1712_v59 = vld [vmem:[#allocation4 + $0x10] sm:$0xff] }
 0x1f5   : > { %1466 = vmatpush.msra.mxu1 %v1439_v61  ;;  %v1743_v61 = vld [vmem:[#allocation4 + $0xe8] sm:$0xff] }
 0x1f6   : > { %1781 = vmatpush.msrb.mxu2 %v1719_v62  ;;  %v1735_v62 = vld [vmem:[#allocation4 + $0xa8] sm:$0xff] }
 0x1f7   : > { %1467 = vmatpush.msra.mxu1 %v1438_v63 }
 0x1f8   : > { %1259 = vmatmul.f32.gmra.mxu1 %v4579_v2  ;;  %1402 = vmatmul.f32.gmra.mxu3 %v4608_v20  ;;  %v1584_v2 = vld [vmem:[%s5451_s3 + $0x408] sm:$0xff] }
 0x1f9   : > { %1542 = vmatmul.f32.vlgmr.msra.gmra.mxu2 %v1502_v57  ;;  %1468 = vmatpush.msra.mxu1 %v1437_v0  ;;  %v1824_v0 = vld [vmem:[#allocation4 + $0x178] sm:$0xff] }
 0x1fa   : > { %1613 = vmatpush.msra.mxu3 %v1584_v2  ;;  %v1718_v2 = vld [vmem:[#allocation4 + $0x40] sm:$0xff] }
 0x1fb   : > { %1746 = vmatpush.msrb.mxu1 %v1745_v56  ;;  %1782 = vmatpush.msrb.mxu2 %v1718_v2  ;;  %v1821_v2 = vld [vmem:[#allocation4 + $0x160] sm:$0xff] }
 0x1fc   : > { %1614 = vmatpush.msra.mxu3 %v1583_v3 }
 0x1fe   : > { %1825 = vmatpush.msrb.mxu3 %v1824_v0  ;;  %v1711_v0 = vld [vmem:[#allocation4 + $0x8] sm:$0xff] }
 0x200   : > { %1262 = vmatmul.f32.gmra.mxu1 %v4608_v20  ;;  %1405 = vmatmul.f32.gmra.mxu3 %v4641_v35  ;;  %v1509_v20 = vld [vmem:[#allocation2 + $0x82] sm:$0xff] }
 0x201   : > { %1545 = vmatmul.f32.gmra.mxu2 %v1503_v1  ;;  %1826 = vmatpush.msrb.mxu3 %v1823_v50 }
 0x203   : > { %1827 = vmatpush.msrb.mxu3 %v1822_v37  ;;  %v1818_v37 = vld [vmem:[#allocation4 + $0x148] sm:$0xff] }
 0x205   : > { %v4763_v28 = vpop.f32.mrf.mxu1  ;;  %1828 = vmatpush.msrb.mxu3 %v1821_v2  ;;  %v1816_v2 = vld [vmem:[#allocation4 + $0x138] sm:$0xff] }
 0x208   : > { %1265 = vmatmul.f32.gmra.mxu1 %v4641_v35  ;;  %1408 = vmatmul.f32.gmra.mxu3 %v1288_v43 }
 0x209   : > { %1548 = vmatmul.f32.gmra.mxu2 %v1504_v5 }
 0x20b   : > { %v4753_v24 = vpop.f32.mrf.mxu2 }
 0x20c   : > { %v4765_v30 = vpop.f32.mrf.mxu3 }
 0x210   : > { %1268 = vmatmul.f32.gmra.mxu1 %v1288_v43  ;;  %1411 = vmatmul.f32.gmra.mxu3 %v1289_v47 }
 0x211   : > { %1551 = vmatmul.f32.gmra.mxu2 %v1505_v6 }
 0x218   : > { %1271 = vmatmul.f32.gmra.mxu1 %v1289_v47  ;;  %1414 = vmatmul.f32.gmra.mxu3 %v1290_v53 }
 0x219   : > { %1554 = vmatmul.f32.gmra.mxu2 %v1506_v8 }
 0x220   : > { %1417 = vmatmul.f32.gmra.mxu3 %v1363_v11  ;;  %1469 = vmatmul.f32.vlgmr.msra.gmra.mxu1 %v1429_v12  ;;  %v1716_v11 = vld [vmem:[#allocation4 + $0x30] sm:$0xff] }
 0x221   : > { %1557 = vmatmul.f32.gmra.mxu2 %v1507_v13 }
 0x228   : > { %1472 = vmatmul.f32.gmra.mxu1 %v1502_v57  ;;  %1615 = vmatmul.f32.vlgmr.msra.gmra.mxu3 %v1503_v1  ;;  %v1744_v57 = vld [vmem:[#allocation4 + $0xf0] sm:$0xff] }
 0x229   : > { %1560 = vmatmul.f32.gmra.mxu2 %v1508_v16  ;;  %1747 = vmatpush.msrb.mxu1 %v1744_v57  ;;  %v1736_v57 = vld [vmem:[#allocation4 + $0xb0] sm:$0xff] }
 0x22b   : > { %1748 = vmatpush.msrb.mxu1 %v1743_v61 }
 0x22d   : > { %v4769_v32 = vpop.f32.mrf.mxu1 }
 0x230   : > { %1475 = vmatmul.f32.gmra.mxu1 %v1503_v1  ;;  %1618 = vmatmul.f32.gmra.mxu3 %v1504_v5  ;;  %v1742_v1 = vld [vmem:[#allocation4 + $0xe0] sm:$0xff] }
 0x231   : > { %1563 = vmatmul.f32.gmra.mxu2 %v1509_v20  ;;  %1749 = vmatpush.msrb.mxu1 %v1742_v1 }
 0x233   : > { %v4759_v26 = vpop.f32.mrf.mxu2 }
 0x234   : > { %v4771_v33 = vpop.f32.mrf.mxu3 }
 0x238   : > { %1478 = vmatmul.f32.gmra.mxu1 %v1504_v5  ;;  %1621 = vmatmul.f32.gmra.mxu3 %v1505_v6  ;;  %v1741_v5 = vld [vmem:[#allocation4 + $0xd8] sm:$0xff] }
 0x239   : > { %1750 = vmatpush.msrb.mxu1 %v1741_v5  ;;  %v1734_v5 = vld [vmem:[#allocation4 + $0xa0] sm:$0xff] }
 0x23b   : > { %v4767_v31 = vpop.f32.mrf.mxu2 }
 0x240   : > { %1481 = vmatmul.f32.gmra.mxu1 %v1505_v6  ;;  %1624 = vmatmul.f32.gmra.mxu3 %v1506_v8  ;;  %v1717_v6 = vld [vmem:[#allocation4 + $0x38] sm:$0xff] }
 0x241   : > { %1783 = vmatpush.msrb.mxu2 %v1717_v6  ;;  %v1710_v6 = vld [vmem:[#allocation4] sm:$0xff] }
 0x243   : > { %v4773_v34 = vpop.f32.mrf.mxu2  ;;  %1784 = vmatpush.msrb.mxu2 %v1716_v11  ;;  %v1733_v11 = vld [vmem:[#allocation4 + $0x98] sm:$0xff] }
 0x248   : > { %1484 = vmatmul.f32.gmra.mxu1 %v1506_v8  ;;  %1627 = vmatmul.f32.gmra.mxu3 %v1507_v13  ;;  %v1740_v8 = vld [vmem:[#allocation4 + $0xd0] sm:$0xff] }
 0x249   : > { %1751 = vmatpush.msrb.mxu1 %v1740_v8  ;;  %v1820_v8 = vld [vmem:[#allocation4 + $0x158] sm:$0xff] }
 0x24a   : > { %1829 = vmatpush.msrb.mxu3 %v1820_v8  ;;  %v1815_v8 = vld [vmem:[#allocation4 + $0x130] sm:$0xff] }
 0x24b   : > { %v4781_v40 = vpop.f32.mrf.mxu2 }
 0x250   : > { %1487 = vmatmul.f32.gmra.mxu1 %v1507_v13  ;;  %1630 = vmatmul.f32.gmra.mxu3 %v1508_v16  ;;  %v1739_v13 = vld [vmem:[#allocation4 + $0xc8] sm:$0xff] }
 0x251   : > { %1752 = vmatpush.msrb.mxu1 %v1739_v13  ;;  %v4821_v13 = vld [vmem:[#allocation2] sm:$0xff] }
 0x253   : > { %v4787_v43 = vpop.f32.mrf.mxu2 }
 0x255   : > { %v4775_v35 = vpop.f32.mrf.mxu1 }
 0x258   : > { %1490 = vmatmul.f32.gmra.mxu1 %v1508_v16  ;;  %1633 = vmatmul.f32.gmra.mxu3 %v1509_v20  ;;  %v1715_v16 = vld [vmem:[#allocation4 + $0x28] sm:$0xff] }
 0x259   : > { %1785 = vmatpush.msrb.mxu2 %v1715_v16  ;;  %v1819_v16 = vld [vmem:[#allocation4 + $0x150] sm:$0xff] }
 0x25a   : > { %1830 = vmatpush.msrb.mxu3 %v1819_v16 }
 0x25b   : > { %v4777_v36 = vpop.f32.mrf.mxu3  ;;  %1786 = vmatpush.msrb.mxu2 %v1714_v49 }
 0x25c   : > { %v4793_v46 = vpop.f32.mrf.mxu2  ;;  %1831 = vmatpush.msrb.mxu3 %v1818_v37 }
 0x25d   : > { %v4779_v38 = vpop.f32.mrf.mxu1  ;;  %1787 = vmatpush.msrb.mxu2 %v1713_v52 }
 0x25f   : > { %1788 = vmatpush.msrb.mxu2 %v1712_v59  ;;  %v1817_v59 = vld [vmem:[#allocation4 + $0x140] sm:$0xff] }
 0x260   : > { %1636 = vmatmul.f32.gmra.mxu3 %v1582_v39  ;;  %v1738_v39 = vld [vmem:[#allocation4 + $0xc0] sm:$0xff] }
 0x261   : > { %1753 = vmatpush.msrb.mxu1 %v1738_v39  ;;  %1789 = vmatpush.msrb.mxu2 %v1711_v0  ;;  %v1732_v39 = vld [vmem:[#allocation4 + $0x90] sm:$0xff] }
 0x262   : > { %1832 = vmatpush.msrb.mxu3 %v1817_v59 }
 0x263   : > { %v4783_v41 = vpop.f32.mrf.mxu3  ;;  %1754 = vmatpush.msrb.mxu1 %v1737_v55  ;;  %1790 = vmatpush.msrb.mxu2 %v1710_v6  ;;  %v1731_v55 = vld [vmem:[#allocation4 + $0x88] sm:$0xff] }
 0x264   : > { %v4801_v53 = vpop.f32.mrf.mxu2  ;;  %1791 = vmatmul.f32.vlgmr.msrb.gmra.mxu2 %v4821_v13  ;;  %1833 = vmatpush.msrb.mxu3 %v1816_v2  ;;  %v1810_v2 = vld [vmem:[#allocation4 + $0x108] sm:$0xff] }
 0x265   : > { %v4785_v42 = vpop.f32.mrf.mxu1  ;;  %1755 = vmatpush.msrb.mxu1 %v1736_v57  ;;  %v1113_v57 = vadd.f32 %v4728_v4, %v4735_v10  ;;  %v1814_v10 = vld [vmem:[#allocation4 + $0x128] sm:$0xff] }
 0x266   : > { %1834 = vmatpush.msrb.mxu3 %v1815_v8 }
 0x267   : > { %1756 = vmatpush.msrb.mxu1 %v1735_v62  ;;  %v1730_v62 = vld [vmem:[#allocation4 + $0x80] sm:$0xff]  ;;  %v1202_v0 = vadd.f32 %v4743_v18, %v1113_v57 }
 0x268   : > { %1835 = vmatpush.msrb.mxu3 %v1814_v10 }
 0x269   : > { %1757 = vmatpush.msrb.mxu1 %v1734_v5  ;;  %v1116_v5 = vadd.f32 %v4731_v7, %v4739_v15  ;;  %v1275_v6 = vadd.f32 %v4779_v38, %v1202_v0  ;;  %v1812_v15 = vld [vmem:[#allocation4 + $0x118] sm:$0xff] }
 0x26a   : > { %v1930_v38 = vld [vmem:[#allocation4 + $0x278] sm:$0xff] }
 0x26b   : > { %v4789_v44 = vpop.f32.mrf.mxu3  ;;  %1758 = vmatpush.msrb.mxu1 %v1733_v11  ;;  %v1203_v4 = vadd.f32 %v4749_v22, %v1116_v5  ;;  %v1348_v37 = vadd.f32 %v4767_v31, %v1275_v6  ;;  %1931 = vmatpush.msra.mxu2 %v1930_v38  ;;  %v1811_v22 = vld [vmem:[#allocation4 + $0x110] sm:$0xff]  ;;  %v1928_v31 = vld [vmem:[#allocation4 + $0x268] sm:$0xff] }
 0x26c   : > { %v4809_v3 = vpop.f32.mrf.mxu2  ;;  %v1924_v38 = vld [vmem:[#allocation4 + $0x248] sm:$0xff] }
 0x26d   : > { %v4791_v45 = vpop.f32.mrf.mxu1  ;;  %1759 = vmatpush.msrb.mxu1 %v1732_v39  ;;  %v1276_v18 = vadd.f32 %v4785_v42, %v1203_v4  ;;  %v1421_v7 = vadd.f32 %v4789_v44, %v1348_v37  ;;  %v1119_v44 = vadd.f32 %v4733_v9, %v4745_v19  ;;  %v1809_v4 = vld [vmem:[#allocation4 + $0x100] sm:$0xff]  ;;  %v1926_v37 = vld [vmem:[#allocation4 + $0x258] sm:$0xff]  ;;  %v1122_v9 = vadd.f32 %v4737_v14, %v4751_v23 }
 0x26e   : > { %v1923_v23 = vld [vmem:[#allocation4 + $0x240] sm:$0xff] }
 0x26f   : > { %1760 = vmatpush.msrb.mxu1 %v1731_v55  ;;  %v1813_v55 = vld [vmem:[#allocation4 + $0x120] sm:$0xff]  ;;  %v1349_v57 = vadd.f32 %v4773_v34, %v1276_v18  ;;  %v1204_v10 = vadd.f32 %v4755_v58, %v1119_v44 }
 0x270   : > { %1836 = vmatpush.msrb.mxu3 %v1813_v55  ;;  %v1927_v34 = vld [vmem:[#allocation4 + $0x260] sm:$0xff] }
 0x271   : > { %1761 = vmatpush.msrb.mxu1 %v1730_v62  ;;  %v1929_v62 = vld [vmem:[#allocation4 + $0x270] sm:$0xff]  ;;  %v1277_v19 = vadd.f32 %v4791_v45, %v1204_v10  ;;  %v1125_v10 = vadd.f32 %v4741_v17, %v4757_v25 }
 0x272   : > { %1837 = vmatpush.msrb.mxu3 %v1812_v15  ;;  %1932 = vmatpush.msra.mxu2 %v1929_v62 }
 0x273   : > { %v4795_v48 = vpop.f32.mrf.mxu3  ;;  %v1206_v17 = vadd.f32 %v4765_v30, %v1125_v10 }
 0x274   : > { %v4815_v56 = vpop.f32.mrf.mxu2  ;;  %1838 = vmatpush.msrb.mxu3 %v1811_v22  ;;  %v1422_v42 = vadd.f32 %v4795_v48, %v1349_v57  ;;  %1933 = vmatpush.msra.mxu2 %v1928_v31  ;;  %v4846_v48 = vld [vmem:[%s5452_s4] ss:$0 sm:$0xff]  ;;  %v1350_v22 = vadd.f32 %v4781_v40, %v1277_v19 }
 0x275   : > { %v4797_v47 = vpop.f32.mrf.mxu1  ;;  %v1874_v19 = vld [vmem:[#allocation4 + $0x1e0] sm:$0xff] }
 0x276   : > { %1839 = vmatpush.msrb.mxu3 %v1810_v2  ;;  %1934 = vmatpush.msra.mxu2 %v1927_v34  ;;  %v1920_v34 = vld [vmem:[#allocation4 + $0x228] sm:$0xff] }
 0x278   : > { %1840 = vmatpush.msrb.mxu3 %v1809_v4  ;;  %1935 = vmatpush.msra.mxu2 %v1926_v37 }
 0x27b   : > { %v4799_v51 = vpop.f32.mrf.mxu3 }
 0x27c   : > { %v1543_v49 = vpop.f32.mrf.mxu2  ;;  %v1423_v45 = vadd.f32 %v4799_v51, %v1350_v22  ;;  %v1875_v51 = vld [vmem:[#allocation4 + $0x1e8] sm:$0xff] }
 0x27d   : > { %v4803_v54 = vpop.f32.mrf.mxu1 }
 0x283   : > { %v4805_v60 = vpop.f32.mrf.mxu3 }
 0x284   : > { %v1546_v16 = vpop.f32.mrf.mxu2 }
 0x285   : > { %v4807_v63 = vpop.f32.mrf.mxu1 }
 0x28b   : > { %v4811_v12 = vpop.f32.mrf.mxu3 }
 0x28d   : > { %v4813_v20 = vpop.f32.mrf.mxu1 }
 0x293   : > { %v4817_v61 = vpop.f32.mrf.mxu3 }
 0x295   : > { %v4819_v1 = vpop.f32.mrf.mxu1 }
 0x29b   : > { %v4824_v50 = vpop.f32.mrf.mxu3 }
 0x29d   : > { %v1470_v52 = vpop.f32.mrf.mxu1 }
 0x29e   : > { %v1494_v59 = vadd.f32 %v1470_v52, %v1421_v7  ;;  %v1549_v52 = vpop.f32.mrf.mxu2  ;;  %v1205_v7 = vadd.f32 %v4761_v27, %v1122_v9  ;;  %v1922_v27 = vld [vmem:[#allocation4 + $0x238] sm:$0xff] }
 0x2a0   : > { %v1567_v8 = vadd.f32 %v1543_v49, %v1494_v59  ;;  %v1278_v59 = vadd.f32 %v4797_v47, %v1205_v7  ;;  %v1876_v47 = vld [vmem:[#allocation4 + $0x1f0] sm:$0xff]  ;;  %v1279_v7 = vadd.f32 %v4803_v54, %v1206_v17 }
 0x2a2   : > { %v1351_v2 = vadd.f32 %v4787_v43, %v1278_v59 }
 0x2a3   : > { %v4832_v11 = vpop.f32.mrf.mxu3 }
 0x2a5   : > { %v1473_v39 = vpop.f32.mrf.mxu1 }
 0x2a6   : > { %v1495_v6 = vadd.f32 %v1473_v39, %v1422_v42  ;;  %v1925_v39 = vld [vmem:[#allocation4 + $0x250] sm:$0xff]  ;;  %v1552_v42 = vpop.f32.mrf.mxu2 }
 0x2a7   : > { %1936 = vmatpush.msra.mxu2 %v1925_v39  ;;  %v1873_v39 = vld [vmem:[#allocation4 + $0x1d8] sm:$0xff] }
 0x2a8   : > { %v1568_v49 = vadd.f32 %v1546_v16, %v1495_v6  ;;  %v1921_v6 = vld [vmem:[#allocation4 + $0x230] sm:$0xff] }
 0x2a9   : > { %1937 = vmatpush.msra.mxu2 %v1924_v38  ;;  %v1872_v38 = vld [vmem:[#allocation4 + $0x1d0] sm:$0xff] }
 0x2ab   : > { %v1616_v0 = vpop.f32.mrf.mxu3  ;;  %1938 = vmatpush.msra.mxu2 %v1923_v23 }
 0x2ac   : > { %v1640_v18 = vadd.f32 %v1616_v0, %v1567_v8  ;;  %v1877_v0 = vld [vmem:[#allocation4 + $0x1f8] sm:$0xff]  ;;  %v1424_v8 = vadd.f32 %v4805_v60, %v1351_v2 }
 0x2ad   : > { %v1476_v5 = vpop.f32.mrf.mxu1  ;;  %1878 = vmatpush.msra.mxu1 %v1877_v0  ;;  %1939 = vmatpush.msra.mxu2 %v1922_v27  ;;  %v1983_v60 = vld [vmem:[#allocation4 + $0x2f8] sm:$0xff]  ;;  %v1980_v0 = vld [vmem:[#allocation4 + $0x2e0] sm:$0xff] }
 0x2ae   : > { %v1652_v58 = vadd.f32 %v4846_v48, %v1640_v18  ;;  %v1496_v31 = vadd.f32 %v1476_v5, %v1423_v45  ;;  %1984 = vmatpush.msra.mxu3 %v1983_v60  ;;  %v1555_v30 = vpop.f32.mrf.mxu2  ;;  %v1981_v45 = vld [vmem:[#allocation4 + $0x2e8] sm:$0xff]  ;;  %v1870_v27 = vld [vmem:[#allocation4 + $0x1c0] sm:$0xff] }
 0x2af   : > { %1879 = vmatpush.msra.mxu1 %v1876_v47  ;;  %1940 = vmatpush.msra.mxu2 %v1921_v6  ;;  %v1979_v47 = vld [vmem:[#allocation4 + $0x2d8] sm:$0xff]  ;;  %v1976_v60 = vld [vmem:[#allocation4 + $0x2c0] sm:$0xff] }
 0x2b0   : > { %v1660_v16 = vmax.f32 %v1652_v58, 0.0  ;;  %v1569_v9 = vadd.f32 %v1549_v52, %v1496_v31  ;;  %v1128_v52 = vadd.f32 %v4747_v21, %v4763_v28  ;;  %v1871_v21 = vld [vmem:[#allocation4 + $0x1c8] sm:$0xff]  ;;  %v1869_v6 = vld [vmem:[#allocation4 + $0x1b8] sm:$0xff] }
 0x2b1   : > { %1880 = vmatpush.msra.mxu1 %v1875_v51  ;;  %1941 = vmatpush.msra.mxu2 %v1920_v34  ;;  %v1916_v28 = vld [vmem:[#allocation4 + $0x208] sm:$0xff]  ;;  %v1868_v51 = vld [vmem:[#allocation4 + $0x1b0] sm:$0xff] }
 0x2b2   : > { %v1207_v22 = vadd.f32 %v4771_v33, %v1128_v52  ;;  %v1915_v33 = vld [vmem:[#allocation4 + $0x200] sm:$0xff]  ;;  %v2088_v34 = vld [vmem:[#allocation4 + $0x3f0] sm:$0xff]  ;;  %v1865_v52 = vld [vmem:[#allocation4 + $0x198] sm:$0xff] }
 0x2b3   : > { %v1619_v55 = vpop.f32.mrf.mxu3  ;;  %1881 = vmatpush.msra.mxu1 %v1874_v19  ;;  %v1131_v19 = vadd.f32 %v4753_v24, %v4769_v32 }
 0x2b4   : > { %v1641_v15 = vadd.f32 %v1619_v55, %v1568_v49  ;;  %v1919_v49 = vld [vmem:[#allocation4 + $0x220] sm:$0xff]  ;;  %v1918_v55 = vld [vmem:[#allocation4 + $0x218] sm:$0xff]  ;;  %v1280_v54 = vadd.f32 %v4807_v63, %v1207_v22 }
 0x2b5   : > { %v1479_v57 = vpop.f32.mrf.mxu1  ;;  %1942 = vmatpush.msra.mxu2 %v1919_v49  ;;  %1882 = vmatpush.msra.mxu1 %v1873_v39  ;;  %v2089_v63 = vld [vmem:[#allocation4 + $0x3f8] sm:$0xff]  ;;  %v2086_v39 = vld [vmem:[#allocation4 + $0x3e0] sm:$0xff]  ;;  %v1208_v24 = vadd.f32 %v4777_v36, %v1131_v19  ;;  %v1974_v36 = vld [vmem:[#allocation4 + $0x2b0] sm:$0xff] }
 0x2b6   : > { %v1653_v14 = vadd.f32 %v4846_v48, %v1641_v15  ;;  %v1497_v37 = vadd.f32 %v1479_v57, %v1424_v8  ;;  %v1982_v15 = vld [vmem:[#allocation4 + $0x2f0] sm:$0xff]  ;;  %v1968_v19 = vld [vmem:[#allocation4 + $0x280] sm:$0xff] }
 0x2b7   : > { %1943 = vmatpush.msra.mxu2 %v1918_v55  ;;  %v1917_v57 = vld [vmem:[#allocation4 + $0x210] sm:$0xff]  ;;  %1985 = vmatpush.msra.mxu3 %v1982_v15  ;;  %v1975_v55 = vld [vmem:[#allocation4 + $0x2b8] sm:$0xff] }
 0x2b8   : > { %v1661_v62 = vmax.f32 %v1653_v14, 0.0  ;;  %v1570_v58 = vadd.f32 %v1552_v42, %v1497_v37  ;;  %1883 = vmatpush.msra.mxu1 %v1872_v38  ;;  %v1867_v37 = vld [vmem:[#allocation4 + $0x1a8] sm:$0xff]  ;;  %v1864_v15 = vld [vmem:[#allocation4 + $0x190] sm:$0xff]  ;;  %v1134_v38 = vadd.f32 %v4759_v26, %v4775_v35  ;;  %v1862_v26 = vld [vmem:[#allocation4 + $0x180] sm:$0xff] }
 0x2b9   : > { %1944 = vmatpush.msra.mxu2 %v1917_v57  ;;  %1986 = vmatpush.msra.mxu3 %v1981_v45  ;;  %v1281_v57 = vadd.f32 %v4813_v20, %v1208_v24  ;;  %v2076_v24 = vld [vmem:[#allocation4 + $0x390] sm:$0xff] }
 0x2ba   : > { %v1668_v44 = vmax.f32 %v1660_v16, %v1661_v62  ;;  %v1352_v16 = vadd.f32 %v4793_v46, %v1279_v7  ;;  %1884 = vmatpush.msra.mxu1 %v1871_v21  ;;  %v1353_v46 = vadd.f32 %v4801_v53, %v1280_v54  ;;  %v1558_v53 = vpop.f32.mrf.mxu2  ;;  %v2085_v7 = vld [vmem:[#allocation4 + $0x3d8] sm:$0xff]  ;;  %v2083_v54 = vld [vmem:[#allocation4 + $0x3c8] sm:$0xff] }
 0x2bb   : > { %v1622_v40 = vpop.f32.mrf.mxu3  ;;  %1945 = vmatpush.msra.mxu2 %v1916_v28  ;;  %1987 = vmatpush.msra.mxu3 %v1980_v0  ;;  %v1973_v28 = vld [vmem:[#allocation4 + $0x2a8] sm:$0xff]  ;;  %v1354_v20 = vadd.f32 %v4809_v3, %v1281_v57  ;;  %v2082_v0 = vld [vmem:[#allocation4 + $0x3c0] sm:$0xff] }
 0x2bc   : > { %v1681_v4 = vrot.slane %v1668_v44, 7  ;;  %v1642_v25 = vadd.f32 %v1622_v40, %v1569_v9  ;;  %v1425_v2 = vadd.f32 %v4811_v12, %v1352_v16  ;;  %1885 = vmatpush.msra.mxu1 %v1870_v27  ;;  %v1426_v12 = vadd.f32 %v4817_v61, %v1353_v46  ;;  %v2087_v9 = vld [vmem:[#allocation4 + $0x3e8] sm:$0xff]  ;;  %v1866_v61 = vld [vmem:[#allocation4 + $0x1a0] sm:$0xff]  ;;  %v2080_v46 = vld [vmem:[#allocation4 + $0x3b0] sm:$0xff] }
 0x2bd   : > { %v1482_v18 = vpop.f32.mrf.mxu1  ;;  %1946 = vmatpush.msra.mxu2 %v1915_v33  ;;  %1988 = vmatpush.msra.mxu3 %v1979_v47  ;;  %v2029_v57 = vld [vmem:[#allocation4 + $0x340] sm:$0xff] }
 0x2be   : > { %v1689_v43 = vsel %vm731_vm0, 0.0, %v1681_v4  ;;  %v1693_v5 = vsel %vm731_vm0, %v1681_v4, 0.0  ;;  %3887 = vmatmul.msk.f32.vlgmr.msrb.gmra.mxu1 %vm4267_vm2, %v1681_v4  ;;  %3889 = vmatmul.msk.f32.gmra.mxu2 %vm4267_vm2, %v1681_v4  ;;  %v1654_v14 = vadd.f32 %v4846_v48, %v1642_v25  ;;  %v1498_v40 = vadd.f32 %v1482_v18, %v1425_v2  ;;  %v1978_v4 = vld [vmem:[#allocation4 + $0x2d0] sm:$0xff]  ;;  %v1971_v2 = vld [vmem:[#allocation4 + $0x298] sm:$0xff] }
 0x2bf   : > { %1698 = vst [vmem:[#allocation3 + $0x10] sm:$0xff] %v1689_v43  ;;  %2090 = vmatpush.msrb.mxu2 %v2089_v63  ;;  %1886 = vmatpush.msra.mxu1 %v1869_v6  ;;  %v1970_v63 = vld [vmem:[#allocation4 + $0x290] sm:$0xff] }
 0x2c0   : > { %1699 = vst [vmem:[#allocation3 + $0x18] sm:$0x3] %v1693_v5  ;;  %v1662_v31 = vmax.f32 %v1654_v14, 0.0  ;;  %1989 = vmatpush.msra.mxu3 %v1978_v4  ;;  %v1977_v5 = vld [vmem:[#allocation4 + $0x2c8] sm:$0xff]  ;;  %v1571_v25 = vadd.f32 %v1555_v30, %v1498_v40 }
 0x2c1   : > { %2091 = vmatpush.msrb.mxu2 %v2088_v34  ;;  %1887 = vmatpush.msra.mxu1 %v1868_v51  ;;  %v1863_v14 = vld [vmem:[#allocation4 + $0x188] sm:$0xff] }
 0x2c2   : > { %1990 = vmatpush.msra.mxu3 %v1977_v5  ;;  %v1561_v27 = vpop.f32.mrf.mxu2  ;;  %v2079_v34 = vld [vmem:[#allocation4 + $0x3a8] sm:$0xff] }
 0x2c3   : > { %v1625_v59 = vpop.f32.mrf.mxu3  ;;  %2092 = vmatpush.msrb.mxu2 %v2087_v9  ;;  %1888 = vmatpush.msra.mxu1 %v1867_v37  ;;  %v1969_v5 = vld [vmem:[#allocation4 + $0x288] sm:$0xff]  ;;  %v2033_v37 = vld [vmem:[#allocation4 + $0x360] sm:$0xff] }
 0x2c4   : > { %v1643_v23 = vadd.f32 %v1625_v59, %v1570_v58  ;;  %1991 = vmatpush.msra.mxu3 %v1976_v60  ;;  %v2084_v59 = vld [vmem:[#allocation4 + $0x3d0] sm:$0xff] }
 0x2c5   : > { %v1485_v42 = vpop.f32.mrf.mxu1  ;;  %1889 = vmatpush.msra.mxu1 %v1866_v61  ;;  %2093 = vmatpush.msrb.mxu2 %v2086_v39  ;;  %v2031_v60 = vld [vmem:[#allocation4 + $0x350] sm:$0xff] }
 0x2c6   : > { %v1655_v62 = vadd.f32 %v4846_v48, %v1643_v23  ;;  %v1499_v17 = vadd.f32 %v1485_v42, %v1426_v12  ;;  %1992 = vmatpush.msra.mxu3 %v1975_v55  ;;  %v1209_v23 = vadd.f32 %v4783_v41, %v1134_v38  ;;  %v1427_v41 = vadd.f32 %v4824_v50, %v1354_v20  ;;  %v2034_v50 = vld [vmem:[#allocation4 + $0x368] sm:$0xff]  ;;  %v2141_v39 = vld [vmem:[#allocation4 + $0x470] sm:$0xff] }
 0x2c7   : > { %1890 = vmatpush.msra.mxu1 %v1865_v52  ;;  %2094 = vmatpush.msrb.mxu2 %v2085_v7  ;;  %v2030_v52 = vld [vmem:[#allocation4 + $0x348] sm:$0xff]  ;;  %v4911_v38 = vld [vmem:[#allocation3 + $0x11] sm:$0xff] }
 0x2c8   : > { %v1663_v44 = vmax.f32 %v1655_v62, 0.0  ;;  %v1572_v30 = vadd.f32 %v1558_v53, %v1499_v17  ;;  %1993 = vmatpush.msra.mxu3 %v1974_v36  ;;  %v1282_v35 = vadd.f32 %v4819_v1, %v1209_v23  ;;  %v1972_v62 = vld [vmem:[#allocation4 + $0x2a0] sm:$0xff]  ;;  %v2035_v1 = vld [vmem:[#allocation4 + $0x370] sm:$0xff]  ;;  %v2032_v53 = vld [vmem:[#allocation4 + $0x358] sm:$0xff] }
 0x2c9   : > { %1891 = vmatpush.msra.mxu1 %v1864_v15  ;;  %2095 = vmatpush.msrb.mxu2 %v2084_v59  ;;  %v2077_v17 = vld [vmem:[#allocation4 + $0x398] sm:$0xff]  ;;  %v2140_v7 = vld [vmem:[#allocation4 + $0x468] sm:$0xff]  ;;  %v2074_v36 = vld [vmem:[#allocation4 + $0x380] sm:$0xff] }
 0x2ca   : > { %v1669_v8 = vmax.f32 %v1662_v31, %v1663_v44  ;;  %1994 = vmatpush.msra.mxu3 %v1973_v28  ;;  %v2036_v31 = vld [vmem:[#allocation4 + $0x378] sm:$0xff]  ;;  %v1355_v3 = vadd.f32 %v4815_v56, %v1282_v35  ;;  %v2026_v20 = vld [vmem:[#allocation4 + $0x328] sm:$0xff] }
 0x2cb   : > { %v1628_v10 = vpop.f32.mrf.mxu3  ;;  %1892 = vmatpush.msra.mxu1 %v1863_v14  ;;  %2096 = vmatpush.msrb.mxu2 %v2083_v54  ;;  %v2081_v44 = vld [vmem:[#allocation4 + $0x3b8] sm:$0xff]  ;;  %v2136_v54 = vld [vmem:[#allocation4 + $0x448] sm:$0xff] }
 0x2cc   : > { %v1682_v43 = vrot.slane %v1669_v8, 7  ;;  %v1644_v32 = vadd.f32 %v1628_v10, %v1571_v25  ;;  %1995 = vmatpush.msra.mxu3 %v1972_v62  ;;  %v1428_v4 = vadd.f32 %v4832_v11, %v1355_v3  ;;  %v2078_v11 = vld [vmem:[#allocation4 + $0x3a0] sm:$0xff]  ;;  %v2028_v14 = vld [vmem:[#allocation4 + $0x338] sm:$0xff] }
 0x2cd   : > { %v1488_v58 = vpop.f32.mrf.mxu1  ;;  %1893 = vmatpush.msra.mxu1 %v1862_v26  ;;  %2097 = vmatpush.msrb.mxu2 %v2082_v0  ;;  %v2138_v23 = vld [vmem:[#allocation4 + $0x458] sm:$0xff]  ;;  %v2135_v62 = vld [vmem:[#allocation4 + $0x440] sm:$0xff] }
 0x2ce   : > { %v1690_v18 = vsel %vm731_vm0, 0.0, %v1682_v43  ;;  %v1694_v49 = vsel %vm731_vm0, %v1682_v43, 0.0  ;;  %3891 = vmatmul.msk.f32.gmra.mxu1 %vm4267_vm2, %v1682_v43  ;;  %3893 = vmatmul.msk.f32.gmra.mxu2 %vm4267_vm2, %v1682_v43  ;;  %v1656_v45 = vadd.f32 %v4846_v48, %v1644_v32  ;;  %v1500_v47 = vadd.f32 %v1488_v58, %v1427_v41  ;;  %v2075_v58 = vld [vmem:[#allocation4 + $0x388] sm:$0xff]  ;;  %v2025_v0 = vld [vmem:[#allocation4 + $0x320] sm:$0xff]  ;;  %v2024_v41 = vld [vmem:[#allocation4 + $0x318] sm:$0xff] }
 0x2cf   : > { %1700 = vst [vmem:[#allocation3 + $0x20] sm:$0xff] %v1690_v18  ;;  %3895 = vmatmul.msk.f32.vlgmr.msrb.gmra.mxu3 %vm4267_vm2, %v1682_v43  ;;  %2037 = vmatpush.msrb.mxu1 %v2036_v31  ;;  %v1564_v18 = vpop.f32.mrf.mxu2  ;;  %v2132_v31 = vld [vmem:[#allocation4 + $0x428] sm:$0xff]  ;;  %v2021_v3 = vld [vmem:[#allocation4 + $0x300] sm:$0xff] }
 0x2d0   : > { %1701 = vst [vmem:[#allocation3 + $0x28] sm:$0x3] %v1694_v49  ;;  %v1664_v33 = vmax.f32 %v1656_v45, 0.0  ;;  %1996 = vmatpush.msra.mxu3 %v1971_v2  ;;  %2098 = vmatpush.msrb.mxu2 %v2081_v44  ;;  %v1573_v43 = vadd.f32 %v1561_v27, %v1500_v47  ;;  %v2142_v49 = vld [vmem:[#allocation4 + $0x478] sm:$0xff]  ;;  %v2023_v2 = vld [vmem:[#allocation4 + $0x310] sm:$0xff]  ;;  %v2022_v44 = vld [vmem:[#allocation4 + $0x308] sm:$0xff] }
 0x2d1   : > { %2038 = vmatpush.msrb.mxu1 %v2035_v1  ;;  %v2134_v27 = vld [vmem:[#allocation4 + $0x438] sm:$0xff]  ;;  %v2131_v1 = vld [vmem:[#allocation4 + $0x420] sm:$0xff] }
 0x2d2   : > { %1997 = vmatpush.msra.mxu3 %v1970_v63  ;;  %2099 = vmatpush.msrb.mxu2 %v2080_v46  ;;  %v2130_v47 = vld [vmem:[#allocation4 + $0x418] sm:$0xff]  ;;  %v2128_v46 = vld [vmem:[#allocation4 + $0x408] sm:$0xff] }
 0x2d3   : > { %v1631_v22 = vpop.f32.mrf.mxu3  ;;  %2039 = vmatpush.msrb.mxu1 %v2034_v50 }
 0x2d4   : > { %v1645_v21 = vadd.f32 %v1631_v22, %v1572_v30  ;;  %2100 = vmatpush.msrb.mxu2 %v2079_v34  ;;  %1998 = vmatpush.msra.mxu3 %v1969_v5  ;;  %v2139_v30 = vld [vmem:[#allocation4 + $0x460] sm:$0xff]  ;;  %v4939_v5 = vld [vmem:[%s5457_s9 + $0x8] sm:$0xff] }
 0x2d5   : > { %v1491_v40 = vpop.f32.mrf.mxu1  ;;  %2040 = vmatpush.msrb.mxu1 %v2033_v37 }
 0x2d6   : > { %v1657_v16 = vadd.f32 %v4846_v48, %v1645_v21  ;;  %v1501_v12 = vadd.f32 %v1491_v40, %v1428_v4  ;;  %2101 = vmatpush.msrb.mxu2 %v2078_v11  ;;  %1999 = vmatpush.msra.mxu3 %v1968_v19  ;;  %v2137_v21 = vld [vmem:[#allocation4 + $0x450] sm:$0xff]  ;;  %v2127_v40 = vld [vmem:[#allocation4 + $0x400] sm:$0xff] }
 0x2d7   : > { %2041 = vmatpush.msrb.mxu1 %v2032_v53  ;;  %v2071_v50 = vld [vmem:[#allocation3 + $0x22] sm:$0xff]  ;;  %v1967_v4 = vld [vmem:[#allocation3 + $0x51] sm:$0xff] }
 0x2d8   : > { %v1665_v42 = vmax.f32 %v1657_v16, 0.0  ;;  %v1574_v25 = vadd.f32 %v1564_v18, %v1501_v12  ;;  %2143 = vmatpush.msrb.mxu3 %v2142_v49  ;;  %2102 = vmatpush.msrb.mxu2 %v2077_v17  ;;  %v1912_v16 = vld [vmem:[#allocation3 + $0x21] sm:$0xff]  ;;  %v4925_v12 = vld [vmem:[%s5457_s9 + $0x18] sm:$0xff] }
 0x2d9   : > { %2042 = vmatpush.msrb.mxu1 %v2031_v60  ;;  %2382 = vmatpush.msrb.mxu0 %v4925_v12 }
 0x2da   : > { %v1670_v6 = vmax.f32 %v1664_v33, %v1665_v42  ;;  %2144 = vmatpush.msrb.mxu3 %v2141_v39  ;;  %2103 = vmatpush.msrb.mxu2 %v2076_v24  ;;  %v2133_v33 = vld [vmem:[#allocation4 + $0x430] sm:$0xff]  ;;  %v1858_v42 = vld [vmem:[#allocation3 + $0x1] sm:$0xff] }
 0x2db   : > { %v1634_v8 = vpop.f32.mrf.mxu3  ;;  %2043 = vmatpush.msrb.mxu1 %v2030_v52  ;;  %v2203_v52 = vld [vmem:[%s5455_s7 + $0x68] sm:$0xff] }
 0x2dc   : > { %v1683_v51 = vrot.slane %v1670_v6, 7  ;;  %v1646_v9 = vadd.f32 %v1634_v8, %v1573_v43  ;;  %2145 = vmatpush.msrb.mxu3 %v2140_v7  ;;  %2104 = vmatpush.msrb.mxu2 %v2075_v58  ;;  %v2129_v6 = vld [vmem:[#allocation4 + $0x410] sm:$0xff]  ;;  %v2202_v58 = vld [vmem:[%s5455_s7 + $0x60] sm:$0xff] }
 0x2dd   : > { %2044 = vmatpush.msrb.mxu1 %v2029_v57  ;;  %v2070_v8 = vld [vmem:[#allocation3 + $0x12] sm:$0xff] }
 0x2de   : > { %v1691_v10 = vsel %vm731_vm0, 0.0, %v1683_v51  ;;  %v1695_v56 = vsel %vm731_vm0, %v1683_v51, 0.0  ;;  %3897 = vmatmul.msk.f32.gmra.mxu1 %vm4267_vm2, %v1683_v51  ;;  %3899 = vmatmul.msk.f32.gmra.mxu2 %vm4267_vm2, %v1683_v51  ;;  %v1658_v32 = vadd.f32 %v4846_v48, %v1646_v9  ;;  %v4932_v43 = vld [vmem:[%s5457_s9 + $0x10] sm:$0xff]  ;;  %v4950_v9 = vld [vmem:[%s5457_s9] sm:$0xff]  ;;  %v2201_v57 = vld [vmem:[%s5455_s7 + $0x58] sm:$0xff] }
 0x2df   : > { %1702 = vst [vmem:[#allocation3 + $0x30] sm:$0xff] %v1691_v10  ;;  %3901 = vmatmul.msk.f32.gmra.mxu3 %vm4267_vm2, %v1683_v51  ;;  %2105 = vmatpush.msrb.mxu2 %v2074_v36  ;;  %v2017_v51 = vld [vmem:[#allocation3 + $0x2] sm:$0xff] }
 0x2e0   : > { %1703 = vst [vmem:[#allocation3 + $0x38] sm:$0x3] %v1695_v56  ;;  %v1666_v59 = vmax.f32 %v1658_v32, 0.0  ;;  %2146 = vmatpush.msrb.mxu3 %v2139_v30  ;;  %2045 = vmatpush.msrb.mxu1 %v2028_v14  ;;  %v2126_v56 = vld [vmem:[#allocation3 + $0x52] sm:$0xff]  ;;  %v2199_v36 = vld [vmem:[%s5455_s7 + $0x48] sm:$0xff] }
 0x2e1   : > { %2383 = vmatpush.msrb.mxu0 %v4932_v43  ;;  %v2205_v32 = vld [vmem:[%s5455_s7 + $0x78] sm:$0xff]  ;;  %v2200_v30 = vld [vmem:[%s5455_s7 + $0x50] sm:$0xff] }
 0x2e2   : > { %2147 = vmatpush.msrb.mxu3 %v2138_v23  ;;  %v2221_v23 = vld [vmem:[%s5455_s7 + $0xf8] sm:$0xff] }
 0x2e3   : > { %v1637_v61 = vpop.f32.mrf.mxu3  ;;  %2384 = vmatpush.msrb.mxu0 %v4939_v5 }
 0x2e4   : > { %v1647_v55 = vadd.f32 %v1637_v61, %v1574_v25  ;;  %2148 = vmatpush.msrb.mxu3 %v2137_v21  ;;  %v2220_v21 = vld [vmem:[%s5455_s7 + $0xf0] sm:$0xff] }
 0x2e5   : > { %2385 = vmatpush.msrb.mxu0 %v4950_v9 }
 0x2e6   : > { %v1659_v15 = vadd.f32 %v4846_v48, %v1647_v55  ;;  %1947 = vmatmul.f32.vlgmr.msra.gmra.mxu2 %v4911_v38  ;;  %v2027_v48 = vld [vmem:[#allocation4 + $0x330] sm:$0xff]  ;;  %2149 = vmatpush.msrb.mxu3 %v2136_v54  ;;  %v2219_v54 = vld [vmem:[%s5455_s7 + $0xe8] sm:$0xff] }
 0x2e7   : > { %2046 = vmatpush.msrb.mxu1 %v2027_v48  ;;  %v1913_v29 = vld [vmem:[#allocation3 + $0x31] sm:$0xff]  ;;  %v4941_v37 = vpop.f32.mrf.mxu2  ;;  %2658 = vmatpush.msra.mxu0 %v4925_v12 }
 0x2e8   : > { %v1667_v22 = vmax.f32 %v1659_v15, 0.0  ;;  %2150 = vmatpush.msrb.mxu3 %v2135_v62  ;;  %v2072_v34 = vld [vmem:[#allocation3 + $0x32] sm:$0xff]  ;;  %2246 = vmatpush.msra.mxu2 %v2221_v23 }
 0x2e9   : > { %2047 = vmatpush.msrb.mxu1 %v2026_v20  ;;  %2659 = vmatpush.msra.mxu0 %v4932_v43  ;;  %v2204_v55 = vld [vmem:[%s5455_s7 + $0x70] sm:$0xff] }
 0x2ea   : > { %v1671_v45 = vmax.f32 %v1666_v59, %v1667_v22  ;;  %2151 = vmatpush.msrb.mxu3 %v2134_v27  ;;  %v2198_v22 = vld [vmem:[%s5455_s7 + $0x40] sm:$0xff]  ;;  %2247 = vmatpush.msra.mxu2 %v2220_v21  ;;  %v2193_v27 = vld [vmem:[%s5455_s7 + $0x18] sm:$0xff] }
 0x2eb   : > { %2048 = vmatpush.msrb.mxu1 %v2025_v0  ;;  %2660 = vmatpush.msra.mxu0 %v4939_v5  ;;  %v2217_v0 = vld [vmem:[%s5455_s7 + $0xd8] sm:$0xff] }
 0x2ec   : > { %v1684_v28 = vrot.slane %v1671_v45, 7  ;;  %2152 = vmatpush.msrb.mxu3 %v2133_v33  ;;  %v2197_v45 = vld [vmem:[%s5455_s7 + $0x38] sm:$0xff]  ;;  %2248 = vmatpush.msra.mxu2 %v2219_v54  ;;  %v2192_v33 = vld [vmem:[%s5455_s7 + $0x10] sm:$0xff] }
 0x2ed   : > { %2049 = vmatpush.msrb.mxu1 %v2024_v41  ;;  %2661 = vmatpush.msra.mxu0 %v4950_v9  ;;  %v2216_v41 = vld [vmem:[%s5455_s7 + $0xd0] sm:$0xff] }
 0x2ee   : > { %v1692_v26 = vsel %vm731_vm0, 0.0, %v1684_v28  ;;  %v1696_v35 = vsel %vm731_vm0, %v1684_v28, 0.0  ;;  %3903 = vmatmul.msk.f32.gmra.mxu1 %vm4267_vm2, %v1684_v28  ;;  %3905 = vmatmul.msk.f32.gmra.mxu3 %vm4267_vm2, %v1684_v28  ;;  %v2196_v28 = vld [vmem:[%s5455_s7 + $0x30] sm:$0xff] }
 0x2ef   : > { %1704 = vst [vmem:[#allocation3 + $0x40] sm:$0xff] %v1692_v26  ;;  %1950 = vmatmul.f32.gmra.mxu2 %v1912_v16  ;;  %2050 = vmatpush.msrb.mxu1 %v2023_v2  ;;  %v2195_v26 = vld [vmem:[%s5455_s7 + $0x28] sm:$0xff] }
 0x2f0   : > { %1705 = vst [vmem:[#allocation3 + $0x48] sm:$0x3] %v1696_v35  ;;  %2153 = vmatpush.msrb.mxu3 %v2132_v31  ;;  %v2218_v35 = vld [vmem:[%s5455_s7 + $0xe0] sm:$0xff]  ;;  %v2215_v2 = vld [vmem:[%s5455_s7 + $0xc8] sm:$0xff] }
 0x2f1   : > { %2051 = vmatpush.msrb.mxu1 %v2022_v44  ;;  %2249 = vmatpush.msra.mxu2 %v2218_v35  ;;  %v2191_v31 = vld [vmem:[%s5455_s7 + $0x8] sm:$0xff] }
 0x2f2   : > { %2154 = vmatpush.msrb.mxu3 %v2131_v1  ;;  %v2190_v1 = vld [vmem:[%s5455_s7] sm:$0xff] }
 0x2f3   : > { %2052 = vmatpush.msrb.mxu1 %v2021_v3  ;;  %2250 = vmatpush.msra.mxu2 %v2217_v0 }
 0x2f4   : > { %2155 = vmatpush.msrb.mxu3 %v2130_v47  ;;  %v2213_v47 = vld [vmem:[%s5455_s7 + $0xb8] sm:$0xff] }
 0x2f5   : > { %2251 = vmatpush.msra.mxu2 %v2216_v41 }
 0x2f6   : > { %1850 = vmatmul.f32.gmra.mxu3 %v4821_v13  ;;  %1894 = vmatmul.f32.vlgmr.msra.gmra.mxu1 %v1858_v42 }
 0x2f7   : > { %1953 = vmatmul.f32.gmra.mxu2 %v1913_v29  ;;  %v1914_v63 = vld [vmem:[#allocation3 + $0x41] sm:$0xff]  ;;  %2156 = vmatpush.msrb.mxu3 %v2129_v6 }
 0x2f8   : > { %v2073_v10 = vld [vmem:[#allocation3 + $0x42] sm:$0xff]  ;;  %2226 = vmatpush.msra.mxu1 %v2205_v32  ;;  %2252 = vmatpush.msra.mxu2 %v2215_v2 }
 0x2f9   : > { %2157 = vmatpush.msrb.mxu3 %v2128_v46 }
 0x2fa   : > { %2227 = vmatpush.msra.mxu1 %v2204_v55 }
 0x2fb   : > { %2158 = vmatpush.msrb.mxu3 %v2127_v40  ;;  %v2211_v40 = vld [vmem:[%s5455_s7 + $0xa8] sm:$0xff] }
 0x2fc   : > { %2228 = vmatpush.msra.mxu1 %v2203_v52 }
 0x2fe   : > { %1897 = vmatmul.f32.gmra.mxu1 %v4911_v38  ;;  %2000 = vmatmul.f32.vlgmr.msra.gmra.mxu3 %v1912_v16 }
 0x2ff   : > { %1956 = vmatmul.f32.gmra.mxu2 %v1914_v63  ;;  %2318 = vmatpush.msra.mxu3 %v4925_v12 }
 0x300   : > { %2229 = vmatpush.msra.mxu1 %v2202_v58 }
 0x301   : > { %2319 = vmatpush.msra.mxu3 %v4932_v43 }
 0x302   : > { %2230 = vmatpush.msra.mxu1 %v2201_v57 }
 0x303   : > { %2320 = vmatpush.msra.mxu3 %v4939_v5 }
 0x304   : > { %2231 = vmatpush.msra.mxu1 %v2200_v30 }
 0x305   : > { %2321 = vmatpush.msra.mxu3 %v4950_v9 }
 0x306   : > { %1900 = vmatmul.f32.gmra.mxu1 %v1912_v16  ;;  %2003 = vmatmul.f32.gmra.mxu3 %v1913_v29  ;;  %v2194_v16 = vld [vmem:[%s5455_s7 + $0x20] sm:$0xff] }
 0x307   : > { %2106 = vmatmul.f32.vlgmr.msrb.gmra.mxu2 %v2070_v8  ;;  %2232 = vmatpush.msra.mxu1 %v2199_v36 }
 0x309   : > { %2233 = vmatpush.msra.mxu1 %v2198_v22 }
 0x30b   : > { %2234 = vmatpush.msra.mxu1 %v2197_v45 }
 0x30d   : > { %2235 = vmatpush.msra.mxu1 %v2196_v28 }
 0x30e   : > { %1903 = vmatmul.f32.gmra.mxu1 %v1913_v29  ;;  %2006 = vmatmul.f32.gmra.mxu3 %v1914_v63  ;;  %v2214_v29 = vld [vmem:[%s5455_s7 + $0xc0] sm:$0xff]  ;;  %v2212_v63 = vld [vmem:[%s5455_s7 + $0xb0] sm:$0xff] }
 0x30f   : > { %2109 = vmatmul.f32.gmra.mxu2 %v2071_v50  ;;  %2236 = vmatpush.msra.mxu1 %v2195_v26 }
 0x310   : > { %2253 = vmatpush.msra.mxu2 %v2214_v29 }
 0x311   : > { %2237 = vmatpush.msra.mxu1 %v2194_v16 }
 0x312   : > { %2254 = vmatpush.msra.mxu2 %v2213_v47 }
 0x313   : > { %2238 = vmatpush.msra.mxu1 %v2193_v27 }
 0x314   : > { %2255 = vmatpush.msra.mxu2 %v2212_v63 }
 0x315   : > { %2239 = vmatpush.msra.mxu1 %v2192_v33 }
 0x316   : > { %2009 = vmatmul.f32.gmra.mxu3 %v1967_v4  ;;  %2053 = vmatmul.f32.vlgmr.msrb.gmra.mxu1 %v2017_v51 }
 0x317   : > { %2112 = vmatmul.f32.gmra.mxu2 %v2072_v34  ;;  %2240 = vmatpush.msra.mxu1 %v2191_v31 }
 0x318   : > { %2256 = vmatpush.msra.mxu2 %v2211_v40 }
 0x319   : > { %2241 = vmatpush.msra.mxu1 %v2190_v1 }
 0x31b   : > { %2451 = vmatpush.msrb.mxu1 %v4925_v12 }
 0x31d   : > { %2452 = vmatpush.msrb.mxu1 %v4932_v43 }
 0x31e   : > { %2056 = vmatmul.f32.gmra.mxu1 %v2070_v8  ;;  %2159 = vmatmul.f32.vlgmr.msrb.gmra.mxu3 %v2071_v50  ;;  %v2210_v8 = vld [vmem:[%s5455_s7 + $0xa0] sm:$0xff] }
 0x31f   : > { %2115 = vmatmul.f32.gmra.mxu2 %v2073_v10  ;;  %2589 = vmatpush.msrb.mxu3 %v4925_v12 }
 0x320   : > { %2453 = vmatpush.msrb.mxu1 %v4939_v5  ;;  %2257 = vmatpush.msra.mxu2 %v2210_v8 }
 0x321   : > { %2590 = vmatpush.msrb.mxu3 %v4932_v43 }
 0x322   : > { %2454 = vmatpush.msrb.mxu1 %v4950_v9 }
 0x323   : > { %2591 = vmatpush.msrb.mxu3 %v4939_v5 }
 0x325   : > { %2592 = vmatpush.msrb.mxu3 %v4950_v9 }
 0x326   : > { %2059 = vmatmul.f32.gmra.mxu1 %v2071_v50  ;;  %2162 = vmatmul.f32.gmra.mxu3 %v2072_v34 }
 0x32e   : > { %2062 = vmatmul.f32.gmra.mxu1 %v2072_v34  ;;  %2165 = vmatmul.f32.gmra.mxu3 %v2073_v10 }
 0x336   : > { %2168 = vmatmul.f32.gmra.mxu3 %v2126_v56  ;;  %v2209_v56 = vld [vmem:[%s5455_s7 + $0x98] sm:$0xff] }
 0x337   : > { %2258 = vmatpush.msra.mxu2 %v2209_v56 }
 0x33b   : > { %v4945_v11 = vpop.f32.mrf.mxu1 }
 0x33c   : > { %v1793_v6 = vadd.f32 %v4941_v37, %v4945_v11 }
 0x33e   : > { %2322 = vmatmul.f32.vlgmr.msra.gmra.mxu3 %v4821_v13 }
 0x341   : > { %v4956_v19 = vpop.f32.mrf.mxu2 }
 0x34b   : > { %v4962_v53 = vpop.f32.mrf.mxu1 }
 0x34c   : > { %v1796_v50 = vadd.f32 %v4956_v19, %v4962_v53  ;;  %v2208_v53 = vld [vmem:[%s5455_s7 + $0x90] sm:$0xff] }
 0x34d   : > { %2259 = vmatpush.msra.mxu2 %v2208_v53 }
 0x351   : > { %v4967_v13 = vpop.f32.mrf.mxu2 }
 0x352   : > { %v4969_v18 = vpop.f32.mrf.mxu3 }
 0x353   : > { %v1854_v46 = vadd.f32 %v4969_v18, %v1793_v6 }
 0x35b   : > { %v4971_v49 = vpop.f32.mrf.mxu1 }
 0x361   : > { %v4973_v17 = vpop.f32.mrf.mxu2 }
 0x362   : > { %v4975_v25 = vpop.f32.mrf.mxu3 }
 0x363   : > { %v1855_v10 = vadd.f32 %v4975_v25, %v1796_v50  ;;  %v2207_v25 = vld [vmem:[%s5455_s7 + $0x88] sm:$0xff] }
 0x364   : > { %2260 = vmatpush.msra.mxu2 %v2207_v25 }
 0x369   : > { %v4979_v61 = vpop.f32.mrf.mxu2 }
 0x36b   : > { %v4977_v60 = vpop.f32.mrf.mxu1 }
 0x36c   : > { %v1802_v23 = vadd.f32 %v4973_v17, %v4977_v60 }
 0x371   : > { %v4981_v39 = vpop.f32.mrf.mxu3 }
 0x372   : > { %v4999_v15 = vpop.f32.mrf.mxu2 }
 0x373   : > { %v4983_v24 = vpop.f32.mrf.mxu1 }
 0x374   : > { %v1907_v4 = vadd.f32 %v4983_v24, %v1854_v46  ;;  %v5143_v46 = vld [vmem:[%s5458_s10] sm:$0x1] }
 0x376   : > { %v1960_v11 = vadd.f32 %v4979_v61, %v1907_v4  ;;  %v2206_v61 = vld [vmem:[%s5455_s7 + $0x80] sm:$0xff] }
 0x377   : > { %2261 = vmatpush.msra.mxu2 %v2206_v61 }
 0x379   : > { %v4994_v7 = vpop.f32.mrf.mxu3  ;;  %2520 = vmatpush.msrb.mxu2 %v4925_v12 }
 0x37a   : > { %v5025_v48 = vpop.f32.mrf.mxu2  ;;  %v1857_v21 = vadd.f32 %v4994_v7, %v1802_v23 }
 0x37b   : > { %v5001_v38 = vpop.f32.mrf.mxu1  ;;  %2521 = vmatpush.msrb.mxu2 %v4932_v43 }
 0x37c   : > { %v1908_v37 = vadd.f32 %v5001_v38, %v1855_v10  ;;  %v1799_v38 = vadd.f32 %v4967_v13, %v4971_v49 }
 0x37d   : > { %2522 = vmatpush.msrb.mxu2 %v4939_v5 }
 0x37e   : > { %v1961_v24 = vadd.f32 %v4999_v15, %v1908_v37  ;;  %v1856_v15 = vadd.f32 %v4981_v39, %v1799_v38 }
 0x37f   : > { %2523 = vmatpush.msrb.mxu2 %v4950_v9 }
 0x381   : > { %v5012_v59 = vpop.f32.mrf.mxu3 }
 0x382   : > { %v5059_v42 = vpop.f32.mrf.mxu2  ;;  %v2013_v18 = vadd.f32 %v5012_v59, %v1960_v11  ;;  %v3736_v59 = vld [vmem:[%s5454_s6] ss:$0 sm:$0xff] }
 0x383   : > { %v5017_v14 = vpop.f32.mrf.mxu1 }
 0x384   : > { %v1909_v45 = vadd.f32 %v5017_v14, %v1856_v15 }
 0x386   : > { %v1962_v26 = vadd.f32 %v5025_v48, %v1909_v45 }
 0x389   : > { %v2004_v20 = vpop.f32.mrf.mxu3 }
 0x38a   : > { %v2107_v51 = vpop.f32.mrf.mxu2  ;;  %v2014_v52 = vadd.f32 %v2004_v20, %v1961_v24 }
 0x38b   : > { %v5045_v62 = vpop.f32.mrf.mxu1 }
 0x38c   : > { %v1910_v54 = vadd.f32 %v5045_v62, %v1857_v21 }
 0x38e   : > { %v1963_v60 = vadd.f32 %v5059_v42, %v1910_v54 }
 0x391   : > { %v5070_v44 = vpop.f32.mrf.mxu3 }
 0x392   : > { %v2110_v58 = vpop.f32.mrf.mxu2  ;;  %v2015_v16 = vadd.f32 %v5070_v44, %v1962_v26 }
 0x393   : > { %v2054_v3 = vpop.f32.mrf.mxu1 }
 0x394   : > { %v2066_v32 = vadd.f32 %v2054_v3, %v2013_v18 }
 0x396   : > { %v2119_v30 = vadd.f32 %v2107_v51, %v2066_v32 }
 0x399   : > { %v2010_v34 = vpop.f32.mrf.mxu3 }
 0x39a   : > { %v2113_v20 = vpop.f32.mrf.mxu2  ;;  %v2016_v2 = vadd.f32 %v2010_v34, %v1963_v60 }
 0x39b   : > { %v2057_v19 = vpop.f32.mrf.mxu1 }
 0x39c   : > { %v2067_v57 = vadd.f32 %v2057_v19, %v2014_v52 }
 0x39e   : > { %v2120_v13 = vadd.f32 %v2110_v58, %v2067_v57 }
 0x3a1   : > { %v2160_v55 = vpop.f32.mrf.mxu3 }
 0x3a2   : > { %v2172_v36 = vadd.f32 %v2160_v55, %v2119_v30  ;;  %v2116_v31 = vpop.f32.mrf.mxu2 }
 0x3a3   : > { %v2060_v22 = vpop.f32.mrf.mxu1 }
 0x3a4   : > { %v2180_v39 = vadd.f32 %v3736_v59, %v2172_v36  ;;  %v2068_v14 = vadd.f32 %v2060_v22, %v2015_v16 }
 0x3a6   : > { %v2184_v0 = vmax.f32 %v2180_v39, 0.0  ;;  %v2121_v62 = vadd.f32 %v2113_v20, %v2068_v14 }
 0x3a9   : > { %v2163_v49 = vpop.f32.mrf.mxu3 }
 0x3aa   : > { %v2173_v28 = vadd.f32 %v2163_v49, %v2120_v13 }
 0x3ab   : > { %v2063_v41 = vpop.f32.mrf.mxu1 }
 0x3ac   : > { %v2181_v35 = vadd.f32 %v3736_v59, %v2173_v28  ;;  %v2069_v7 = vadd.f32 %v2063_v41, %v2016_v2 }
 0x3ae   : > { %v2185_v17 = vmax.f32 %v2181_v35, 0.0  ;;  %v2122_v29 = vadd.f32 %v2116_v31, %v2069_v7 }
 0x3b0   : > { %v2188_v27 = vmax.f32 %v2184_v0, %v2185_v17 }
 0x3b1   : > { %v2166_v33 = vpop.f32.mrf.mxu3 }
 0x3b2   : > { %2242 = vmatmul.f32.vlgmr.msra.gmra.mxu1 %v2188_v27  ;;  %v2174_v48 = vadd.f32 %v2166_v33, %v2121_v62 }
 0x3b3   : > { %2727 = vmatpush.msra.mxu1 %v4925_v12 }
 0x3b4   : > { %v2182_v42 = vadd.f32 %v3736_v59, %v2174_v48 }
 0x3b5   : > { %2728 = vmatpush.msra.mxu1 %v4932_v43 }
 0x3b6   : > { %v2186_v47 = vmax.f32 %v2182_v42, 0.0 }
 0x3b7   : > { %2729 = vmatpush.msra.mxu1 %v4939_v5 }
 0x3b9   : > { %v2169_v44 = vpop.f32.mrf.mxu3  ;;  %2730 = vmatpush.msra.mxu1 %v4950_v9 }
 0x3ba   : > { %v2175_v1 = vadd.f32 %v2169_v44, %v2122_v29 }
 0x3bc   : > { %v2183_v3 = vadd.f32 %v3736_v59, %v2175_v1 }
 0x3be   : > { %v2187_v6 = vmax.f32 %v2183_v3, 0.0 }
 0x3c0   : > { %v2189_v63 = vmax.f32 %v2186_v47, %v2187_v6 }
 0x3c1   : > { %v2323_v40 = vpop.f32.mrf.mxu3 }
 0x3c2   : > { %2262 = vmatmul.f32.vlgmr.msra.gmra.mxu2 %v2189_v63  ;;  %v2324_v8 = vadd.f32 %v2323_v40, %v5143_v46 }
 0x3c3   : > { %2796 = vmatpush.msra.mxu2 %v4925_v12  ;;  %v3737_v12 = vld [vmem:[%s5456_s8] ss:$0 sm:$0xff] }
 0x3c4   : > { %2347 = vrot.lane.b32.xlu0 %v2324_v8, %s3952_s1 }
 0x3c5   : > { %2797 = vmatpush.msra.mxu2 %v4932_v43 }
 0x3c7   : > { %2798 = vmatpush.msra.mxu2 %v4939_v5 }
 0x3c9   : > { %2799 = vmatpush.msra.mxu2 %v4950_v9 }
 0x42f   : > { %v2243_v43 = vpop.f32.mrf.mxu1 }
 0x430   : > { %v2244_v50 = vadd.f32 %v3737_v12, %v2243_v43 }
 0x436   : > { %v2348_v49 = vpop.permute.xlu0 %2347 }
 0x445   : > { %v2263_v5 = vpop.f32.mrf.mxu2 }
 0x446   : > { %v2264_v4 = vadd.f32 %v2263_v5, %v2244_v50 }
 0x448   : > { %v2267_v9 = vrot.slane %v2264_v4, 7  ;;  %v2269_v51 = vrot.slane %v2264_v4, 5  ;;  %v2271_v34 = vrot.slane %v2264_v4, 3  ;;  %v2273_v10 = vrot.slane %v2264_v4, 1 }
 0x44a   : > { %v2275_v56 = vsel %vm731_vm0, %v2267_v9, %v2269_v51 }
 0x44b   : > { %v2277_v37 = vsel %vm2276_vm3, %v2275_v56, %v2271_v34 }
 0x44c   : > { %v2279_v11 = vsel %vm2278_vm4, %v2277_v37, %v2273_v10 }
 0x44d   : > { %v2281_v19 = vsel %vm2280_vm5, %v2279_v11, %v2267_v9 }
 0x44e   : > { %v2283_v53 = vsel %vm2282_vm6, %v2281_v19, %v2269_v51 }
 0x44f   : > { %v2285_v18 = vsel %vm2284_vm7, %v2283_v53, %v2271_v34 }
 0x450   : > { %v2287_v25 = vsel %vm2286_vm8, %v2285_v18, %v2273_v10 }
 0x451   : > { %v2289_v24 = vsel %vm2288_vm9, %v2264_v4, %v2287_v25 }
 0x452   : > { %v2291_v32 = vsel %vm2290_vm10, %v2289_v24, %v2264_v4 }
 0x453   : > { %v2293_v61 = vsel %vm2292_vm11, %v2291_v32, %v2287_v25 }
 0x454   : > { %v2295_v55 = vsel %vm2294_vm12, %v2293_v61, %v2264_v4 }
 0x455   : > { %v5162_v52 = vsel %vm2296_vm13, %v2295_v55, %v2287_v25 }
 0x456   : > { %v2326_v58 = vadd.f32 %v2324_v8, %v5162_v52 }
 0x458   : > { %v3674_v38 = vmul.f32 -1.442695, %v2326_v58 }
 0x45a   : > { %3740 = vpow2.f32 %v3674_v38 }
 0x460   : > { %v3741_v57 = vpop.eup %3740 }
 0x461   : > { %v2330_v30 = vadd.f32 1.0, %v3741_v57 }
 0x463   : > { %3742 = vrcp.f32 %v2330_v30  ;;  %v2342_v22 = vand.u32 2147483648, %v2330_v30  ;;  %v2340_v45 = vand.u32 2147483647, %v2330_v30  ;;  %vm2336_vm15 = vweird.f32 %v2330_v30 }
 0x465   : > { %v2343_v21 = vor.u32 1.1754944e-38, %v2342_v22  ;;  %vm2341_vm2 = vcmp.eq.f32.partialorder %v2340_v45, 8.507059e+37 }
 0x469   : > { %v3743_v15 = vpop.eup %3742 }
 0x46a   : > { %v2332_v36 = vmul.f32 %v3743_v15, %v2330_v30  ;;  %vm2337_vm14 = vweird.f32 %v3743_v15 }
 0x46b   : > { %vm2338_vm1 = vmor %vm2336_vm15, %vm2337_vm14 }
 0x46c   : > { %v2333_v59 = vsub.f32 1.0, %v2332_v36 }
 0x46e   : > { %v2334_v23 = vmul.f32 %v3743_v15, %v2333_v59 }
 0x470   : > { %v2335_v13 = vadd.f32 %v3743_v15, %v2334_v23 }
 0x472   : > { %v2339_v39 = vsel %vm2338_vm1, %v3743_v15, %v2335_v13 }
 0x473   : > { %v2344_v28 = vsel %vm2341_vm2, %v2343_v21, %v2339_v39 }
 0x474   : > { %v2350_v54 = vmul.f32 %v2348_v49, %v2344_v28  ;;  %v2357_v16 = vsub.f32 1.0, %v2344_v28  ;;  %v2363_v17 = vmul.f32 0.0, %v2344_v28 }
 0x476   : > { %2352 = vrot.lane.b32.xlu0 %v2350_v54, %s3952_s1 }
 0x4e8   : > { %v2353_v26 = vpop.permute.xlu0 %2352 }
 0x4e9   : > { %v2355_v35 = vadd.f32 %v2353_v26, %v5162_v52 }
 0x4eb   : > { %3744 = vtanh.f32 %v2355_v35 }
 0x4f1   : > { %v3745_v20 = vpop.eup %3744 }
 0x4f2   : > { %2359 = vrot.lane.b32.xlu1 %v3745_v20, %s3953_s23 }
 0x564   : > { %v2360_v0 = vpop.permute.xlu1 %2359 }
 0x565   : > { %v2362_v60 = vmul.f32 %v2360_v0, %v2357_v16 }
 0x567   : > { %v5168_v14 = vadd.f32 %v2363_v17, %v2362_v60 }
 0x569   : > { %2366 = vrot.lane.b32.xlu1 %v5168_v14, %s3953_s23  ;;  %v2429_v51 = vrot.slane %v5168_v14, 7 }
 0x5db   : > { %v2367_v27 = vpop.permute.xlu1 %2366 }
 0x5dc   : > { %3675 = vmatmul.msk.f32.vlgmr.msrb.gmra.mxu0 %vm2290_vm10, %v2367_v27 }
 0x659   : > { %v2387_v41 = vpop.f32.mrf.mxu0 }
 0x65a   : > { %v2388_v33 = vadd.f32 %v2387_v41, %v5143_v46 }
 0x65c   : > { %v2391_v2 = vrot.slane %v2388_v33, 7 }
 0x65e   : > { %2413 = vrot.lane.b32.xlu2 %v2391_v2, %s3952_s1  ;;  %v2393_v7 = vadd.f32 %v2391_v2, %v5162_v52 }
 0x660   : > { %v3676_v62 = vmul.f32 -1.442695, %v2393_v7 }
 0x662   : > { %3746 = vpow2.f32 %v3676_v62 }
 0x668   : > { %v3747_v48 = vpop.eup %3746 }
 0x669   : > { %v2397_v31 = vadd.f32 1.0, %v3747_v48 }
 0x66b   : > { %3748 = vrcp.f32 %v2397_v31  ;;  %v2409_v47 = vand.u32 2147483648, %v2397_v31  ;;  %vm2403_vm15 = vweird.f32 %v2397_v31  ;;  %v2407_v6 = vand.u32 2147483647, %v2397_v31 }
 0x66d   : > { %v2410_v40 = vor.u32 1.1754944e-38, %v2409_v47  ;;  %vm2408_vm2 = vcmp.eq.f32.partialorder %v2407_v6, 8.507059e+37 }
 0x671   : > { %v3749_v29 = vpop.eup %3748 }
 0x672   : > { %v2399_v44 = vmul.f32 %v3749_v29, %v2397_v31  ;;  %vm2404_vm14 = vweird.f32 %v3749_v29 }
 0x673   : > { %vm2405_vm1 = vmor %vm2403_vm15, %vm2404_vm14 }
 0x674   : > { %v2400_v42 = vsub.f32 1.0, %v2399_v44 }
 0x676   : > { %v2401_v1 = vmul.f32 %v3749_v29, %v2400_v42 }
 0x678   : > { %v2402_v3 = vadd.f32 %v3749_v29, %v2401_v1 }
 0x67a   : > { %v2406_v63 = vsel %vm2405_vm1, %v3749_v29, %v2402_v3 }
 0x67b   : > { %v2411_v12 = vsel %vm2408_vm2, %v2410_v40, %v2406_v63 }
 0x67c   : > { %v2423_v9 = vsub.f32 1.0, %v2411_v12  ;;  %v2431_v56 = vmul.f32 %v2429_v51, %v2411_v12 }
 0x6b8   : > { %v2414_v8 = vpop.permute.xlu2 %2413 }
 0x6b9   : > { %v2416_v43 = vmul.f32 %v2414_v8, %v2411_v12 }
 0x6bb   : > { %2418 = vrot.lane.b32.xlu2 %v2416_v43, %s3952_s1 }
 0x715   : > { %v2419_v50 = vpop.permute.xlu2 %2418 }
 0x716   : > { %v2421_v5 = vadd.f32 %v2419_v50, %v5162_v52 }
 0x718   : > { %3750 = vtanh.f32 %v2421_v5 }
 0x71e   : > { %v3751_v4 = vpop.eup %3750 }
 0x71f   : > { %2425 = vrot.lane.b32.xlu0 %v3751_v4, %s3953_s23 }
 0x791   : > { %v2426_v34 = vpop.permute.xlu0 %2425 }
 0x792   : > { %v2428_v10 = vmul.f32 %v2426_v34, %v2423_v9 }
 0x794   : > { %v2432_v37 = vadd.f32 %v2431_v56, %v2428_v10 }
 0x796   : > { %v2434_v11 = vrot.slane %v2432_v37, 1  ;;  %v2498_v45 = vrot.slane %v2432_v37, 7  ;;  %v2847_v17 = vsel %vm731_vm0, %v5168_v14, %v2432_v37 }
 0x798   : > { %2435 = vrot.lane.b32.xlu1 %v2434_v11, %s3953_s23 }
 0x80a   : > { %v2436_v19 = vpop.permute.xlu1 %2435 }
 0x80b   : > { %3677 = vmatmul.msk.f32.vlgmr.msrb.gmra.mxu1 %vm2290_vm10, %v2436_v19 }
 0x888   : > { %v2456_v53 = vpop.f32.mrf.mxu1 }
 0x889   : > { %v2457_v18 = vadd.f32 %v2456_v53, %v5143_v46 }
 0x88b   : > { %v2460_v25 = vrot.slane %v2457_v18, 6 }
 0x88d   : > { %v2462_v24 = vadd.f32 %v2460_v25, %v5162_v52  ;;  %2482 = vrot.lane.b32.xlu2 %v2460_v25, %s3952_s1 }
 0x88f   : > { %v3678_v32 = vmul.f32 -1.442695, %v2462_v24 }
 0x891   : > { %3752 = vpow2.f32 %v3678_v32 }
 0x897   : > { %v3753_v61 = vpop.eup %3752 }
 0x898   : > { %v2466_v55 = vadd.f32 1.0, %v3753_v61 }
 0x89a   : > { %3754 = vrcp.f32 %v2466_v55  ;;  %v2478_v30 = vand.u32 2147483648, %v2466_v55  ;;  %v2476_v36 = vand.u32 2147483647, %v2466_v55  ;;  %vm2472_vm15 = vweird.f32 %v2466_v55 }
 0x89c   : > { %v2479_v22 = vor.u32 1.1754944e-38, %v2478_v30  ;;  %vm2477_vm2 = vcmp.eq.f32.partialorder %v2476_v36, 8.507059e+37 }
 0x8a0   : > { %v3755_v58 = vpop.eup %3754 }
 0x8a1   : > { %v2468_v38 = vmul.f32 %v3755_v58, %v2466_v55  ;;  %vm2473_vm14 = vweird.f32 %v3755_v58 }
 0x8a2   : > { %vm2474_vm1 = vmor %vm2472_vm15, %vm2473_vm14 }
 0x8a3   : > { %v2469_v57 = vsub.f32 1.0, %v2468_v38 }
 0x8a5   : > { %v2470_v15 = vmul.f32 %v3755_v58, %v2469_v57 }
 0x8a7   : > { %v2471_v59 = vadd.f32 %v3755_v58, %v2470_v15 }
 0x8a9   : > { %v2475_v23 = vsel %vm2474_vm1, %v3755_v58, %v2471_v59 }
 0x8aa   : > { %v2480_v13 = vsel %vm2477_vm2, %v2479_v22, %v2475_v23 }
 0x8ab   : > { %v2500_v49 = vmul.f32 %v2498_v45, %v2480_v13  ;;  %v2492_v35 = vsub.f32 1.0, %v2480_v13 }
 0x8e7   : > { %v2483_v21 = vpop.permute.xlu2 %2482 }
 0x8e8   : > { %v2485_v39 = vmul.f32 %v2483_v21, %v2480_v13 }
 0x8ea   : > { %2487 = vrot.lane.b32.xlu0 %v2485_v39, %s3952_s1 }
 0x95c   : > { %v2488_v28 = vpop.permute.xlu0 %2487 }
 0x95d   : > { %v2490_v54 = vadd.f32 %v2488_v28, %v5162_v52 }
 0x95f   : > { %3756 = vtanh.f32 %v2490_v54 }
 0x965   : > { %v3757_v26 = vpop.eup %3756 }
 0x966   : > { %2494 = vrot.lane.b32.xlu1 %v3757_v26, %s3953_s23 }
 0x9d8   : > { %v2495_v20 = vpop.permute.xlu1 %2494 }
 0x9d9   : > { %v2497_v16 = vmul.f32 %v2495_v20, %v2492_v35 }
 0x9db   : > { %v2501_v0 = vadd.f32 %v2500_v49, %v2497_v16 }
 0x9dd   : > { %v2848_v60 = vsel %vm2276_vm3, %v2847_v17, %v2501_v0  ;;  %v2503_v27 = vrot.slane %v2501_v0, 2  ;;  %v2567_v51 = vrot.slane %v2501_v0, 7 }
 0x9df   : > { %2504 = vrot.lane.b32.xlu2 %v2503_v27, %s3953_s23 }
 0xa39   : > { %v2505_v41 = vpop.permute.xlu2 %2504 }
 0xa3a   : > { %3679 = vmatmul.msk.f32.vlgmr.msrb.gmra.mxu2 %vm2290_vm10, %v2505_v41 }
 0xabd   : > { %v2525_v33 = vpop.f32.mrf.mxu2 }
 0xabe   : > { %v2526_v2 = vadd.f32 %v2525_v33, %v5143_v46 }
 0xac0   : > { %v2529_v7 = vrot.slane %v2526_v2, 5 }
 0xac2   : > { %2551 = vrot.lane.b32.xlu0 %v2529_v7, %s3952_s1  ;;  %v2531_v62 = vadd.f32 %v2529_v7, %v5162_v52 }
 0xac4   : > { %v3680_v48 = vmul.f32 -1.442695, %v2531_v62 }
 0xac6   : > { %3758 = vpow2.f32 %v3680_v48 }
 0xacc   : > { %v3759_v31 = vpop.eup %3758 }
 0xacd   : > { %v2535_v14 = vadd.f32 1.0, %v3759_v31 }
 0xacf   : > { %3760 = vrcp.f32 %v2535_v14  ;;  %v2547_v47 = vand.u32 2147483648, %v2535_v14  ;;  %vm2541_vm15 = vweird.f32 %v2535_v14  ;;  %v2545_v6 = vand.u32 2147483647, %v2535_v14 }
 0xad1   : > { %v2548_v40 = vor.u32 1.1754944e-38, %v2547_v47  ;;  %vm2546_vm2 = vcmp.eq.f32.partialorder %v2545_v6, 8.507059e+37 }
 0xad5   : > { %v3761_v29 = vpop.eup %3760 }
 0xad6   : > { %v2537_v44 = vmul.f32 %v3761_v29, %v2535_v14  ;;  %vm2542_vm14 = vweird.f32 %v3761_v29 }
 0xad7   : > { %vm2543_vm1 = vmor %vm2541_vm15, %vm2542_vm14 }
 0xad8   : > { %v2538_v42 = vsub.f32 1.0, %v2537_v44 }
 0xada   : > { %v2539_v1 = vmul.f32 %v3761_v29, %v2538_v42 }
 0xadc   : > { %v2540_v3 = vadd.f32 %v3761_v29, %v2539_v1 }
 0xade   : > { %v2544_v63 = vsel %vm2543_vm1, %v3761_v29, %v2540_v3 }
 0xadf   : > { %v2549_v12 = vsel %vm2546_vm2, %v2548_v40, %v2544_v63 }
 0xae0   : > { %v2561_v9 = vsub.f32 1.0, %v2549_v12  ;;  %v2569_v10 = vmul.f32 %v2567_v51, %v2549_v12 }
 0xb34   : > { %v2552_v8 = vpop.permute.xlu0 %2551 }
 0xb35   : > { %v2554_v43 = vmul.f32 %v2552_v8, %v2549_v12 }
 0xb37   : > { %2556 = vrot.lane.b32.xlu1 %v2554_v43, %s3952_s1 }
 0xba9   : > { %v2557_v50 = vpop.permute.xlu1 %2556 }
 0xbaa   : > { %v2559_v5 = vadd.f32 %v2557_v50, %v5162_v52 }
 0xbac   : > { %3762 = vtanh.f32 %v2559_v5 }
 0xbb2   : > { %v3763_v4 = vpop.eup %3762 }
 0xbb3   : > { %2563 = vrot.lane.b32.xlu2 %v3763_v4, %s3953_s23 }
 0xc0d   : > { %v2564_v34 = vpop.permute.xlu2 %2563 }
 0xc0e   : > { %v2566_v56 = vmul.f32 %v2564_v34, %v2561_v9 }
 0xc10   : > { %v2570_v37 = vadd.f32 %v2569_v10, %v2566_v56 }
 0xc12   : > { %v2849_v11 = vsel %vm2278_vm4, %v2848_v60, %v2570_v37  ;;  %v2572_v19 = vrot.slane %v2570_v37, 3  ;;  %v2636_v35 = vrot.slane %v2570_v37, 7 }
 0xc14   : > { %2573 = vrot.lane.b32.xlu0 %v2572_v19, %s3953_s23 }
 0xc86   : > { %v2574_v53 = vpop.permute.xlu0 %2573 }
 0xc87   : > { %3681 = vmatmul.msk.f32.vlgmr.msrb.gmra.mxu3 %vm2290_vm10, %v2574_v53 }
 0xd0a   : > { %v2594_v18 = vpop.f32.mrf.mxu3 }
 0xd0b   : > { %v2595_v25 = vadd.f32 %v2594_v18, %v5143_v46 }
 0xd0d   : > { %v2598_v24 = vrot.slane %v2595_v25, 4 }
 0xd0f   : > { %2620 = vrot.lane.b32.xlu1 %v2598_v24, %s3952_s1  ;;  %v2600_v32 = vadd.f32 %v2598_v24, %v5162_v52 }
 0xd11   : > { %v3682_v61 = vmul.f32 -1.442695, %v2600_v32 }
 0xd13   : > { %3764 = vpow2.f32 %v3682_v61 }
 0xd19   : > { %v3765_v55 = vpop.eup %3764 }
 0xd1a   : > { %v2604_v58 = vadd.f32 1.0, %v3765_v55 }
 0xd1c   : > { %3766 = vrcp.f32 %v2604_v58  ;;  %v2616_v59 = vand.u32 2147483648, %v2604_v58  ;;  %vm2610_vm15 = vweird.f32 %v2604_v58  ;;  %v2614_v22 = vand.u32 2147483647, %v2604_v58 }
 0xd1e   : > { %v2617_v45 = vor.u32 1.1754944e-38, %v2616_v59  ;;  %vm2615_vm2 = vcmp.eq.f32.partialorder %v2614_v22, 8.507059e+37 }
 0xd22   : > { %v3767_v38 = vpop.eup %3766 }
 0xd23   : > { %v2606_v57 = vmul.f32 %v3767_v38, %v2604_v58  ;;  %vm2611_vm14 = vweird.f32 %v3767_v38 }
 0xd24   : > { %vm2612_vm1 = vmor %vm2610_vm15, %vm2611_vm14 }
 0xd25   : > { %v2607_v30 = vsub.f32 1.0, %v2606_v57 }
 0xd27   : > { %v2608_v15 = vmul.f32 %v3767_v38, %v2607_v30 }
 0xd29   : > { %v2609_v36 = vadd.f32 %v3767_v38, %v2608_v15 }
 0xd2b   : > { %v2613_v23 = vsel %vm2612_vm1, %v3767_v38, %v2609_v36 }
 0xd2c   : > { %v2618_v49 = vsel %vm2615_vm2, %v2617_v45, %v2613_v23 }
 0xd2d   : > { %v2630_v26 = vsub.f32 1.0, %v2618_v49  ;;  %v2638_v16 = vmul.f32 %v2636_v35, %v2618_v49 }
 0xd81   : > { %v2621_v13 = vpop.permute.xlu1 %2620 }
 0xd82   : > { %v2623_v21 = vmul.f32 %v2621_v13, %v2618_v49 }
 0xd84   : > { %2625 = vrot.lane.b32.xlu2 %v2623_v21, %s3952_s1 }
 0xdde   : > { %v2626_v39 = vpop.permute.xlu2 %2625 }
 0xddf   : > { %v2628_v28 = vadd.f32 %v2626_v39, %v5162_v52 }
 0xde1   : > { %3768 = vtanh.f32 %v2628_v28 }
 0xde7   : > { %v3769_v54 = vpop.eup %3768 }
 0xde8   : > { %2632 = vrot.lane.b32.xlu0 %v3769_v54, %s3953_s23 }
 0xe5a   : > { %v2633_v20 = vpop.permute.xlu0 %2632 }
 0xe5b   : > { %v2635_v0 = vmul.f32 %v2633_v20, %v2630_v26 }
 0xe5d   : > { %v2639_v17 = vadd.f32 %v2638_v16, %v2635_v0 }
 0xe5f   : > { %v2850_v60 = vsel %vm2280_vm5, %v2849_v11, %v2639_v17  ;;  %v2641_v27 = vrot.slane %v2639_v17, 4  ;;  %v2705_v8 = vrot.slane %v2639_v17, 7 }
 0xe61   : > { %2642 = vrot.lane.b32.xlu1 %v2641_v27, %s3953_s23 }
 0xed3   : > { %v2643_v41 = vpop.permute.xlu1 %2642 }
 0xed4   : > { %3683 = vmatmul.msk.f32.vlgmr.msra.gmra.mxu0 %vm2290_vm10, %v2643_v41 }
 0xf51   : > { %v2663_v33 = vpop.f32.mrf.mxu0 }
 0xf52   : > { %v2664_v2 = vadd.f32 %v2663_v33, %v5143_v46 }
 0xf54   : > { %v2667_v7 = vrot.slane %v2664_v2, 3 }
 0xf56   : > { %v2669_v62 = vadd.f32 %v2667_v7, %v5162_v52  ;;  %2689 = vrot.lane.b32.xlu2 %v2667_v7, %s3952_s1 }
 0xf58   : > { %v3684_v48 = vmul.f32 -1.442695, %v2669_v62 }
 0xf5a   : > { %3770 = vpow2.f32 %v3684_v48 }
 0xf60   : > { %v3771_v31 = vpop.eup %3770 }
 0xf61   : > { %v2673_v14 = vadd.f32 1.0, %v3771_v31 }
 0xf63   : > { %3772 = vrcp.f32 %v2673_v14  ;;  %v2685_v1 = vand.u32 2147483648, %v2673_v14  ;;  %v2683_v47 = vand.u32 2147483647, %v2673_v14  ;;  %vm2679_vm15 = vweird.f32 %v2673_v14 }
 0xf65   : > { %v2686_v63 = vor.u32 1.1754944e-38, %v2685_v1  ;;  %vm2684_vm2 = vcmp.eq.f32.partialorder %v2683_v47, 8.507059e+37 }
 0xf69   : > { %v3773_v29 = vpop.eup %3772 }
 0xf6a   : > { %v2675_v44 = vmul.f32 %v3773_v29, %v2673_v14  ;;  %vm2680_vm14 = vweird.f32 %v3773_v29 }
 0xf6b   : > { %vm2681_vm1 = vmor %vm2679_vm15, %vm2680_vm14 }
 0xf6c   : > { %v2676_v42 = vsub.f32 1.0, %v2675_v44 }
 0xf6e   : > { %v2677_v3 = vmul.f32 %v3773_v29, %v2676_v42 }
 0xf70   : > { %v2678_v6 = vadd.f32 %v3773_v29, %v2677_v3 }
 0xf72   : > { %v2682_v40 = vsel %vm2681_vm1, %v3773_v29, %v2678_v6 }
 0xf73   : > { %v2687_v12 = vsel %vm2684_vm2, %v2686_v63, %v2682_v40 }
 0xf74   : > { %v2707_v43 = vmul.f32 %v2705_v8, %v2687_v12  ;;  %v2699_v34 = vsub.f32 1.0, %v2687_v12 }
 0xfb0   : > { %v2690_v50 = vpop.permute.xlu2 %2689 }
 0xfb1   : > { %v2692_v5 = vmul.f32 %v2690_v50, %v2687_v12 }
 0xfb3   : > { %2694 = vrot.lane.b32.xlu0 %v2692_v5, %s3952_s1 }
0x1025   : > { %v2695_v4 = vpop.permute.xlu0 %2694 }
0x1026   : > { %v2697_v9 = vadd.f32 %v2695_v4, %v5162_v52  ;;  %v5244_v4 = vld [vmem:[%s5461_s13 + $0x18] sm:$0xff] }
0x1027   : > { %2947 = vmatpush.msrb.mxu0 %v5244_v4  ;;  %3011 = vmatpush.msrb.mxu1 %v5244_v4 }
0x1028   : > { %3774 = vtanh.f32 %v2697_v9  ;;  %v5249_v9 = vld [vmem:[%s5461_s13 + $0x10] sm:$0xff]  ;;  %3080 = vmatpush.msrb.mxu2 %v5244_v4 }
0x1029   : > { %2948 = vmatpush.msrb.mxu0 %v5249_v9  ;;  %3012 = vmatpush.msrb.mxu1 %v5249_v9 }
0x102a   : > { %3081 = vmatpush.msrb.mxu2 %v5249_v9 }
0x102e   : > { %v3775_v51 = vpop.eup %3774 }
0x102f   : > { %2701 = vrot.lane.b32.xlu1 %v3775_v51, %s3953_s23  ;;  %v5264_v51 = vld [vmem:[%s5461_s13] sm:$0xff] }
0x10a1   : > { %v2702_v10 = vpop.permute.xlu1 %2701 }
0x10a2   : > { %v2704_v56 = vmul.f32 %v2702_v10, %v2699_v34  ;;  %v3841_v34 = vld [vmem:[#allocation2] sm:$0xff] }
0x10a4   : > { %v2708_v37 = vadd.f32 %v2707_v43, %v2704_v56 }
0x10a6   : > { %v2851_v11 = vsel %vm2282_vm6, %v2850_v60, %v2708_v37  ;;  %v2710_v19 = vrot.slane %v2708_v37, 5  ;;  %v2774_v35 = vrot.slane %v2708_v37, 7 }
0x10a8   : > { %2711 = vrot.lane.b32.xlu2 %v2710_v19, %s3953_s23 }
0x1102   : > { %v2712_v53 = vpop.permute.xlu2 %2711 }
0x1103   : > { %3685 = vmatmul.msk.f32.vlgmr.msra.gmra.mxu1 %vm2290_vm10, %v2712_v53 }
0x1180   : > { %v2732_v18 = vpop.f32.mrf.mxu1 }
0x1181   : > { %v2733_v25 = vadd.f32 %v2732_v18, %v5143_v46 }
0x1183   : > { %v2736_v24 = vrot.slane %v2733_v25, 2 }
0x1185   : > { %2758 = vrot.lane.b32.xlu0 %v2736_v24, %s3952_s1  ;;  %v2738_v32 = vadd.f32 %v2736_v24, %v5162_v52 }
0x1187   : > { %v3686_v61 = vmul.f32 -1.442695, %v2738_v32 }
0x1189   : > { %3776 = vpow2.f32 %v3686_v61 }
0x118f   : > { %v3777_v55 = vpop.eup %3776 }
0x1190   : > { %v2742_v58 = vadd.f32 1.0, %v3777_v55 }
0x1192   : > { %3778 = vrcp.f32 %v2742_v58  ;;  %v2754_v59 = vand.u32 2147483648, %v2742_v58  ;;  %vm2748_vm15 = vweird.f32 %v2742_v58  ;;  %v2752_v22 = vand.u32 2147483647, %v2742_v58 }
0x1194   : > { %v2755_v45 = vor.u32 1.1754944e-38, %v2754_v59  ;;  %vm2753_vm2 = vcmp.eq.f32.partialorder %v2752_v22, 8.507059e+37  ;;  %v2881_v59 = vld [vmem:[%s5459_s11 + $0x18] sm:$0xff]  ;;  %v2880_v22 = vld [vmem:[%s5459_s11 + $0x10] sm:$0xff] }
0x1195   : > { %2901 = vmatpush.msra.mxu3 %v2881_v59 }
0x1197   : > { %2902 = vmatpush.msra.mxu3 %v2880_v22 }
0x1198   : > { %v3779_v38 = vpop.eup %3778 }
0x1199   : > { %v2744_v57 = vmul.f32 %v3779_v38, %v2742_v58  ;;  %vm2749_vm14 = vweird.f32 %v3779_v38 }
0x119a   : > { %vm2750_vm1 = vmor %vm2748_vm15, %vm2749_vm14 }
0x119b   : > { %v2745_v30 = vsub.f32 1.0, %v2744_v57 }
0x119d   : > { %v2746_v15 = vmul.f32 %v3779_v38, %v2745_v30 }
0x119f   : > { %v2747_v36 = vadd.f32 %v3779_v38, %v2746_v15 }
0x11a1   : > { %v2751_v23 = vsel %vm2750_vm1, %v3779_v38, %v2747_v36 }
0x11a2   : > { %v2756_v49 = vsel %vm2753_vm2, %v2755_v45, %v2751_v23  ;;  %v2879_v23 = vld [vmem:[%s5459_s11 + $0x8] sm:$0xff]  ;;  %v2878_v45 = vld [vmem:[%s5459_s11] sm:$0xff] }
0x11a3   : > { %v2768_v26 = vsub.f32 1.0, %v2756_v49  ;;  %v2776_v16 = vmul.f32 %v2774_v35, %v2756_v49  ;;  %2903 = vmatpush.msra.mxu3 %v2879_v23 }
0x11a5   : > { %2904 = vmatpush.msra.mxu3 %v2878_v45 }
0x11a7   : > { %3149 = vmatpush.msrb.mxu3 %v5244_v4 }
0x11a9   : > { %3150 = vmatpush.msrb.mxu3 %v5249_v9 }
0x11f7   : > { %v2759_v13 = vpop.permute.xlu0 %2758 }
0x11f8   : > { %v2761_v21 = vmul.f32 %v2759_v13, %v2756_v49  ;;  %v5316_v13 = vld [vmem:[%s5462_s14] sm:$0x1] }
0x11fa   : > { %2763 = vrot.lane.b32.xlu1 %v2761_v21, %s3952_s1 }
0x126c   : > { %v2764_v39 = vpop.permute.xlu1 %2763 }
0x126d   : > { %v2766_v28 = vadd.f32 %v2764_v39, %v5162_v52 }
0x126f   : > { %3780 = vtanh.f32 %v2766_v28 }
0x1275   : > { %v3781_v54 = vpop.eup %3780 }
0x1276   : > { %2770 = vrot.lane.b32.xlu2 %v3781_v54, %s3953_s23 }
0x12d0   : > { %v2771_v20 = vpop.permute.xlu2 %2770 }
0x12d1   : > { %v2773_v0 = vmul.f32 %v2771_v20, %v2768_v26  ;;  %v3738_v26 = vld [vmem:[%s5460_s12] ss:$0 sm:$0xff] }
0x12d3   : > { %v5226_v17 = vadd.f32 %v2776_v16, %v2773_v0 }
0x12d5   : > { %v5230_v60 = vsel %vm2284_vm7, %v2851_v11, %v5226_v17  ;;  %v2779_v27 = vrot.slane %v5226_v17, 6  ;;  %v2843_v56 = vrot.slane %v5226_v17, 7 }
0x12d7   : > { %2780 = vrot.lane.b32.xlu0 %v2779_v27, %s3953_s23 }
0x1349   : > { %v2781_v41 = vpop.permute.xlu0 %2780 }
0x134a   : > { %3687 = vmatmul.msk.f32.vlgmr.msra.gmra.mxu2 %vm2290_vm10, %v2781_v41 }
0x13cd   : > { %v2801_v33 = vpop.f32.mrf.mxu2 }
0x13ce   : > { %v2802_v2 = vadd.f32 %v2801_v33, %v5143_v46 }
0x13d0   : > { %v2805_v7 = vrot.slane %v2802_v2, 1 }
0x13d2   : > { %2827 = vrot.lane.b32.xlu1 %v2805_v7, %s3952_s1  ;;  %v2807_v62 = vadd.f32 %v2805_v7, %v5162_v52 }
0x13d4   : > { %v3688_v48 = vmul.f32 -1.442695, %v2807_v62 }
0x13d6   : > { %3782 = vpow2.f32 %v3688_v48 }
0x13dc   : > { %v3783_v31 = vpop.eup %3782 }
0x13dd   : > { %v2811_v14 = vadd.f32 1.0, %v3783_v31 }
0x13df   : > { %3784 = vrcp.f32 %v2811_v14  ;;  %v2823_v47 = vand.u32 2147483648, %v2811_v14  ;;  %vm2817_vm15 = vweird.f32 %v2811_v14  ;;  %v2821_v6 = vand.u32 2147483647, %v2811_v14 }
0x13e1   : > { %v2824_v63 = vor.u32 1.1754944e-38, %v2823_v47  ;;  %vm2822_vm2 = vcmp.eq.f32.partialorder %v2821_v6, 8.507059e+37 }
0x13e5   : > { %v3785_v29 = vpop.eup %3784 }
0x13e6   : > { %v2813_v44 = vmul.f32 %v3785_v29, %v2811_v14  ;;  %vm2818_vm14 = vweird.f32 %v3785_v29 }
0x13e7   : > { %vm2819_vm1 = vmor %vm2817_vm15, %vm2818_vm14 }
0x13e8   : > { %v2814_v42 = vsub.f32 1.0, %v2813_v44 }
0x13ea   : > { %v2815_v1 = vmul.f32 %v3785_v29, %v2814_v42 }
0x13ec   : > { %v2816_v3 = vadd.f32 %v3785_v29, %v2815_v1 }
0x13ee   : > { %v2820_v46 = vsel %vm2819_vm1, %v3785_v29, %v2816_v3 }
0x13ef   : > { %v2825_v8 = vsel %vm2822_vm2, %v2824_v63, %v2820_v46 }
0x13f0   : > { %v2837_v10 = vsub.f32 1.0, %v2825_v8  ;;  %v2845_v11 = vmul.f32 %v2843_v56, %v2825_v8 }
0x1444   : > { %v2828_v40 = vpop.permute.xlu1 %2827 }
0x1445   : > { %v2830_v12 = vmul.f32 %v2828_v40, %v2825_v8 }
0x1447   : > { %2832 = vrot.lane.b32.xlu2 %v2830_v12, %s3952_s1 }
0x14a1   : > { %v2833_v43 = vpop.permute.xlu2 %2832 }
0x14a2   : > { %v2835_v50 = vadd.f32 %v2833_v43, %v5162_v52  ;;  %v5256_v52 = vld [vmem:[%s5461_s13 + $0x8] sm:$0xff] }
0x14a3   : > { %2949 = vmatpush.msrb.mxu0 %v5256_v52  ;;  %3013 = vmatpush.msrb.mxu1 %v5256_v52 }
0x14a4   : > { %3786 = vtanh.f32 %v2835_v50  ;;  %3082 = vmatpush.msrb.mxu2 %v5256_v52  ;;  %3151 = vmatpush.msrb.mxu3 %v5256_v52 }
0x14a5   : > { %2950 = vmatpush.msrb.mxu0 %v5264_v51  ;;  %3014 = vmatpush.msrb.mxu1 %v5264_v51 }
0x14a6   : > { %2951 = vmatmul.f32.vlgmr.msrb.gmra.mxu0 %v3841_v34  ;;  %3083 = vmatpush.msrb.mxu2 %v5264_v51 }
0x14a7   : > { %3218 = vmatpush.msra.mxu0 %v5244_v4  ;;  %3287 = vmatpush.msra.mxu1 %v5244_v4 }
0x14a8   : > { %3356 = vmatpush.msra.mxu2 %v5244_v4  ;;  %3152 = vmatpush.msrb.mxu3 %v5264_v51 }
0x14a9   : > { %3219 = vmatpush.msra.mxu0 %v5249_v9  ;;  %3288 = vmatpush.msra.mxu1 %v5249_v9 }
0x14aa   : > { %v3787_v5 = vpop.eup %3786  ;;  %3357 = vmatpush.msra.mxu2 %v5249_v9 }
0x14ab   : > { %2839 = vrot.lane.b32.xlu0 %v3787_v5, %s3953_s23  ;;  %3220 = vmatpush.msra.mxu0 %v5256_v52 }
0x14ac   : > { %3289 = vmatpush.msra.mxu1 %v5256_v52  ;;  %3358 = vmatpush.msra.mxu2 %v5256_v52 }
0x14ad   : > { %3221 = vmatpush.msra.mxu0 %v5264_v51 }
0x14ae   : > { %3290 = vmatpush.msra.mxu1 %v5264_v51  ;;  %3359 = vmatpush.msra.mxu2 %v5264_v51 }
0x151d   : > { %v2840_v37 = vpop.permute.xlu0 %2839 }
0x151e   : > { %v2842_v19 = vmul.f32 %v2840_v37, %v2837_v10 }
0x1520   : > { %v2846_v53 = vadd.f32 %v2845_v11, %v2842_v19 }
0x1522   : > { %v2853_v18 = vsel %vm2286_vm8, %v5230_v60, %v2846_v53 }
0x1523   : > { %2870 = vrot.lane.b32.xlu1 %v2853_v18, %s3953_s23  ;;  %v2855_v25 = vrot.slane %v2853_v18, 7  ;;  %v2857_v24 = vrot.slane %v2853_v18, 5  ;;  %v2859_v32 = vrot.slane %v2853_v18, 3  ;;  %v2861_v61 = vrot.slane %v2853_v18, 1  ;;  %v2952_v49 = vpop.f32.mrf.mxu0 }
0x1524   : > { %v2953_v21 = vadd.f32 %v2952_v49, %v5316_v13 }
0x1525   : > { %v2863_v55 = vsel %vm731_vm0, %v2855_v25, %v2857_v24 }
0x1526   : > { %v2864_v58 = vsel %vm2276_vm3, %v2863_v55, %v2859_v32  ;;  %2976 = vrot.lane.b32.xlu0 %v2953_v21, %s3952_s1 }
0x1527   : > { %v2865_v38 = vsel %vm2278_vm4, %v2864_v58, %v2861_v61 }
0x1528   : > { %v2866_v57 = vsel %vm2280_vm5, %v2865_v38, %v2855_v25 }
0x1529   : > { %v2867_v30 = vsel %vm2282_vm6, %v2866_v57, %v2857_v24 }
0x152a   : > { %v2868_v15 = vsel %vm2284_vm7, %v2867_v30, %v2859_v32 }
0x152b   : > { %v2869_v36 = vsel %vm2286_vm8, %v2868_v15, %v2861_v61 }
0x152c   : > { %2874 = vrot.lane.b32.xlu2 %v2869_v36, %s3953_s23 }
0x1586   : > { %v2875_v39 = vpop.permute.xlu2 %2874 }
0x1595   : > { %v2871_v28 = vpop.permute.xlu1 %2870 }
0x1596   : > { %v2877_v54 = vsel %vm2288_vm9, %v2871_v28, %v2875_v39 }
0x1597   : > { %3689 = vmatmul.msk.f32.vlgmr.msra.gmra.mxu3 %vm2290_vm10, %v2877_v54 }
0x1598   : > { %3425 = vmatpush.msra.mxu3 %v5244_v4  ;;  %v2977_v4 = vpop.permute.xlu0 %2976 }
0x159a   : > { %3426 = vmatpush.msra.mxu3 %v5249_v9 }
0x159c   : > { %3427 = vmatpush.msra.mxu3 %v5256_v52 }
0x159e   : > { %3428 = vmatpush.msra.mxu3 %v5264_v51 }
0x161a   : > { %v2906_v35 = vpop.f32.mrf.mxu3 }
0x161b   : > { %v2907_v20 = vadd.f32 %v3738_v26, %v2906_v35 }
0x161d   : > { %v2910_v16 = vrot.slane %v2907_v20, 7  ;;  %v2912_v0 = vrot.slane %v2907_v20, 5  ;;  %v2914_v17 = vrot.slane %v2907_v20, 3  ;;  %v2916_v60 = vrot.slane %v2907_v20, 1 }
0x161f   : > { %v2918_v27 = vsel %vm731_vm0, %v2910_v16, %v2912_v0 }
0x1620   : > { %v2919_v41 = vsel %vm2276_vm3, %v2918_v27, %v2914_v17 }
0x1621   : > { %v2920_v33 = vsel %vm2278_vm4, %v2919_v41, %v2916_v60 }
0x1622   : > { %v2921_v2 = vsel %vm2280_vm5, %v2920_v33, %v2910_v16 }
0x1623   : > { %v2922_v7 = vsel %vm2282_vm6, %v2921_v2, %v2912_v0 }
0x1624   : > { %v2923_v62 = vsel %vm2284_vm7, %v2922_v7, %v2914_v17 }
0x1625   : > { %v2924_v48 = vsel %vm2286_vm8, %v2923_v62, %v2916_v60 }
0x1626   : > { %v2925_v31 = vsel %vm2288_vm9, %v2907_v20, %v2924_v48 }
0x1627   : > { %v2926_v14 = vsel %vm2290_vm10, %v2925_v31, %v2907_v20 }
0x1628   : > { %v2927_v29 = vsel %vm2292_vm11, %v2926_v14, %v2924_v48 }
0x1629   : > { %v2928_v44 = vsel %vm2294_vm12, %v2927_v29, %v2907_v20 }
0x162a   : > { %v5341_v42 = vsel %vm2296_vm13, %v2928_v44, %v2924_v48 }
0x162b   : > { %v2955_v1 = vadd.f32 %v2953_v21, %v5341_v42 }
0x162d   : > { %v3690_v3 = vmul.f32 -1.442695, %v2955_v1 }
0x162f   : > { %3788 = vpow2.f32 %v3690_v3 }
0x1635   : > { %v3789_v47 = vpop.eup %3788 }
0x1636   : > { %v2959_v6 = vadd.f32 1.0, %v3789_v47 }
0x1638   : > { %3790 = vrcp.f32 %v2959_v6  ;;  %v2971_v8 = vand.u32 2147483648, %v2959_v6  ;;  %v2969_v43 = vand.u32 2147483647, %v2959_v6  ;;  %vm2965_vm11 = vweird.f32 %v2959_v6 }
0x163a   : > { %v2972_v5 = vor.u32 1.1754944e-38, %v2971_v8  ;;  %vm2970_vm13 = vcmp.eq.f32.partialorder %v2969_v43, 8.507059e+37 }
0x163e   : > { %v3791_v46 = vpop.eup %3790 }
0x163f   : > { %v2961_v63 = vmul.f32 %v3791_v46, %v2959_v6  ;;  %vm2966_vm14 = vweird.f32 %v3791_v46 }
0x1640   : > { %vm2967_vm12 = vmor %vm2965_vm11, %vm2966_vm14 }
0x1641   : > { %v2962_v40 = vsub.f32 1.0, %v2961_v63 }
0x1643   : > { %v2963_v12 = vmul.f32 %v3791_v46, %v2962_v40 }
0x1645   : > { %v2964_v50 = vadd.f32 %v3791_v46, %v2963_v12 }
0x1647   : > { %v2968_v9 = vsel %vm2967_vm12, %v3791_v46, %v2964_v50 }
0x1648   : > { %v2973_v52 = vsel %vm2970_vm13, %v2972_v5, %v2968_v9 }
0x1649   : > { %v2979_v51 = vmul.f32 %v2977_v4, %v2973_v52  ;;  %v2986_v37 = vsub.f32 1.0, %v2973_v52  ;;  %v2992_v19 = vmul.f32 0.0, %v2973_v52 }
0x164b   : > { %2981 = vrot.lane.b32.xlu1 %v2979_v51, %s3952_s1 }
0x16bd   : > { %v2982_v34 = vpop.permute.xlu1 %2981 }
0x16be   : > { %v2984_v10 = vadd.f32 %v2982_v34, %v5341_v42 }
0x16c0   : > { %3792 = vtanh.f32 %v2984_v10 }
0x16c6   : > { %v3793_v56 = vpop.eup %3792 }
0x16c7   : > { %2988 = vrot.lane.b32.xlu2 %v3793_v56, %s3953_s23 }
0x1721   : > { %v2989_v11 = vpop.permute.xlu2 %2988 }
0x1722   : > { %v2991_v53 = vmul.f32 %v2989_v11, %v2986_v37 }
0x1724   : > { %v5347_v18 = vadd.f32 %v2992_v19, %v2991_v53 }
0x1726   : > { %2995 = vrot.lane.b32.xlu0 %v5347_v18, %s3953_s23  ;;  %v3058_v0 = vrot.slane %v5347_v18, 7 }
0x1798   : > { %v2996_v25 = vpop.permute.xlu0 %2995 }
0x1799   : > { %3691 = vmatmul.msk.f32.vlgmr.msrb.gmra.mxu1 %vm2290_vm10, %v2996_v25 }
0x1816   : > { %v3016_v24 = vpop.f32.mrf.mxu1 }
0x1817   : > { %v3017_v32 = vadd.f32 %v3016_v24, %v5316_v13 }
0x1819   : > { %v3020_v61 = vrot.slane %v3017_v32, 7 }
0x181b   : > { %3042 = vrot.lane.b32.xlu1 %v3020_v61, %s3952_s1  ;;  %v3022_v55 = vadd.f32 %v3020_v61, %v5341_v42 }
0x181d   : > { %v3692_v58 = vmul.f32 -1.442695, %v3022_v55 }
0x181f   : > { %3794 = vpow2.f32 %v3692_v58 }
0x1825   : > { %v3795_v38 = vpop.eup %3794 }
0x1826   : > { %v3026_v57 = vadd.f32 1.0, %v3795_v38 }
0x1828   : > { %3796 = vrcp.f32 %v3026_v57  ;;  %v3038_v23 = vand.u32 2147483648, %v3026_v57  ;;  %vm3032_vm1 = vweird.f32 %v3026_v57  ;;  %v3036_v45 = vand.u32 2147483647, %v3026_v57 }
0x182a   : > { %v3039_v21 = vor.u32 1.1754944e-38, %v3038_v23  ;;  %vm3037_vm14 = vcmp.eq.f32.partialorder %v3036_v45, 8.507059e+37 }
0x182e   : > { %v3797_v30 = vpop.eup %3796 }
0x182f   : > { %v3028_v15 = vmul.f32 %v3797_v30, %v3026_v57  ;;  %vm3033_vm15 = vweird.f32 %v3797_v30 }
0x1830   : > { %vm3034_vm2 = vmor %vm3032_vm1, %vm3033_vm15 }
0x1831   : > { %v3029_v36 = vsub.f32 1.0, %v3028_v15 }
0x1833   : > { %v3030_v59 = vmul.f32 %v3797_v30, %v3029_v36 }
0x1835   : > { %v3031_v22 = vadd.f32 %v3797_v30, %v3030_v59 }
0x1837   : > { %v3035_v49 = vsel %vm3034_vm2, %v3797_v30, %v3031_v22 }
0x1838   : > { %v3040_v28 = vsel %vm3037_vm14, %v3039_v21, %v3035_v49 }
0x1839   : > { %v3052_v16 = vsub.f32 1.0, %v3040_v28  ;;  %v3060_v27 = vmul.f32 %v3058_v0, %v3040_v28 }
0x188d   : > { %v3043_v39 = vpop.permute.xlu1 %3042 }
0x188e   : > { %v3045_v54 = vmul.f32 %v3043_v39, %v3040_v28 }
0x1890   : > { %3047 = vrot.lane.b32.xlu2 %v3045_v54, %s3952_s1 }
0x18ea   : > { %v3048_v26 = vpop.permute.xlu2 %3047 }
0x18eb   : > { %v3050_v35 = vadd.f32 %v3048_v26, %v5341_v42 }
0x18ed   : > { %3798 = vtanh.f32 %v3050_v35 }
0x18f3   : > { %v3799_v20 = vpop.eup %3798 }
0x18f4   : > { %3054 = vrot.lane.b32.xlu0 %v3799_v20, %s3953_s23 }
0x1966   : > { %v3055_v17 = vpop.permute.xlu0 %3054 }
0x1967   : > { %v3057_v60 = vmul.f32 %v3055_v17, %v3052_v16 }
0x1969   : > { %v3061_v41 = vadd.f32 %v3060_v27, %v3057_v60 }
0x196b   : > { %v3063_v33 = vrot.slane %v3061_v41, 1  ;;  %v3127_v43 = vrot.slane %v3061_v41, 7  ;;  %v3476_v19 = vsel %vm731_vm0, %v5347_v18, %v3061_v41 }
0x196d   : > { %3064 = vrot.lane.b32.xlu1 %v3063_v33, %s3953_s23 }
0x19df   : > { %v3065_v2 = vpop.permute.xlu1 %3064 }
0x19e0   : > { %3693 = vmatmul.msk.f32.vlgmr.msrb.gmra.mxu2 %vm2290_vm10, %v3065_v2 }
0x1a63   : > { %v3085_v7 = vpop.f32.mrf.mxu2 }
0x1a64   : > { %v3086_v62 = vadd.f32 %v3085_v7, %v5316_v13 }
0x1a66   : > { %v3089_v48 = vrot.slane %v3086_v62, 6 }
0x1a68   : > { %v3091_v31 = vadd.f32 %v3089_v48, %v5341_v42  ;;  %3111 = vrot.lane.b32.xlu2 %v3089_v48, %s3952_s1 }
0x1a6a   : > { %v3694_v14 = vmul.f32 -1.442695, %v3091_v31 }
0x1a6c   : > { %3800 = vpow2.f32 %v3694_v14 }
0x1a72   : > { %v3801_v29 = vpop.eup %3800 }
0x1a73   : > { %v3095_v44 = vadd.f32 1.0, %v3801_v29 }
0x1a75   : > { %3802 = vrcp.f32 %v3095_v44  ;;  %v3107_v6 = vand.u32 2147483648, %v3095_v44  ;;  %v3105_v63 = vand.u32 2147483647, %v3095_v44  ;;  %vm3101_vm12 = vweird.f32 %v3095_v44 }
0x1a77   : > { %v3108_v8 = vor.u32 1.1754944e-38, %v3107_v6  ;;  %vm3106_vm15 = vcmp.eq.f32.partialorder %v3105_v63, 8.507059e+37 }
0x1a7b   : > { %v3803_v1 = vpop.eup %3802 }
0x1a7c   : > { %v3097_v3 = vmul.f32 %v3803_v1, %v3095_v44  ;;  %vm3102_vm11 = vweird.f32 %v3803_v1 }
0x1a7d   : > { %vm3103_vm13 = vmor %vm3101_vm12, %vm3102_vm11 }
0x1a7e   : > { %v3098_v47 = vsub.f32 1.0, %v3097_v3 }
0x1a80   : > { %v3099_v46 = vmul.f32 %v3803_v1, %v3098_v47 }
0x1a82   : > { %v3100_v40 = vadd.f32 %v3803_v1, %v3099_v46 }
0x1a84   : > { %v3104_v12 = vsel %vm3103_vm13, %v3803_v1, %v3100_v40 }
0x1a85   : > { %v3109_v50 = vsel %vm3106_vm15, %v3108_v8, %v3104_v12 }
0x1a86   : > { %v3129_v5 = vmul.f32 %v3127_v43, %v3109_v50  ;;  %v3121_v10 = vsub.f32 1.0, %v3109_v50 }
0x1ac2   : > { %v3112_v4 = vpop.permute.xlu2 %3111 }
0x1ac3   : > { %v3114_v9 = vmul.f32 %v3112_v4, %v3109_v50 }
0x1ac5   : > { %3116 = vrot.lane.b32.xlu0 %v3114_v9, %s3952_s1 }
0x1b37   : > { %v3117_v52 = vpop.permute.xlu0 %3116 }
0x1b38   : > { %v3119_v51 = vadd.f32 %v3117_v52, %v5341_v42 }
0x1b3a   : > { %3804 = vtanh.f32 %v3119_v51 }
0x1b40   : > { %v3805_v34 = vpop.eup %3804 }
0x1b41   : > { %3123 = vrot.lane.b32.xlu1 %v3805_v34, %s3953_s23 }
0x1bb3   : > { %v3124_v56 = vpop.permute.xlu1 %3123 }
0x1bb4   : > { %v3126_v37 = vmul.f32 %v3124_v56, %v3121_v10 }
0x1bb6   : > { %v3130_v11 = vadd.f32 %v3129_v5, %v3126_v37 }
0x1bb8   : > { %v3477_v53 = vsel %vm2276_vm3, %v3476_v19, %v3130_v11  ;;  %v3132_v25 = vrot.slane %v3130_v11, 2  ;;  %v3196_v0 = vrot.slane %v3130_v11, 7 }
0x1bba   : > { %3133 = vrot.lane.b32.xlu2 %v3132_v25, %s3953_s23 }
0x1c14   : > { %v3134_v24 = vpop.permute.xlu2 %3133 }
0x1c15   : > { %3695 = vmatmul.msk.f32.vlgmr.msrb.gmra.mxu3 %vm2290_vm10, %v3134_v24 }
0x1c98   : > { %v3154_v32 = vpop.f32.mrf.mxu3 }
0x1c99   : > { %v3155_v61 = vadd.f32 %v3154_v32, %v5316_v13 }
0x1c9b   : > { %v3158_v55 = vrot.slane %v3155_v61, 5 }
0x1c9d   : > { %3180 = vrot.lane.b32.xlu0 %v3158_v55, %s3952_s1  ;;  %v3160_v58 = vadd.f32 %v3158_v55, %v5341_v42 }
0x1c9f   : > { %v3696_v38 = vmul.f32 -1.442695, %v3160_v58 }
0x1ca1   : > { %3806 = vpow2.f32 %v3696_v38 }
0x1ca7   : > { %v3807_v57 = vpop.eup %3806 }
0x1ca8   : > { %v3164_v18 = vadd.f32 1.0, %v3807_v57 }
0x1caa   : > { %3808 = vrcp.f32 %v3164_v18  ;;  %v3176_v23 = vand.u32 2147483648, %v3164_v18  ;;  %vm3170_vm2 = vweird.f32 %v3164_v18  ;;  %v3174_v45 = vand.u32 2147483647, %v3164_v18 }
0x1cac   : > { %v3177_v21 = vor.u32 1.1754944e-38, %v3176_v23  ;;  %vm3175_vm11 = vcmp.eq.f32.partialorder %v3174_v45, 8.507059e+37 }
0x1cb0   : > { %v3809_v30 = vpop.eup %3808 }
0x1cb1   : > { %v3166_v15 = vmul.f32 %v3809_v30, %v3164_v18  ;;  %vm3171_vm1 = vweird.f32 %v3809_v30 }
0x1cb2   : > { %vm3172_vm14 = vmor %vm3170_vm2, %vm3171_vm1 }
0x1cb3   : > { %v3167_v36 = vsub.f32 1.0, %v3166_v15 }
0x1cb5   : > { %v3168_v59 = vmul.f32 %v3809_v30, %v3167_v36 }
0x1cb7   : > { %v3169_v22 = vadd.f32 %v3809_v30, %v3168_v59 }
0x1cb9   : > { %v3173_v49 = vsel %vm3172_vm14, %v3809_v30, %v3169_v22 }
0x1cba   : > { %v3178_v28 = vsel %vm3175_vm11, %v3177_v21, %v3173_v49 }
0x1cbb   : > { %v3190_v16 = vsub.f32 1.0, %v3178_v28  ;;  %v3198_v60 = vmul.f32 %v3196_v0, %v3178_v28 }
0x1d0f   : > { %v3181_v39 = vpop.permute.xlu0 %3180 }
0x1d10   : > { %v3183_v54 = vmul.f32 %v3181_v39, %v3178_v28 }
0x1d12   : > { %3185 = vrot.lane.b32.xlu1 %v3183_v54, %s3952_s1 }
0x1d84   : > { %v3186_v26 = vpop.permute.xlu1 %3185 }
0x1d85   : > { %v3188_v35 = vadd.f32 %v3186_v26, %v5341_v42 }
0x1d87   : > { %3810 = vtanh.f32 %v3188_v35 }
0x1d8d   : > { %v3811_v20 = vpop.eup %3810 }
0x1d8e   : > { %3192 = vrot.lane.b32.xlu2 %v3811_v20, %s3953_s23 }
0x1de8   : > { %v3193_v17 = vpop.permute.xlu2 %3192 }
0x1de9   : > { %v3195_v27 = vmul.f32 %v3193_v17, %v3190_v16 }
0x1deb   : > { %v3199_v41 = vadd.f32 %v3198_v60, %v3195_v27 }
0x1ded   : > { %v3478_v33 = vsel %vm2278_vm4, %v3477_v53, %v3199_v41  ;;  %v3201_v2 = vrot.slane %v3199_v41, 3  ;;  %v3265_v10 = vrot.slane %v3199_v41, 7 }
0x1def   : > { %3202 = vrot.lane.b32.xlu0 %v3201_v2, %s3953_s23 }
0x1e61   : > { %v3203_v7 = vpop.permute.xlu0 %3202 }
0x1e62   : > { %3697 = vmatmul.msk.f32.vlgmr.msra.gmra.mxu0 %vm2290_vm10, %v3203_v7 }
0x1edf   : > { %v3223_v62 = vpop.f32.mrf.mxu0 }
0x1ee0   : > { %v3224_v48 = vadd.f32 %v3223_v62, %v5316_v13 }
0x1ee2   : > { %v3227_v31 = vrot.slane %v3224_v48, 4 }
0x1ee4   : > { %3249 = vrot.lane.b32.xlu1 %v3227_v31, %s3952_s1  ;;  %v3229_v14 = vadd.f32 %v3227_v31, %v5341_v42 }
0x1ee6   : > { %v3698_v29 = vmul.f32 -1.442695, %v3229_v14 }
0x1ee8   : > { %3812 = vpow2.f32 %v3698_v29 }
0x1eee   : > { %v3813_v44 = vpop.eup %3812 }
0x1eef   : > { %v3233_v1 = vadd.f32 1.0, %v3813_v44 }
0x1ef1   : > { %3814 = vrcp.f32 %v3233_v1  ;;  %v3245_v40 = vand.u32 2147483648, %v3233_v1  ;;  %vm3239_vm13 = vweird.f32 %v3233_v1  ;;  %v3243_v8 = vand.u32 2147483647, %v3233_v1 }
0x1ef3   : > { %v3246_v43 = vor.u32 1.1754944e-38, %v3245_v40  ;;  %vm3244_vm1 = vcmp.eq.f32.partialorder %v3243_v8, 8.507059e+37 }
0x1ef7   : > { %v3815_v3 = vpop.eup %3814 }
0x1ef8   : > { %v3235_v47 = vmul.f32 %v3815_v3, %v3233_v1  ;;  %vm3240_vm12 = vweird.f32 %v3815_v3 }
0x1ef9   : > { %vm3241_vm15 = vmor %vm3239_vm13, %vm3240_vm12 }
0x1efa   : > { %v3236_v6 = vsub.f32 1.0, %v3235_v47 }
0x1efc   : > { %v3237_v46 = vmul.f32 %v3815_v3, %v3236_v6 }
0x1efe   : > { %v3238_v63 = vadd.f32 %v3815_v3, %v3237_v46 }
0x1f00   : > { %v3242_v12 = vsel %vm3241_vm15, %v3815_v3, %v3238_v63 }
0x1f01   : > { %v3247_v5 = vsel %vm3244_vm1, %v3246_v43, %v3242_v12 }
0x1f02   : > { %v3259_v34 = vsub.f32 1.0, %v3247_v5  ;;  %v3267_v37 = vmul.f32 %v3265_v10, %v3247_v5 }
0x1f56   : > { %v3250_v50 = vpop.permute.xlu1 %3249 }
0x1f57   : > { %v3252_v4 = vmul.f32 %v3250_v50, %v3247_v5 }
0x1f59   : > { %3254 = vrot.lane.b32.xlu2 %v3252_v4, %s3952_s1 }
0x1fb3   : > { %v3255_v9 = vpop.permute.xlu2 %3254 }
0x1fb4   : > { %v3257_v52 = vadd.f32 %v3255_v9, %v5341_v42 }
0x1fb6   : > { %3816 = vtanh.f32 %v3257_v52 }
0x1fbc   : > { %v3817_v51 = vpop.eup %3816 }
0x1fbd   : > { %3261 = vrot.lane.b32.xlu0 %v3817_v51, %s3953_s23 }
0x202f   : > { %v3262_v56 = vpop.permute.xlu0 %3261 }
0x2030   : > { %v3264_v11 = vmul.f32 %v3262_v56, %v3259_v34 }
0x2032   : > { %v3268_v19 = vadd.f32 %v3267_v37, %v3264_v11 }
0x2034   : > { %v3479_v53 = vsel %vm2280_vm5, %v3478_v33, %v3268_v19  ;;  %v3270_v25 = vrot.slane %v3268_v19, 4  ;;  %v3334_v39 = vrot.slane %v3268_v19, 7 }
0x2036   : > { %3271 = vrot.lane.b32.xlu1 %v3270_v25, %s3953_s23 }
0x20a8   : > { %v3272_v24 = vpop.permute.xlu1 %3271 }
0x20a9   : > { %3699 = vmatmul.msk.f32.vlgmr.msra.gmra.mxu1 %vm2290_vm10, %v3272_v24 }
0x2126   : > { %v3292_v32 = vpop.f32.mrf.mxu1 }
0x2127   : > { %v3293_v61 = vadd.f32 %v3292_v32, %v5316_v13 }
0x2129   : > { %v3296_v55 = vrot.slane %v3293_v61, 3 }
0x212b   : > { %v3298_v58 = vadd.f32 %v3296_v55, %v5341_v42  ;;  %3318 = vrot.lane.b32.xlu2 %v3296_v55, %s3952_s1 }
0x212d   : > { %v3700_v38 = vmul.f32 -1.442695, %v3298_v58 }
0x212f   : > { %3818 = vpow2.f32 %v3700_v38 }
0x2135   : > { %v3819_v57 = vpop.eup %3818 }
0x2136   : > { %v3302_v18 = vadd.f32 1.0, %v3819_v57 }
0x2138   : > { %3820 = vrcp.f32 %v3302_v18  ;;  %v3314_v59 = vand.u32 2147483648, %v3302_v18  ;;  %v3312_v23 = vand.u32 2147483647, %v3302_v18  ;;  %vm3308_vm14 = vweird.f32 %v3302_v18 }
0x213a   : > { %v3315_v49 = vor.u32 1.1754944e-38, %v3314_v59  ;;  %vm3313_vm12 = vcmp.eq.f32.partialorder %v3312_v23, 8.507059e+37 }
0x213e   : > { %v3821_v30 = vpop.eup %3820 }
0x213f   : > { %v3304_v15 = vmul.f32 %v3821_v30, %v3302_v18  ;;  %vm3309_vm2 = vweird.f32 %v3821_v30 }
0x2140   : > { %vm3310_vm11 = vmor %vm3308_vm14, %vm3309_vm2 }
0x2141   : > { %v3305_v36 = vsub.f32 1.0, %v3304_v15 }
0x2143   : > { %v3306_v22 = vmul.f32 %v3821_v30, %v3305_v36 }
0x2145   : > { %v3307_v45 = vadd.f32 %v3821_v30, %v3306_v22 }
0x2147   : > { %v3311_v21 = vsel %vm3310_vm11, %v3821_v30, %v3307_v45 }
0x2148   : > { %v3316_v28 = vsel %vm3313_vm12, %v3315_v49, %v3311_v21 }
0x2149   : > { %v3336_v54 = vmul.f32 %v3334_v39, %v3316_v28  ;;  %v3328_v17 = vsub.f32 1.0, %v3316_v28 }
0x2185   : > { %v3319_v26 = vpop.permute.xlu2 %3318 }
0x2186   : > { %v3321_v35 = vmul.f32 %v3319_v26, %v3316_v28 }
0x2188   : > { %3323 = vrot.lane.b32.xlu0 %v3321_v35, %s3952_s1 }
0x21fa   : > { %v3324_v20 = vpop.permute.xlu0 %3323 }
0x21fb   : > { %v3326_v16 = vadd.f32 %v3324_v20, %v5341_v42 }
0x21fd   : > { %3822 = vtanh.f32 %v3326_v16 }
0x2203   : > { %v3823_v0 = vpop.eup %3822 }
0x2204   : > { %3330 = vrot.lane.b32.xlu1 %v3823_v0, %s3953_s23 }
0x2276   : > { %v3331_v60 = vpop.permute.xlu1 %3330 }
0x2277   : > { %v3333_v27 = vmul.f32 %v3331_v60, %v3328_v17 }
0x2279   : > { %v3337_v41 = vadd.f32 %v3336_v54, %v3333_v27 }
0x227b   : > { %v3480_v33 = vsel %vm2282_vm6, %v3479_v53, %v3337_v41  ;;  %v3339_v2 = vrot.slane %v3337_v41, 5  ;;  %v3403_v10 = vrot.slane %v3337_v41, 7 }
0x227d   : > { %3340 = vrot.lane.b32.xlu2 %v3339_v2, %s3953_s23 }
0x22d7   : > { %v3341_v7 = vpop.permute.xlu2 %3340 }
0x22d8   : > { %3701 = vmatmul.msk.f32.vlgmr.msra.gmra.mxu2 %vm2290_vm10, %v3341_v7 }
0x235b   : > { %v3361_v62 = vpop.f32.mrf.mxu2 }
0x235c   : > { %v3362_v48 = vadd.f32 %v3361_v62, %v5316_v13 }
0x235e   : > { %v3365_v31 = vrot.slane %v3362_v48, 2 }
0x2360   : > { %3387 = vrot.lane.b32.xlu0 %v3365_v31, %s3952_s1  ;;  %v3367_v14 = vadd.f32 %v3365_v31, %v5341_v42 }
0x2362   : > { %v3702_v29 = vmul.f32 -1.442695, %v3367_v14 }
0x2364   : > { %3824 = vpow2.f32 %v3702_v29 }
0x236a   : > { %v3825_v44 = vpop.eup %3824 }
0x236b   : > { %v3371_v1 = vadd.f32 1.0, %v3825_v44 }
0x236d   : > { %3826 = vrcp.f32 %v3371_v1  ;;  %v3383_v40 = vand.u32 2147483648, %v3371_v1  ;;  %vm3377_vm15 = vweird.f32 %v3371_v1  ;;  %v3381_v8 = vand.u32 2147483647, %v3371_v1 }
0x236f   : > { %v3384_v43 = vor.u32 1.1754944e-38, %v3383_v40  ;;  %vm3382_vm2 = vcmp.eq.f32.partialorder %v3381_v8, 8.507059e+37 }
0x2373   : > { %v3827_v3 = vpop.eup %3826 }
0x2374   : > { %v3373_v47 = vmul.f32 %v3827_v3, %v3371_v1  ;;  %vm3378_vm13 = vweird.f32 %v3827_v3 }
0x2375   : > { %vm3379_vm1 = vmor %vm3377_vm15, %vm3378_vm13 }
0x2376   : > { %v3374_v6 = vsub.f32 1.0, %v3373_v47  ;;  %v3509_v47 = vld [vmem:[%s5463_s15 + $0x10] sm:$0xff] }
0x2378   : > { %v3375_v46 = vmul.f32 %v3827_v3, %v3374_v6  ;;  %v3508_v6 = vld [vmem:[%s5463_s15 + $0x8] sm:$0xff] }
0x237a   : > { %v3376_v63 = vadd.f32 %v3827_v3, %v3375_v46  ;;  %v3507_v46 = vld [vmem:[%s5463_s15] sm:$0xff] }
0x237c   : > { %v3380_v12 = vsel %vm3379_vm1, %v3827_v3, %v3376_v63  ;;  %v3510_v3 = vld [vmem:[%s5463_s15 + $0x18] sm:$0xff] }
0x237d   : > { %v3385_v5 = vsel %vm3382_vm2, %v3384_v43, %v3380_v12  ;;  %3530 = vmatpush.msrb.mxu0 %v3510_v3  ;;  %v3739_v12 = vld [vmem:[%s5464_s16] ss:$0 sm:$0xff] }
0x237e   : > { %v3397_v34 = vsub.f32 1.0, %v3385_v5  ;;  %v3405_v37 = vmul.f32 %v3403_v10, %v3385_v5 }
0x237f   : > { %3531 = vmatpush.msrb.mxu0 %v3509_v47 }
0x2381   : > { %3532 = vmatpush.msrb.mxu0 %v3508_v6 }
0x2383   : > { %3533 = vmatpush.msrb.mxu0 %v3507_v46 }
0x23d2   : > { %v3388_v50 = vpop.permute.xlu0 %3387 }
0x23d3   : > { %v3390_v4 = vmul.f32 %v3388_v50, %v3385_v5 }
0x23d5   : > { %3392 = vrot.lane.b32.xlu1 %v3390_v4, %s3952_s1 }
0x2447   : > { %v3393_v9 = vpop.permute.xlu1 %3392 }
0x2448   : > { %v3395_v52 = vadd.f32 %v3393_v9, %v5341_v42 }
0x244a   : > { %3828 = vtanh.f32 %v3395_v52 }
0x2450   : > { %v3829_v51 = vpop.eup %3828 }
0x2451   : > { %3399 = vrot.lane.b32.xlu2 %v3829_v51, %s3953_s23 }
0x24ab   : > { %v3400_v56 = vpop.permute.xlu2 %3399 }
0x24ac   : > { %v3402_v11 = vmul.f32 %v3400_v56, %v3397_v34 }
0x24ae   : > { %v3406_v19 = vadd.f32 %v3405_v37, %v3402_v11 }
0x24b0   : > { %v3481_v53 = vsel %vm2284_vm7, %v3480_v33, %v3406_v19  ;;  %v3408_v25 = vrot.slane %v3406_v19, 6  ;;  %v3472_v16 = vrot.slane %v3406_v19, 7 }
0x24b2   : > { %3409 = vrot.lane.b32.xlu0 %v3408_v25, %s3953_s23 }
0x2524   : > { %v3410_v24 = vpop.permute.xlu0 %3409 }
0x2525   : > { %3703 = vmatmul.msk.f32.vlgmr.msra.gmra.mxu3 %vm2290_vm10, %v3410_v24 }
0x25a8   : > { %v3430_v32 = vpop.f32.mrf.mxu3 }
0x25a9   : > { %v3431_v61 = vadd.f32 %v3430_v32, %v5316_v13 }
0x25ab   : > { %v3434_v55 = vrot.slane %v3431_v61, 1 }
0x25ad   : > { %3456 = vrot.lane.b32.xlu1 %v3434_v55, %s3952_s1  ;;  %v3436_v58 = vadd.f32 %v3434_v55, %v5341_v42 }
0x25af   : > { %v3704_v38 = vmul.f32 -1.442695, %v3436_v58 }
0x25b1   : > { %3830 = vpow2.f32 %v3704_v38 }
0x25b7   : > { %v3831_v57 = vpop.eup %3830 }
0x25b8   : > { %v3440_v18 = vadd.f32 1.0, %v3831_v57 }
0x25ba   : > { %3832 = vrcp.f32 %v3440_v18  ;;  %v3452_v23 = vand.u32 2147483648, %v3440_v18  ;;  %vm3446_vm11 = vweird.f32 %v3440_v18  ;;  %v3450_v45 = vand.u32 2147483647, %v3440_v18 }
0x25bc   : > { %v3453_v49 = vor.u32 1.1754944e-38, %v3452_v23  ;;  %vm3451_vm13 = vcmp.eq.f32.partialorder %v3450_v45, 8.507059e+37 }
0x25c0   : > { %v3833_v30 = vpop.eup %3832 }
0x25c1   : > { %v3442_v15 = vmul.f32 %v3833_v30, %v3440_v18  ;;  %vm3447_vm14 = vweird.f32 %v3833_v30 }
0x25c2   : > { %vm3448_vm12 = vmor %vm3446_vm11, %vm3447_vm14 }
0x25c3   : > { %v3443_v36 = vsub.f32 1.0, %v3442_v15 }
0x25c5   : > { %v3444_v59 = vmul.f32 %v3833_v30, %v3443_v36 }
0x25c7   : > { %v3445_v22 = vadd.f32 %v3833_v30, %v3444_v59 }
0x25c9   : > { %v3449_v13 = vsel %vm3448_vm12, %v3833_v30, %v3445_v22 }
0x25ca   : > { %v3454_v39 = vsel %vm3451_vm13, %v3453_v49, %v3449_v13 }
0x25cb   : > { %v3466_v20 = vsub.f32 1.0, %v3454_v39  ;;  %v3474_v17 = vmul.f32 %v3472_v16, %v3454_v39 }
0x261f   : > { %v3457_v21 = vpop.permute.xlu1 %3456 }
0x2620   : > { %v3459_v28 = vmul.f32 %v3457_v21, %v3454_v39 }
0x2622   : > { %3461 = vrot.lane.b32.xlu2 %v3459_v28, %s3952_s1 }
0x267c   : > { %v3462_v54 = vpop.permute.xlu2 %3461 }
0x267d   : > { %v3464_v26 = vadd.f32 %v3462_v54, %v5341_v42 }
0x267f   : > { %3834 = vtanh.f32 %v3464_v26 }
0x2685   : > { %v3835_v35 = vpop.eup %3834 }
0x2686   : > { %3468 = vrot.lane.b32.xlu0 %v3835_v35, %s3953_s23 }
0x26f8   : > { %v3469_v0 = vpop.permute.xlu0 %3468 }
0x26f9   : > { %v3471_v60 = vmul.f32 %v3469_v0, %v3466_v20 }
0x26fb   : > { %v3475_v27 = vadd.f32 %v3474_v17, %v3471_v60 }
0x26fd   : > { %v3482_v41 = vsel %vm2286_vm8, %v3481_v53, %v3475_v27 }
0x26fe   : > { %3499 = vrot.lane.b32.xlu1 %v3482_v41, %s3953_s23  ;;  %v3484_v33 = vrot.slane %v3482_v41, 7  ;;  %v3486_v2 = vrot.slane %v3482_v41, 5  ;;  %v3488_v7 = vrot.slane %v3482_v41, 3  ;;  %v3490_v62 = vrot.slane %v3482_v41, 1 }
0x2700   : > { %v3492_v42 = vsel %vm731_vm0, %v3484_v33, %v3486_v2 }
0x2701   : > { %v3493_v48 = vsel %vm2276_vm3, %v3492_v42, %v3488_v7 }
0x2702   : > { %v3494_v31 = vsel %vm2278_vm4, %v3493_v48, %v3490_v62 }
0x2703   : > { %v3495_v14 = vsel %vm2280_vm5, %v3494_v31, %v3484_v33  ;;  %vm3557_vm5 = vcmask 23552  }
0x2704   : > { %v3496_v29 = vsel %vm2282_vm6, %v3495_v14, %v3486_v2 }
0x2705   : > { %v3497_v44 = vsel %vm2284_vm7, %v3496_v29, %v3488_v7 }
0x2706   : > { %v3498_v1 = vsel %vm2286_vm8, %v3497_v44, %v3490_v62 }
0x2707   : > { %3503 = vrot.lane.b32.xlu2 %v3498_v1, %s3953_s23 }
0x2761   : > { %v3504_v63 = vpop.permute.xlu2 %3503 }
0x2770   : > { %v3500_v40 = vpop.permute.xlu1 %3499 }
0x2771   : > { %v3506_v8 = vsel %vm2288_vm9, %v3500_v40, %v3504_v63 }
0x2772   : > { %3705 = vmatmul.msk.f32.vlgmr.msrb.gmra.mxu0 %vm2290_vm10, %v3506_v8 }
0x27ef   : > { %v3535_v43 = vpop.f32.mrf.mxu0 }
0x27f0   : > { %v3536_v50 = vadd.f32 %v3739_v12, %v3535_v43 }
0x27f2   : > { %v3706_v5 = vmul.f32 -1.442695, %v3536_v50 }
0x27f4   : > { %3836 = vpow2.f32 %v3706_v5 }
0x27fa   : > { %v3837_v4 = vpop.eup %3836 }
0x27fb   : > { %v3541_v9 = vadd.f32 1.0, %v3837_v4 }
0x27fd   : > { %3838 = vrcp.f32 %v3541_v9  ;;  %v3553_v10 = vand.u32 2147483648, %v3541_v9  ;;  %v3551_v37 = vand.u32 2147483647, %v3541_v9  ;;  %vm3547_vm3 = vweird.f32 %v3541_v9 }
0x27ff   : > { %v3554_v19 = vor.u32 1.1754944e-38, %v3553_v10  ;;  %vm3552_vm6 = vcmp.eq.f32.partialorder %v3551_v37, 8.507059e+37 }
0x2803   : > { %v3839_v52 = vpop.eup %3838 }
0x2804   : > { %v3543_v51 = vmul.f32 %v3839_v52, %v3541_v9  ;;  %vm3548_vm0 = vweird.f32 %v3839_v52 }
0x2805   : > { %vm3549_vm4 = vmor %vm3547_vm3, %vm3548_vm0 }
0x2806   : > { %v3544_v34 = vsub.f32 1.0, %v3543_v51 }
0x2808   : > { %v3545_v56 = vmul.f32 %v3839_v52, %v3544_v34 }
0x280a   : > { %v3546_v11 = vadd.f32 %v3839_v52, %v3545_v56 }
0x280c   : > { %v3550_v53 = vsel %vm3549_vm4, %v3839_v52, %v3546_v11 }
0x280d   : > { %v3555_v25 = vsel %vm3552_vm6, %v3554_v19, %v3550_v53 }
0x280e   : > { %3558 = vst.msk [vmem:[%s563_s25] sm:$0xff] %vm3557_vm5, %v3555_v25 }
0x280f PF: > { %s28_s24 = sadd.s32 1, %s3946_s24  }
0x2810   : > { %p25_p7 = scmp.ge.s32.totalorder %s28_s24, 4  }
0x2812   :  { %27 = sbr.rel (!%p25_p7) target bundleno = 4 (0x4), region = 129 }
0x2817   :  { %3578 = vsyncpa [#allocation5], 1 }
0x2818   :  { %3580 = vsyncpa [#allocation5 + $0x1], 1 }

</bundles_post_ra>
